<compile_context>
chip_gen: v7x
topology: tpu7x:2x2x1
jax: 0.10.0
libtpu: 0.0.40
codegen_flags: <defaults>
</compile_context>

<pallas_src>
import functools
import math

import jax
import jax.numpy as jnp
from jax import lax
from jax.experimental import pallas as pl
from jax.experimental.pallas import tpu as pltpu


# Taps per conv2 phase axis: ki = 2*i2 + pi (ki in 0..4) -> 3 taps for pi==0,
# 2 taps for pi==1 (same for kj / pj).
_NTAP = (3, 2)


# ----------------------------------------------------------------------------
# The fused kernel: one grid step == Bblk images, everything VMEM-resident.
# ----------------------------------------------------------------------------
def _discriminator_kernel(bblk, p_ref, w1_ref, b1_ref, w2_ref, b2_ref,
                          w3_ref, b3_ref, fcw_ref, fcb_ref, o_ref):
    f32, bf16 = jnp.float32, jnp.bfloat16

    # ---- conv1 (no activation): ONE MXU dot for all images & all phases. ---
    # Patch row b*160 + 40*ph + hh*6 + ww holds the 6x6 input patch of the
    # conv1 output at (h, w) = (2*hh + ph//2, 2*ww + ph%2) of image b; rows
    # 36..39 of each 40-row phase slot are zero padding (8-sublane aligned).
    p = p_ref[...].reshape(bblk * 160, 36)
    a1 = jnp.dot(p, w1_ref[...], preferred_element_type=f32) + b1_ref[...]
    a1 = a1.astype(bf16).reshape(bblk, 160, 128)              # cast ONCE

    # ---- conv2 (5x5, stride 2, 12x12 -> 4x4): 4 phase-grouped dots. --------
    # For phase (pi, pj), taps (ki, kj) = (2*i2+pi, 2*j2+pj) are K-concatenated
    # so the whole tap reduction happens inside a single MXU pass.  lhs row
    # (b, ho*4+wo) holds, per tap, conv1 output row (ho+i2)*6 + (wo+j2) of
    # that phase (a contiguous 4-row run as wo varies -> unit-stride slices).
    acc2 = jnp.zeros((bblk * 16, 128), f32)
    off = 0
    for pi in range(2):
        for pj in range(2):
            ph = pi * 2 + pj
            ni, nj = _NTAP[pi], _NTAP[pj]
            kdim = ni * nj * 128
            ho_blocks = []
            for ho in range(4):
                taps = []
                for i2 in range(ni):
                    for j2 in range(nj):
                        r0 = 40 * ph + (ho + i2) * 6 + j2
                        taps.append(a1[:, r0:r0 + 4, :])          # (Bblk,4,128)
                ho_blocks.append(jnp.concatenate(taps, axis=-1))  # lane concat
            lhs = jnp.concatenate(ho_blocks, axis=1)              # (Bblk,16,K)
            acc2 = acc2 + jnp.dot(lhs.reshape(bblk * 16, kdim),
                                  w2_ref[off:off + kdim, :],
                                  preferred_element_type=f32)
            off += kdim
    a2 = acc2 + b2_ref[...]
    a2 = jnp.where(a2 > 0, a2, 0.01 * a2)                         # leaky_relu
    a2 = a2.astype(bf16).reshape(bblk, 16, 128)                   # cast ONCE

    # ---- conv3 (4x4 kernel covers the whole 4x4 input): ONE dot. -----------
    # The 16 spatial taps are folded into K (lanes): lhs (Bblk, 16*128).
    a2w = jnp.concatenate([a2[:, t, :] for t in range(16)], axis=-1)
    a3 = jnp.dot(a2w, w3_ref[...], preferred_element_type=f32) + b3_ref[...]
    a3 = jnp.where(a3 > 0, a3, 0.01 * a3)                         # leaky_relu
    # Padded channels 100..127: zero weights + zero bias -> exactly 0.

    # ---- fc (100 -> 1) + stable sigmoid on the VPU; padded lanes add 0. ----
    s = jnp.sum(a3 * fcw_ref[...], axis=1, keepdims=True)         # (Bblk, 1)
    logit = s + fcb_ref[...]                                      # (Bblk, 128)
    z = jnp.exp(-jnp.abs(logit))
    sig = jnp.where(logit >= 0, 1.0 / (1.0 + z), z / (1.0 + z))   # stable sigmoid
    o_ref[...] = sig.reshape(1, bblk, 128)                        # lane-dense store


# ----------------------------------------------------------------------------
# One-time parameter preprocessing (hoisted out of the forward pass).
# ----------------------------------------------------------------------------
def preprocess_params(params):
    # conv1: OIHW (128,1,6,6) -> (ki*6+kj, cout) = (36, 128).
    w1 = jnp.transpose(params["w1"], (2, 3, 1, 0)).reshape(36, 128)

    # conv2: phase-grouped, K-concatenated: row = [phase][i2][j2][cin].
    w2r = jnp.transpose(params["w2"], (2, 3, 1, 0))               # (ki,kj,ci,co)
    blocks = []
    for pi in range(2):
        for pj in range(2):
            for i2 in range(_NTAP[pi]):
                for j2 in range(_NTAP[pj]):
                    blocks.append(w2r[2 * i2 + pi, 2 * j2 + pj])  # (128, 128)
    w2 = jnp.concatenate(blocks, axis=0)                          # (3200, 128)

    # conv3: OIHW (100,128,4,4) -> ((ki*4+kj)*128 + cin, cout padded to 128).
    w3r = jnp.transpose(params["w3"], (2, 3, 1, 0))               # (4,4,128,100)
    w3r = jnp.pad(w3r, ((0, 0), (0, 0), (0, 0), (0, 28)))
    w3 = w3r.reshape(2048, 128)

    fcw = jnp.pad(params["fc_w"].reshape(1, 100), ((0, 0), (0, 28)))
    return {
        "w1": w1.astype(jnp.bfloat16),
        "b1": params["b1"].reshape(1, 128).astype(jnp.float32),
        "w2": w2.astype(jnp.bfloat16),
        "b2": params["b2"].reshape(1, 128).astype(jnp.float32),
        "w3": w3.astype(jnp.bfloat16),
        "b3": jnp.pad(params["b3"], (0, 28)).reshape(1, 128).astype(jnp.float32),
        "fcw": fcw.astype(jnp.float32),
        "fcb": jnp.broadcast_to(
            params["fc_b"].astype(jnp.float32).reshape(1, 1), (1, 128)),
    }


# ----------------------------------------------------------------------------
# Host glue: phase-ordered, 40-row-aligned im2col of the 28x28 input.
# ----------------------------------------------------------------------------
def _conv1_patches_phased(x):
    """x: (B,28,28) -> (B,160,36).

    out[b, 40*(hp*2+wp) + hh*6+ww, ki*6+kj] = x[b, 2*(2*hh+hp)+ki, 2*(2*ww+wp)+kj]
    i.e. phase ph occupies rows [40*ph, 40*ph+36); rows 36..39 are zero pad.
    """
    B = x.shape[0]
    cols = [x[:, ki:ki + 23:2, kj:kj + 23:2]
            for ki in range(6) for kj in range(6)]                # each (B,12,12)
    p = jnp.stack(cols, axis=-1)                                  # (B,12,12,36)
    p = p.reshape(B, 6, 2, 6, 2, 36)                              # h = 2*hh + hp
    p = jnp.transpose(p, (0, 2, 4, 1, 3, 5))                      # (B,hp,wp,hh,ww,K)
    p = p.reshape(B, 4, 36, 36)
    p = jnp.pad(p, ((0, 0), (0, 0), (0, 4), (0, 0)))              # 36 -> 40 rows
    return p.reshape(B, 160, 36)


@jax.jit
def discriminator_forward(prepped, x_nchw):
    B, C, H, W = x_nchw.shape
    assert C == 1 and H == 28 and W == 28, "Discriminator expects (B, 1, 28, 28)."

    # Images per grid step: large enough to fill MXU rows, small enough that
    # the grid keeps length >= 2 (both v7x TensorCores busy) whenever B >= 2.
    bblk = 8 if B >= 16 else max(1, B // 2)
    nblk = -(-B // bblk)
    bpad = nblk * bblk

    patches = _conv1_patches_phased(
        x_nchw.reshape(B, H, W).astype(jnp.float32)).astype(jnp.bfloat16)
    if bpad != B:
        patches = jnp.pad(patches, ((0, bpad - B), (0, 0), (0, 0)))

    out = pl.pallas_call(
        functools.partial(_discriminator_kernel, bblk),
        out_shape=jax.ShapeDtypeStruct((nblk, bblk, 128), jnp.float32),
        grid=(nblk,),
        in_specs=[
            pl.BlockSpec((bblk, 160, 36), lambda i: (i, 0, 0)),   # conv1 patches
            pl.BlockSpec((36, 128), lambda i: (0, 0)),            # w1
            pl.BlockSpec((1, 128), lambda i: (0, 0)),             # b1
            pl.BlockSpec((3200, 128), lambda i: (0, 0)),          # w2 (phase-grouped)
            pl.BlockSpec((1, 128), lambda i: (0, 0)),             # b2
            pl.BlockSpec((2048, 128), lambda i: (0, 0)),          # w3 (taps in K)
            pl.BlockSpec((1, 128), lambda i: (0, 0)),             # b3 (padded)
            pl.BlockSpec((1, 128), lambda i: (0, 0)),             # fc_w (padded)
            pl.BlockSpec((1, 128), lambda i: (0, 0)),             # fc_b (replicated)
        ],
        out_specs=pl.BlockSpec((1, bblk, 128), lambda i: (i, 0, 0)),
        compiler_params=pltpu.CompilerParams(
            dimension_semantics=("parallel",)),                   # v7x: 2 TCs busy
    )(patches, prepped["w1"], prepped["b1"], prepped["w2"], prepped["b2"],
      prepped["w3"], prepped["b3"], prepped["fcw"], prepped["fcb"])

    # Sigmoid is lane-replicated; keep lane 0, drop batch padding.
    return out.reshape(bpad, 128)[:B, :1]                          # (B, 1)


# ----------------------------------------------------------------------------
# Parameter init (PyTorch-style U(-1/sqrt(fan_in), 1/sqrt(fan_in))).
# ----------------------------------------------------------------------------
def init_params(key):
    def uni(k, shape, fan_in):
        bound = 1.0 / math.sqrt(fan_in)
        return jax.random.uniform(k, shape, jnp.float32, -bound, bound)

    ks = jax.random.split(key, 8)
    return {
        "w1": uni(ks[0], (128, 1, 6, 6), 1 * 6 * 6),
        "b1": uni(ks[1], (128,), 1 * 6 * 6),
        "w2": uni(ks[2], (128, 128, 5, 5), 128 * 5 * 5),
        "b2": uni(ks[3], (128,), 128 * 5 * 5),
        "w3": uni(ks[4], (100, 128, 4, 4), 128 * 4 * 4),
        "b3": uni(ks[5], (100,), 128 * 4 * 4),
        "fc_w": uni(ks[6], (1, 100), 100),
        "fc_b": uni(ks[7], (1,), 100),
    }


# ----------------------------------------------------------------------------
# Pure-JAX f32 reference (correctness check only).
# ----------------------------------------------------------------------------
def _reference_forward(params, x_nchw):
    def conv(x, w, b, stride):
        y = lax.conv_general_dilated(
            x, w, window_strides=(stride, stride), padding="VALID",
            dimension_numbers=("NCHW", "OIHW", "NCHW"))
        return y + b.reshape(1, -1, 1, 1)

    def lrelu(x):
        return jnp.where(x > 0, x, 0.01 * x)

    x = conv(x_nchw, params["w1"], params["b1"], 2)
    x = lrelu(conv(x, params["w2"], params["b2"], 2))
    x = lrelu(conv(x, params["w3"], params["b3"], 2))
    x = x.reshape(-1, 100)
    return jax.nn.sigmoid(x @ params["fc_w"].T + params["fc_b"])


if __name__ == "__main__":
    key = jax.random.PRNGKey(0)
    k_param, k_x = jax.random.split(key)
    params = init_params(k_param)
    prepped = preprocess_params(params)        # one-time weight layout work

    # Batch=8 (exercises Bblk=4 per grid step, grid=(2,)), 1 channel, 28x28.
    x = jax.random.normal(k_x, (8, 1, 28, 28), jnp.float32)

    out = jax.block_until_ready(discriminator_forward(prepped, x))
    assert out.shape == (8, 1), out.shape

    ref = jax.block_until_ready(_reference_forward(params, x))
    # bf16 MXU operands -> relaxed tolerance vs. the f32 reference.
    assert jnp.allclose(out, ref, atol=2.5e-2, rtol=2.5e-2), (out, ref)

    print("KERNEL_OK")
</pallas_src>

<mosaic_0001>
module attributes {stable_mosaic.version = 11 : i64} {
  func.func @_discriminator_kernel(%arg0: i32, %arg1: memref<4x160x36xbf16, #tpu.memory_space<vmem>>, %arg2: memref<36x128xbf16, #tpu.memory_space<vmem>>, %arg3: memref<1x128xf32, #tpu.memory_space<vmem>>, %arg4: memref<3200x128xbf16, #tpu.memory_space<vmem>>, %arg5: memref<1x128xf32, #tpu.memory_space<vmem>>, %arg6: memref<2048x128xbf16, #tpu.memory_space<vmem>>, %arg7: memref<1x128xf32, #tpu.memory_space<vmem>>, %arg8: memref<1x128xf32, #tpu.memory_space<vmem>>, %arg9: memref<1x128xf32, #tpu.memory_space<vmem>>, %arg10: memref<1x4x128xf32, #tpu.memory_space<vmem>>) attributes {dimension_semantics = [#tpu.dimension_semantics<parallel>], iteration_bounds = array<i64: 2>, scalar_prefetch = 0 : i64, scratch_operands = 0 : i64, tpu.core_type = #tpu.core_type<tc>, window_params = [{transform_indices = @transform_0, window_bounds = array<i64: 4, 160, 36>}, {pipeline_mode = #tpu.pipeline_mode<synchronous>, transform_indices = @transform_1, window_bounds = array<i64: 36, 128>}, {pipeline_mode = #tpu.pipeline_mode<synchronous>, transform_indices = @transform_2, window_bounds = array<i64: 1, 128>}, {pipeline_mode = #tpu.pipeline_mode<synchronous>, transform_indices = @transform_3, window_bounds = array<i64: 3200, 128>}, {pipeline_mode = #tpu.pipeline_mode<synchronous>, transform_indices = @transform_4, window_bounds = array<i64: 1, 128>}, {pipeline_mode = #tpu.pipeline_mode<synchronous>, transform_indices = @transform_5, window_bounds = array<i64: 2048, 128>}, {pipeline_mode = #tpu.pipeline_mode<synchronous>, transform_indices = @transform_6, window_bounds = array<i64: 1, 128>}, {pipeline_mode = #tpu.pipeline_mode<synchronous>, transform_indices = @transform_7, window_bounds = array<i64: 1, 128>}, {pipeline_mode = #tpu.pipeline_mode<synchronous>, transform_indices = @transform_8, window_bounds = array<i64: 1, 128>}, {transform_indices = @transform_9, window_bounds = array<i64: 1, 4, 128>}]} {
    %c0 = arith.constant 0 : index
    %c0_0 = arith.constant 0 : index
    %c0_1 = arith.constant 0 : index
    %0 = vector.load %arg1[%c0, %c0_0, %c0_1] : memref<4x160x36xbf16, #tpu.memory_space<vmem>>, vector<4x160x36xbf16>
    %1 = vector.shape_cast %0 : vector<4x160x36xbf16> to vector<640x36xbf16>
    %c0_2 = arith.constant 0 : index
    %c0_3 = arith.constant 0 : index
    %2 = vector.load %arg2[%c0_2, %c0_3] : memref<36x128xbf16, #tpu.memory_space<vmem>>, vector<36x128xbf16>
    %cst = arith.constant dense<0.000000e+00> : vector<640x128xf32>
    %3 = tpu.matmul %1, %2, %cst {dimension_numbers = #tpu.dot_dimension_numbers<[1], [0], [0], [1], [0, 0, 1, 1], [], []>} : vector<640x36xbf16>, vector<36x128xbf16>, vector<640x128xf32> -> vector<640x128xf32>
    %c0_4 = arith.constant 0 : index
    %c0_5 = arith.constant 0 : index
    %4 = vector.load %arg3[%c0_4, %c0_5] : memref<1x128xf32, #tpu.memory_space<vmem>>, vector<1x128xf32>
    %5 = vector.broadcast %4 : vector<1x128xf32> to vector<640x128xf32>
    %6 = arith.addf %3, %5 : vector<640x128xf32>
    %7 = arith.truncf %6 : vector<640x128xf32> to vector<640x128xbf16>
    %8 = vector.shape_cast %7 : vector<640x128xbf16> to vector<4x160x128xbf16>
    %cst_6 = arith.constant 0.000000e+00 : f32
    %9 = vector.broadcast %cst_6 : f32 to vector<64x128xf32>
    %10 = vector.extract_strided_slice %8 {offsets = [0, 0, 0], sizes = [4, 4, 128], strides = [1, 1, 1]} : vector<4x160x128xbf16> to vector<4x4x128xbf16>
    %11 = vector.extract_strided_slice %8 {offsets = [0, 1, 0], sizes = [4, 4, 128], strides = [1, 1, 1]} : vector<4x160x128xbf16> to vector<4x4x128xbf16>
    %12 = vector.extract_strided_slice %8 {offsets = [0, 2, 0], sizes = [4, 4, 128], strides = [1, 1, 1]} : vector<4x160x128xbf16> to vector<4x4x128xbf16>
    %13 = vector.extract_strided_slice %8 {offsets = [0, 6, 0], sizes = [4, 4, 128], strides = [1, 1, 1]} : vector<4x160x128xbf16> to vector<4x4x128xbf16>
    %14 = vector.extract_strided_slice %8 {offsets = [0, 7, 0], sizes = [4, 4, 128], strides = [1, 1, 1]} : vector<4x160x128xbf16> to vector<4x4x128xbf16>
    %15 = vector.extract_strided_slice %8 {offsets = [0, 8, 0], sizes = [4, 4, 128], strides = [1, 1, 1]} : vector<4x160x128xbf16> to vector<4x4x128xbf16>
    %16 = vector.extract_strided_slice %8 {offsets = [0, 12, 0], sizes = [4, 4, 128], strides = [1, 1, 1]} : vector<4x160x128xbf16> to vector<4x4x128xbf16>
    %17 = vector.extract_strided_slice %8 {offsets = [0, 13, 0], sizes = [4, 4, 128], strides = [1, 1, 1]} : vector<4x160x128xbf16> to vector<4x4x128xbf16>
    %18 = vector.extract_strided_slice %8 {offsets = [0, 14, 0], sizes = [4, 4, 128], strides = [1, 1, 1]} : vector<4x160x128xbf16> to vector<4x4x128xbf16>
    %19 = tpu.concatenate %10, %11, %12, %13, %14, %15, %16, %17, %18 in 2 : vector<4x4x128xbf16>, vector<4x4x128xbf16>, vector<4x4x128xbf16>, vector<4x4x128xbf16>, vector<4x4x128xbf16>, vector<4x4x128xbf16>, vector<4x4x128xbf16>, vector<4x4x128xbf16>, vector<4x4x128xbf16> -> vector<4x4x1152xbf16>
    %20 = vector.extract_strided_slice %8 {offsets = [0, 6, 0], sizes = [4, 4, 128], strides = [1, 1, 1]} : vector<4x160x128xbf16> to vector<4x4x128xbf16>
    %21 = vector.extract_strided_slice %8 {offsets = [0, 7, 0], sizes = [4, 4, 128], strides = [1, 1, 1]} : vector<4x160x128xbf16> to vector<4x4x128xbf16>
    %22 = vector.extract_strided_slice %8 {offsets = [0, 8, 0], sizes = [4, 4, 128], strides = [1, 1, 1]} : vector<4x160x128xbf16> to vector<4x4x128xbf16>
    %23 = vector.extract_strided_slice %8 {offsets = [0, 12, 0], sizes = [4, 4, 128], strides = [1, 1, 1]} : vector<4x160x128xbf16> to vector<4x4x128xbf16>
    %24 = vector.extract_strided_slice %8 {offsets = [0, 13, 0], sizes = [4, 4, 128], strides = [1, 1, 1]} : vector<4x160x128xbf16> to vector<4x4x128xbf16>
    %25 = vector.extract_strided_slice %8 {offsets = [0, 14, 0], sizes = [4, 4, 128], strides = [1, 1, 1]} : vector<4x160x128xbf16> to vector<4x4x128xbf16>
    %26 = vector.extract_strided_slice %8 {offsets = [0, 18, 0], sizes = [4, 4, 128], strides = [1, 1, 1]} : vector<4x160x128xbf16> to vector<4x4x128xbf16>
    %27 = vector.extract_strided_slice %8 {offsets = [0, 19, 0], sizes = [4, 4, 128], strides = [1, 1, 1]} : vector<4x160x128xbf16> to vector<4x4x128xbf16>
    %28 = vector.extract_strided_slice %8 {offsets = [0, 20, 0], sizes = [4, 4, 128], strides = [1, 1, 1]} : vector<4x160x128xbf16> to vector<4x4x128xbf16>
    %29 = tpu.concatenate %20, %21, %22, %23, %24, %25, %26, %27, %28 in 2 : vector<4x4x128xbf16>, vector<4x4x128xbf16>, vector<4x4x128xbf16>, vector<4x4x128xbf16>, vector<4x4x128xbf16>, vector<4x4x128xbf16>, vector<4x4x128xbf16>, vector<4x4x128xbf16>, vector<4x4x128xbf16> -> vector<4x4x1152xbf16>
    %30 = vector.extract_strided_slice %8 {offsets = [0, 12, 0], sizes = [4, 4, 128], strides = [1, 1, 1]} : vector<4x160x128xbf16> to vector<4x4x128xbf16>
    %31 = vector.extract_strided_slice %8 {offsets = [0, 13, 0], sizes = [4, 4, 128], strides = [1, 1, 1]} : vector<4x160x128xbf16> to vector<4x4x128xbf16>
    %32 = vector.extract_strided_slice %8 {offsets = [0, 14, 0], sizes = [4, 4, 128], strides = [1, 1, 1]} : vector<4x160x128xbf16> to vector<4x4x128xbf16>
    %33 = vector.extract_strided_slice %8 {offsets = [0, 18, 0], sizes = [4, 4, 128], strides = [1, 1, 1]} : vector<4x160x128xbf16> to vector<4x4x128xbf16>
    %34 = vector.extract_strided_slice %8 {offsets = [0, 19, 0], sizes = [4, 4, 128], strides = [1, 1, 1]} : vector<4x160x128xbf16> to vector<4x4x128xbf16>
    %35 = vector.extract_strided_slice %8 {offsets = [0, 20, 0], sizes = [4, 4, 128], strides = [1, 1, 1]} : vector<4x160x128xbf16> to vector<4x4x128xbf16>
    %36 = vector.extract_strided_slice %8 {offsets = [0, 24, 0], sizes = [4, 4, 128], strides = [1, 1, 1]} : vector<4x160x128xbf16> to vector<4x4x128xbf16>
    %37 = vector.extract_strided_slice %8 {offsets = [0, 25, 0], sizes = [4, 4, 128], strides = [1, 1, 1]} : vector<4x160x128xbf16> to vector<4x4x128xbf16>
    %38 = vector.extract_strided_slice %8 {offsets = [0, 26, 0], sizes = [4, 4, 128], strides = [1, 1, 1]} : vector<4x160x128xbf16> to vector<4x4x128xbf16>
    %39 = tpu.concatenate %30, %31, %32, %33, %34, %35, %36, %37, %38 in 2 : vector<4x4x128xbf16>, vector<4x4x128xbf16>, vector<4x4x128xbf16>, vector<4x4x128xbf16>, vector<4x4x128xbf16>, vector<4x4x128xbf16>, vector<4x4x128xbf16>, vector<4x4x128xbf16>, vector<4x4x128xbf16> -> vector<4x4x1152xbf16>
    %40 = vector.extract_strided_slice %8 {offsets = [0, 18, 0], sizes = [4, 4, 128], strides = [1, 1, 1]} : vector<4x160x128xbf16> to vector<4x4x128xbf16>
    %41 = vector.extract_strided_slice %8 {offsets = [0, 19, 0], sizes = [4, 4, 128], strides = [1, 1, 1]} : vector<4x160x128xbf16> to vector<4x4x128xbf16>
    %42 = vector.extract_strided_slice %8 {offsets = [0, 20, 0], sizes = [4, 4, 128], strides = [1, 1, 1]} : vector<4x160x128xbf16> to vector<4x4x128xbf16>
    %43 = vector.extract_strided_slice %8 {offsets = [0, 24, 0], sizes = [4, 4, 128], strides = [1, 1, 1]} : vector<4x160x128xbf16> to vector<4x4x128xbf16>
    %44 = vector.extract_strided_slice %8 {offsets = [0, 25, 0], sizes = [4, 4, 128], strides = [1, 1, 1]} : vector<4x160x128xbf16> to vector<4x4x128xbf16>
    %45 = vector.extract_strided_slice %8 {offsets = [0, 26, 0], sizes = [4, 4, 128], strides = [1, 1, 1]} : vector<4x160x128xbf16> to vector<4x4x128xbf16>
    %46 = vector.extract_strided_slice %8 {offsets = [0, 30, 0], sizes = [4, 4, 128], strides = [1, 1, 1]} : vector<4x160x128xbf16> to vector<4x4x128xbf16>
    %47 = vector.extract_strided_slice %8 {offsets = [0, 31, 0], sizes = [4, 4, 128], strides = [1, 1, 1]} : vector<4x160x128xbf16> to vector<4x4x128xbf16>
    %48 = vector.extract_strided_slice %8 {offsets = [0, 32, 0], sizes = [4, 4, 128], strides = [1, 1, 1]} : vector<4x160x128xbf16> to vector<4x4x128xbf16>
    %49 = tpu.concatenate %40, %41, %42, %43, %44, %45, %46, %47, %48 in 2 : vector<4x4x128xbf16>, vector<4x4x128xbf16>, vector<4x4x128xbf16>, vector<4x4x128xbf16>, vector<4x4x128xbf16>, vector<4x4x128xbf16>, vector<4x4x128xbf16>, vector<4x4x128xbf16>, vector<4x4x128xbf16> -> vector<4x4x1152xbf16>
    %50 = tpu.concatenate %19, %29, %39, %49 in 1 : vector<4x4x1152xbf16>, vector<4x4x1152xbf16>, vector<4x4x1152xbf16>, vector<4x4x1152xbf16> -> vector<4x16x1152xbf16>
    %51 = vector.shape_cast %50 : vector<4x16x1152xbf16> to vector<64x1152xbf16>
    %c0_7 = arith.constant 0 : index
    %c0_8 = arith.constant 0 : index
    %52 = vector.load %arg4[%c0_7, %c0_8] : memref<3200x128xbf16, #tpu.memory_space<vmem>>, vector<1152x128xbf16>
    %cst_9 = arith.constant dense<0.000000e+00> : vector<64x128xf32>
    %53 = tpu.matmul %51, %52, %cst_9 {dimension_numbers = #tpu.dot_dimension_numbers<[1], [0], [0], [1], [0, 0, 1, 1], [], []>} : vector<64x1152xbf16>, vector<1152x128xbf16>, vector<64x128xf32> -> vector<64x128xf32>
    %54 = arith.addf %9, %53 : vector<64x128xf32>
    %55 = vector.extract_strided_slice %8 {offsets = [0, 40, 0], sizes = [4, 4, 128], strides = [1, 1, 1]} : vector<4x160x128xbf16> to vector<4x4x128xbf16>
    %56 = vector.extract_strided_slice %8 {offsets = [0, 41, 0], sizes = [4, 4, 128], strides = [1, 1, 1]} : vector<4x160x128xbf16> to vector<4x4x128xbf16>
    %57 = vector.extract_strided_slice %8 {offsets = [0, 46, 0], sizes = [4, 4, 128], strides = [1, 1, 1]} : vector<4x160x128xbf16> to vector<4x4x128xbf16>
    %58 = vector.extract_strided_slice %8 {offsets = [0, 47, 0], sizes = [4, 4, 128], strides = [1, 1, 1]} : vector<4x160x128xbf16> to vector<4x4x128xbf16>
    %59 = vector.extract_strided_slice %8 {offsets = [0, 52, 0], sizes = [4, 4, 128], strides = [1, 1, 1]} : vector<4x160x128xbf16> to vector<4x4x128xbf16>
    %60 = vector.extract_strided_slice %8 {offsets = [0, 53, 0], sizes = [4, 4, 128], strides = [1, 1, 1]} : vector<4x160x128xbf16> to vector<4x4x128xbf16>
    %61 = tpu.concatenate %55, %56, %57, %58, %59, %60 in 2 : vector<4x4x128xbf16>, vector<4x4x128xbf16>, vector<4x4x128xbf16>, vector<4x4x128xbf16>, vector<4x4x128xbf16>, vector<4x4x128xbf16> -> vector<4x4x768xbf16>
    %62 = vector.extract_strided_slice %8 {offsets = [0, 46, 0], sizes = [4, 4, 128], strides = [1, 1, 1]} : vector<4x160x128xbf16> to vector<4x4x128xbf16>
    %63 = vector.extract_strided_slice %8 {offsets = [0, 47, 0], sizes = [4, 4, 128], strides = [1, 1, 1]} : vector<4x160x128xbf16> to vector<4x4x128xbf16>
    %64 = vector.extract_strided_slice %8 {offsets = [0, 52, 0], sizes = [4, 4, 128], strides = [1, 1, 1]} : vector<4x160x128xbf16> to vector<4x4x128xbf16>
    %65 = vector.extract_strided_slice %8 {offsets = [0, 53, 0], sizes = [4, 4, 128], strides = [1, 1, 1]} : vector<4x160x128xbf16> to vector<4x4x128xbf16>
    %66 = vector.extract_strided_slice %8 {offsets = [0, 58, 0], sizes = [4, 4, 128], strides = [1, 1, 1]} : vector<4x160x128xbf16> to vector<4x4x128xbf16>
    %67 = vector.extract_strided_slice %8 {offsets = [0, 59, 0], sizes = [4, 4, 128], strides = [1, 1, 1]} : vector<4x160x128xbf16> to vector<4x4x128xbf16>
    %68 = tpu.concatenate %62, %63, %64, %65, %66, %67 in 2 : vector<4x4x128xbf16>, vector<4x4x128xbf16>, vector<4x4x128xbf16>, vector<4x4x128xbf16>, vector<4x4x128xbf16>, vector<4x4x128xbf16> -> vector<4x4x768xbf16>
    %69 = vector.extract_strided_slice %8 {offsets = [0, 52, 0], sizes = [4, 4, 128], strides = [1, 1, 1]} : vector<4x160x128xbf16> to vector<4x4x128xbf16>
    %70 = vector.extract_strided_slice %8 {offsets = [0, 53, 0], sizes = [4, 4, 128], strides = [1, 1, 1]} : vector<4x160x128xbf16> to vector<4x4x128xbf16>
    %71 = vector.extract_strided_slice %8 {offsets = [0, 58, 0], sizes = [4, 4, 128], strides = [1, 1, 1]} : vector<4x160x128xbf16> to vector<4x4x128xbf16>
    %72 = vector.extract_strided_slice %8 {offsets = [0, 59, 0], sizes = [4, 4, 128], strides = [1, 1, 1]} : vector<4x160x128xbf16> to vector<4x4x128xbf16>
    %73 = vector.extract_strided_slice %8 {offsets = [0, 64, 0], sizes = [4, 4, 128], strides = [1, 1, 1]} : vector<4x160x128xbf16> to vector<4x4x128xbf16>
    %74 = vector.extract_strided_slice %8 {offsets = [0, 65, 0], sizes = [4, 4, 128], strides = [1, 1, 1]} : vector<4x160x128xbf16> to vector<4x4x128xbf16>
    %75 = tpu.concatenate %69, %70, %71, %72, %73, %74 in 2 : vector<4x4x128xbf16>, vector<4x4x128xbf16>, vector<4x4x128xbf16>, vector<4x4x128xbf16>, vector<4x4x128xbf16>, vector<4x4x128xbf16> -> vector<4x4x768xbf16>
    %76 = vector.extract_strided_slice %8 {offsets = [0, 58, 0], sizes = [4, 4, 128], strides = [1, 1, 1]} : vector<4x160x128xbf16> to vector<4x4x128xbf16>
    %77 = vector.extract_strided_slice %8 {offsets = [0, 59, 0], sizes = [4, 4, 128], strides = [1, 1, 1]} : vector<4x160x128xbf16> to vector<4x4x128xbf16>
    %78 = vector.extract_strided_slice %8 {offsets = [0, 64, 0], sizes = [4, 4, 128], strides = [1, 1, 1]} : vector<4x160x128xbf16> to vector<4x4x128xbf16>
    %79 = vector.extract_strided_slice %8 {offsets = [0, 65, 0], sizes = [4, 4, 128], strides = [1, 1, 1]} : vector<4x160x128xbf16> to vector<4x4x128xbf16>
    %80 = vector.extract_strided_slice %8 {offsets = [0, 70, 0], sizes = [4, 4, 128], strides = [1, 1, 1]} : vector<4x160x128xbf16> to vector<4x4x128xbf16>
    %81 = vector.extract_strided_slice %8 {offsets = [0, 71, 0], sizes = [4, 4, 128], strides = [1, 1, 1]} : vector<4x160x128xbf16> to vector<4x4x128xbf16>
    %82 = tpu.concatenate %76, %77, %78, %79, %80, %81 in 2 : vector<4x4x128xbf16>, vector<4x4x128xbf16>, vector<4x4x128xbf16>, vector<4x4x128xbf16>, vector<4x4x128xbf16>, vector<4x4x128xbf16> -> vector<4x4x768xbf16>
    %83 = tpu.concatenate %61, %68, %75, %82 in 1 : vector<4x4x768xbf16>, vector<4x4x768xbf16>, vector<4x4x768xbf16>, vector<4x4x768xbf16> -> vector<4x16x768xbf16>
    %84 = vector.shape_cast %83 : vector<4x16x768xbf16> to vector<64x768xbf16>
    %c1152 = arith.constant 1152 : index
    %c0_10 = arith.constant 0 : index
    %85 = vector.load %arg4[%c1152, %c0_10] : memref<3200x128xbf16, #tpu.memory_space<vmem>>, vector<768x128xbf16>
    %cst_11 = arith.constant dense<0.000000e+00> : vector<64x128xf32>
    %86 = tpu.matmul %84, %85, %cst_11 {dimension_numbers = #tpu.dot_dimension_numbers<[1], [0], [0], [1], [0, 0, 1, 1], [], []>} : vector<64x768xbf16>, vector<768x128xbf16>, vector<64x128xf32> -> vector<64x128xf32>
    %87 = arith.addf %54, %86 : vector<64x128xf32>
    %88 = vector.extract_strided_slice %8 {offsets = [0, 80, 0], sizes = [4, 4, 128], strides = [1, 1, 1]} : vector<4x160x128xbf16> to vector<4x4x128xbf16>
    %89 = vector.extract_strided_slice %8 {offsets = [0, 81, 0], sizes = [4, 4, 128], strides = [1, 1, 1]} : vector<4x160x128xbf16> to vector<4x4x128xbf16>
    %90 = vector.extract_strided_slice %8 {offsets = [0, 82, 0], sizes = [4, 4, 128], strides = [1, 1, 1]} : vector<4x160x128xbf16> to vector<4x4x128xbf16>
    %91 = vector.extract_strided_slice %8 {offsets = [0, 86, 0], sizes = [4, 4, 128], strides = [1, 1, 1]} : vector<4x160x128xbf16> to vector<4x4x128xbf16>
    %92 = vector.extract_strided_slice %8 {offsets = [0, 87, 0], sizes = [4, 4, 128], strides = [1, 1, 1]} : vector<4x160x128xbf16> to vector<4x4x128xbf16>
    %93 = vector.extract_strided_slice %8 {offsets = [0, 88, 0], sizes = [4, 4, 128], strides = [1, 1, 1]} : vector<4x160x128xbf16> to vector<4x4x128xbf16>
    %94 = tpu.concatenate %88, %89, %90, %91, %92, %93 in 2 : vector<4x4x128xbf16>, vector<4x4x128xbf16>, vector<4x4x128xbf16>, vector<4x4x128xbf16>, vector<4x4x128xbf16>, vector<4x4x128xbf16> -> vector<4x4x768xbf16>
    %95 = vector.extract_strided_slice %8 {offsets = [0, 86, 0], sizes = [4, 4, 128], strides = [1, 1, 1]} : vector<4x160x128xbf16> to vector<4x4x128xbf16>
    %96 = vector.extract_strided_slice %8 {offsets = [0, 87, 0], sizes = [4, 4, 128], strides = [1, 1, 1]} : vector<4x160x128xbf16> to vector<4x4x128xbf16>
    %97 = vector.extract_strided_slice %8 {offsets = [0, 88, 0], sizes = [4, 4, 128], strides = [1, 1, 1]} : vector<4x160x128xbf16> to vector<4x4x128xbf16>
    %98 = vector.extract_strided_slice %8 {offsets = [0, 92, 0], sizes = [4, 4, 128], strides = [1, 1, 1]} : vector<4x160x128xbf16> to vector<4x4x128xbf16>
    %99 = vector.extract_strided_slice %8 {offsets = [0, 93, 0], sizes = [4, 4, 128], strides = [1, 1, 1]} : vector<4x160x128xbf16> to vector<4x4x128xbf16>
    %100 = vector.extract_strided_slice %8 {offsets = [0, 94, 0], sizes = [4, 4, 128], strides = [1, 1, 1]} : vector<4x160x128xbf16> to vector<4x4x128xbf16>
    %101 = tpu.concatenate %95, %96, %97, %98, %99, %100 in 2 : vector<4x4x128xbf16>, vector<4x4x128xbf16>, vector<4x4x128xbf16>, vector<4x4x128xbf16>, vector<4x4x128xbf16>, vector<4x4x128xbf16> -> vector<4x4x768xbf16>
    %102 = vector.extract_strided_slice %8 {offsets = [0, 92, 0], sizes = [4, 4, 128], strides = [1, 1, 1]} : vector<4x160x128xbf16> to vector<4x4x128xbf16>
    %103 = vector.extract_strided_slice %8 {offsets = [0, 93, 0], sizes = [4, 4, 128], strides = [1, 1, 1]} : vector<4x160x128xbf16> to vector<4x4x128xbf16>
    %104 = vector.extract_strided_slice %8 {offsets = [0, 94, 0], sizes = [4, 4, 128], strides = [1, 1, 1]} : vector<4x160x128xbf16> to vector<4x4x128xbf16>
    %105 = vector.extract_strided_slice %8 {offsets = [0, 98, 0], sizes = [4, 4, 128], strides = [1, 1, 1]} : vector<4x160x128xbf16> to vector<4x4x128xbf16>
    %106 = vector.extract_strided_slice %8 {offsets = [0, 99, 0], sizes = [4, 4, 128], strides = [1, 1, 1]} : vector<4x160x128xbf16> to vector<4x4x128xbf16>
    %107 = vector.extract_strided_slice %8 {offsets = [0, 100, 0], sizes = [4, 4, 128], strides = [1, 1, 1]} : vector<4x160x128xbf16> to vector<4x4x128xbf16>
    %108 = tpu.concatenate %102, %103, %104, %105, %106, %107 in 2 : vector<4x4x128xbf16>, vector<4x4x128xbf16>, vector<4x4x128xbf16>, vector<4x4x128xbf16>, vector<4x4x128xbf16>, vector<4x4x128xbf16> -> vector<4x4x768xbf16>
    %109 = vector.extract_strided_slice %8 {offsets = [0, 98, 0], sizes = [4, 4, 128], strides = [1, 1, 1]} : vector<4x160x128xbf16> to vector<4x4x128xbf16>
    %110 = vector.extract_strided_slice %8 {offsets = [0, 99, 0], sizes = [4, 4, 128], strides = [1, 1, 1]} : vector<4x160x128xbf16> to vector<4x4x128xbf16>
    %111 = vector.extract_strided_slice %8 {offsets = [0, 100, 0], sizes = [4, 4, 128], strides = [1, 1, 1]} : vector<4x160x128xbf16> to vector<4x4x128xbf16>
    %112 = vector.extract_strided_slice %8 {offsets = [0, 104, 0], sizes = [4, 4, 128], strides = [1, 1, 1]} : vector<4x160x128xbf16> to vector<4x4x128xbf16>
    %113 = vector.extract_strided_slice %8 {offsets = [0, 105, 0], sizes = [4, 4, 128], strides = [1, 1, 1]} : vector<4x160x128xbf16> to vector<4x4x128xbf16>
    %114 = vector.extract_strided_slice %8 {offsets = [0, 106, 0], sizes = [4, 4, 128], strides = [1, 1, 1]} : vector<4x160x128xbf16> to vector<4x4x128xbf16>
    %115 = tpu.concatenate %109, %110, %111, %112, %113, %114 in 2 : vector<4x4x128xbf16>, vector<4x4x128xbf16>, vector<4x4x128xbf16>, vector<4x4x128xbf16>, vector<4x4x128xbf16>, vector<4x4x128xbf16> -> vector<4x4x768xbf16>
    %116 = tpu.concatenate %94, %101, %108, %115 in 1 : vector<4x4x768xbf16>, vector<4x4x768xbf16>, vector<4x4x768xbf16>, vector<4x4x768xbf16> -> vector<4x16x768xbf16>
    %117 = vector.shape_cast %116 : vector<4x16x768xbf16> to vector<64x768xbf16>
    %c1920 = arith.constant 1920 : index
    %c0_12 = arith.constant 0 : index
    %118 = vector.load %arg4[%c1920, %c0_12] : memref<3200x128xbf16, #tpu.memory_space<vmem>>, vector<768x128xbf16>
    %cst_13 = arith.constant dense<0.000000e+00> : vector<64x128xf32>
    %119 = tpu.matmul %117, %118, %cst_13 {dimension_numbers = #tpu.dot_dimension_numbers<[1], [0], [0], [1], [0, 0, 1, 1], [], []>} : vector<64x768xbf16>, vector<768x128xbf16>, vector<64x128xf32> -> vector<64x128xf32>
    %120 = arith.addf %87, %119 : vector<64x128xf32>
    %121 = vector.extract_strided_slice %8 {offsets = [0, 120, 0], sizes = [4, 4, 128], strides = [1, 1, 1]} : vector<4x160x128xbf16> to vector<4x4x128xbf16>
    %122 = vector.extract_strided_slice %8 {offsets = [0, 121, 0], sizes = [4, 4, 128], strides = [1, 1, 1]} : vector<4x160x128xbf16> to vector<4x4x128xbf16>
    %123 = vector.extract_strided_slice %8 {offsets = [0, 126, 0], sizes = [4, 4, 128], strides = [1, 1, 1]} : vector<4x160x128xbf16> to vector<4x4x128xbf16>
    %124 = vector.extract_strided_slice %8 {offsets = [0, 127, 0], sizes = [4, 4, 128], strides = [1, 1, 1]} : vector<4x160x128xbf16> to vector<4x4x128xbf16>
    %125 = tpu.concatenate %121, %122, %123, %124 in 2 : vector<4x4x128xbf16>, vector<4x4x128xbf16>, vector<4x4x128xbf16>, vector<4x4x128xbf16> -> vector<4x4x512xbf16>
    %126 = vector.extract_strided_slice %8 {offsets = [0, 126, 0], sizes = [4, 4, 128], strides = [1, 1, 1]} : vector<4x160x128xbf16> to vector<4x4x128xbf16>
    %127 = vector.extract_strided_slice %8 {offsets = [0, 127, 0], sizes = [4, 4, 128], strides = [1, 1, 1]} : vector<4x160x128xbf16> to vector<4x4x128xbf16>
    %128 = vector.extract_strided_slice %8 {offsets = [0, 132, 0], sizes = [4, 4, 128], strides = [1, 1, 1]} : vector<4x160x128xbf16> to vector<4x4x128xbf16>
    %129 = vector.extract_strided_slice %8 {offsets = [0, 133, 0], sizes = [4, 4, 128], strides = [1, 1, 1]} : vector<4x160x128xbf16> to vector<4x4x128xbf16>
    %130 = tpu.concatenate %126, %127, %128, %129 in 2 : vector<4x4x128xbf16>, vector<4x4x128xbf16>, vector<4x4x128xbf16>, vector<4x4x128xbf16> -> vector<4x4x512xbf16>
    %131 = vector.extract_strided_slice %8 {offsets = [0, 132, 0], sizes = [4, 4, 128], strides = [1, 1, 1]} : vector<4x160x128xbf16> to vector<4x4x128xbf16>
    %132 = vector.extract_strided_slice %8 {offsets = [0, 133, 0], sizes = [4, 4, 128], strides = [1, 1, 1]} : vector<4x160x128xbf16> to vector<4x4x128xbf16>
    %133 = vector.extract_strided_slice %8 {offsets = [0, 138, 0], sizes = [4, 4, 128], strides = [1, 1, 1]} : vector<4x160x128xbf16> to vector<4x4x128xbf16>
    %134 = vector.extract_strided_slice %8 {offsets = [0, 139, 0], sizes = [4, 4, 128], strides = [1, 1, 1]} : vector<4x160x128xbf16> to vector<4x4x128xbf16>
    %135 = tpu.concatenate %131, %132, %133, %134 in 2 : vector<4x4x128xbf16>, vector<4x4x128xbf16>, vector<4x4x128xbf16>, vector<4x4x128xbf16> -> vector<4x4x512xbf16>
    %136 = vector.extract_strided_slice %8 {offsets = [0, 138, 0], sizes = [4, 4, 128], strides = [1, 1, 1]} : vector<4x160x128xbf16> to vector<4x4x128xbf16>
    %137 = vector.extract_strided_slice %8 {offsets = [0, 139, 0], sizes = [4, 4, 128], strides = [1, 1, 1]} : vector<4x160x128xbf16> to vector<4x4x128xbf16>
    %138 = vector.extract_strided_slice %8 {offsets = [0, 144, 0], sizes = [4, 4, 128], strides = [1, 1, 1]} : vector<4x160x128xbf16> to vector<4x4x128xbf16>
    %139 = vector.extract_strided_slice %8 {offsets = [0, 145, 0], sizes = [4, 4, 128], strides = [1, 1, 1]} : vector<4x160x128xbf16> to vector<4x4x128xbf16>
    %140 = tpu.concatenate %136, %137, %138, %139 in 2 : vector<4x4x128xbf16>, vector<4x4x128xbf16>, vector<4x4x128xbf16>, vector<4x4x128xbf16> -> vector<4x4x512xbf16>
    %141 = tpu.concatenate %125, %130, %135, %140 in 1 : vector<4x4x512xbf16>, vector<4x4x512xbf16>, vector<4x4x512xbf16>, vector<4x4x512xbf16> -> vector<4x16x512xbf16>
    %142 = vector.shape_cast %141 : vector<4x16x512xbf16> to vector<64x512xbf16>
    %c2688 = arith.constant 2688 : index
    %c0_14 = arith.constant 0 : index
    %143 = vector.load %arg4[%c2688, %c0_14] : memref<3200x128xbf16, #tpu.memory_space<vmem>>, vector<512x128xbf16>
    %cst_15 = arith.constant dense<0.000000e+00> : vector<64x128xf32>
    %144 = tpu.matmul %142, %143, %cst_15 {dimension_numbers = #tpu.dot_dimension_numbers<[1], [0], [0], [1], [0, 0, 1, 1], [], []>} : vector<64x512xbf16>, vector<512x128xbf16>, vector<64x128xf32> -> vector<64x128xf32>
    %145 = arith.addf %120, %144 : vector<64x128xf32>
    %c0_16 = arith.constant 0 : index
    %c0_17 = arith.constant 0 : index
    %146 = vector.load %arg5[%c0_16, %c0_17] : memref<1x128xf32, #tpu.memory_space<vmem>>, vector<1x128xf32>
    %147 = vector.broadcast %146 : vector<1x128xf32> to vector<64x128xf32>
    %148 = arith.addf %145, %147 : vector<64x128xf32>
    %cst_18 = arith.constant 0.000000e+00 : f32
    %149 = vector.broadcast %cst_18 : f32 to vector<64x128xf32>
    %150 = arith.cmpf ogt, %148, %149 : vector<64x128xf32>
    %cst_19 = arith.constant 0.00999999977 : f32
    %151 = vector.broadcast %cst_19 : f32 to vector<64x128xf32>
    %152 = arith.mulf %151, %148 : vector<64x128xf32>
    %153 = arith.select %150, %148, %152 : vector<64x128xi1>, vector<64x128xf32>
    %154 = arith.truncf %153 : vector<64x128xf32> to vector<64x128xbf16>
    %155 = vector.shape_cast %154 : vector<64x128xbf16> to vector<4x16x128xbf16>
    %156 = vector.extract_strided_slice %155 {offsets = [0, 0, 0], sizes = [4, 1, 128], strides = [1, 1, 1]} : vector<4x16x128xbf16> to vector<4x1x128xbf16>
    %157 = vector.shape_cast %156 : vector<4x1x128xbf16> to vector<4x128xbf16>
    %158 = vector.extract_strided_slice %155 {offsets = [0, 1, 0], sizes = [4, 1, 128], strides = [1, 1, 1]} : vector<4x16x128xbf16> to vector<4x1x128xbf16>
    %159 = vector.shape_cast %158 : vector<4x1x128xbf16> to vector<4x128xbf16>
    %160 = vector.extract_strided_slice %155 {offsets = [0, 2, 0], sizes = [4, 1, 128], strides = [1, 1, 1]} : vector<4x16x128xbf16> to vector<4x1x128xbf16>
    %161 = vector.shape_cast %160 : vector<4x1x128xbf16> to vector<4x128xbf16>
    %162 = vector.extract_strided_slice %155 {offsets = [0, 3, 0], sizes = [4, 1, 128], strides = [1, 1, 1]} : vector<4x16x128xbf16> to vector<4x1x128xbf16>
    %163 = vector.shape_cast %162 : vector<4x1x128xbf16> to vector<4x128xbf16>
    %164 = vector.extract_strided_slice %155 {offsets = [0, 4, 0], sizes = [4, 1, 128], strides = [1, 1, 1]} : vector<4x16x128xbf16> to vector<4x1x128xbf16>
    %165 = vector.shape_cast %164 : vector<4x1x128xbf16> to vector<4x128xbf16>
    %166 = vector.extract_strided_slice %155 {offsets = [0, 5, 0], sizes = [4, 1, 128], strides = [1, 1, 1]} : vector<4x16x128xbf16> to vector<4x1x128xbf16>
    %167 = vector.shape_cast %166 : vector<4x1x128xbf16> to vector<4x128xbf16>
    %168 = vector.extract_strided_slice %155 {offsets = [0, 6, 0], sizes = [4, 1, 128], strides = [1, 1, 1]} : vector<4x16x128xbf16> to vector<4x1x128xbf16>
    %169 = vector.shape_cast %168 : vector<4x1x128xbf16> to vector<4x128xbf16>
    %170 = vector.extract_strided_slice %155 {offsets = [0, 7, 0], sizes = [4, 1, 128], strides = [1, 1, 1]} : vector<4x16x128xbf16> to vector<4x1x128xbf16>
    %171 = vector.shape_cast %170 : vector<4x1x128xbf16> to vector<4x128xbf16>
    %172 = vector.extract_strided_slice %155 {offsets = [0, 8, 0], sizes = [4, 1, 128], strides = [1, 1, 1]} : vector<4x16x128xbf16> to vector<4x1x128xbf16>
    %173 = vector.shape_cast %172 : vector<4x1x128xbf16> to vector<4x128xbf16>
    %174 = vector.extract_strided_slice %155 {offsets = [0, 9, 0], sizes = [4, 1, 128], strides = [1, 1, 1]} : vector<4x16x128xbf16> to vector<4x1x128xbf16>
    %175 = vector.shape_cast %174 : vector<4x1x128xbf16> to vector<4x128xbf16>
    %176 = vector.extract_strided_slice %155 {offsets = [0, 10, 0], sizes = [4, 1, 128], strides = [1, 1, 1]} : vector<4x16x128xbf16> to vector<4x1x128xbf16>
    %177 = vector.shape_cast %176 : vector<4x1x128xbf16> to vector<4x128xbf16>
    %178 = vector.extract_strided_slice %155 {offsets = [0, 11, 0], sizes = [4, 1, 128], strides = [1, 1, 1]} : vector<4x16x128xbf16> to vector<4x1x128xbf16>
    %179 = vector.shape_cast %178 : vector<4x1x128xbf16> to vector<4x128xbf16>
    %180 = vector.extract_strided_slice %155 {offsets = [0, 12, 0], sizes = [4, 1, 128], strides = [1, 1, 1]} : vector<4x16x128xbf16> to vector<4x1x128xbf16>
    %181 = vector.shape_cast %180 : vector<4x1x128xbf16> to vector<4x128xbf16>
    %182 = vector.extract_strided_slice %155 {offsets = [0, 13, 0], sizes = [4, 1, 128], strides = [1, 1, 1]} : vector<4x16x128xbf16> to vector<4x1x128xbf16>
    %183 = vector.shape_cast %182 : vector<4x1x128xbf16> to vector<4x128xbf16>
    %184 = vector.extract_strided_slice %155 {offsets = [0, 14, 0], sizes = [4, 1, 128], strides = [1, 1, 1]} : vector<4x16x128xbf16> to vector<4x1x128xbf16>
    %185 = vector.shape_cast %184 : vector<4x1x128xbf16> to vector<4x128xbf16>
    %186 = vector.extract_strided_slice %155 {offsets = [0, 15, 0], sizes = [4, 1, 128], strides = [1, 1, 1]} : vector<4x16x128xbf16> to vector<4x1x128xbf16>
    %187 = vector.shape_cast %186 : vector<4x1x128xbf16> to vector<4x128xbf16>
    %188 = tpu.concatenate %157, %159, %161, %163, %165, %167, %169, %171, %173, %175, %177, %179, %181, %183, %185, %187 in 1 : vector<4x128xbf16>, vector<4x128xbf16>, vector<4x128xbf16>, vector<4x128xbf16>, vector<4x128xbf16>, vector<4x128xbf16>, vector<4x128xbf16>, vector<4x128xbf16>, vector<4x128xbf16>, vector<4x128xbf16>, vector<4x128xbf16>, vector<4x128xbf16>, vector<4x128xbf16>, vector<4x128xbf16>, vector<4x128xbf16>, vector<4x128xbf16> -> vector<4x2048xbf16>
    %c0_20 = arith.constant 0 : index
    %c0_21 = arith.constant 0 : index
    %189 = vector.load %arg6[%c0_20, %c0_21] : memref<2048x128xbf16, #tpu.memory_space<vmem>>, vector<2048x128xbf16>
    %cst_22 = arith.constant dense<0.000000e+00> : vector<4x128xf32>
    %190 = tpu.matmul %188, %189, %cst_22 {dimension_numbers = #tpu.dot_dimension_numbers<[1], [0], [0], [1], [0, 0, 1, 1], [], []>} : vector<4x2048xbf16>, vector<2048x128xbf16>, vector<4x128xf32> -> vector<4x128xf32>
    %c0_23 = arith.constant 0 : index
    %c0_24 = arith.constant 0 : index
    %191 = vector.load %arg7[%c0_23, %c0_24] : memref<1x128xf32, #tpu.memory_space<vmem>>, vector<1x128xf32>
    %192 = vector.broadcast %191 : vector<1x128xf32> to vector<4x128xf32>
    %193 = arith.addf %190, %192 : vector<4x128xf32>
    %cst_25 = arith.constant 0.000000e+00 : f32
    %194 = vector.broadcast %cst_25 : f32 to vector<4x128xf32>
    %195 = arith.cmpf ogt, %193, %194 : vector<4x128xf32>
    %cst_26 = arith.constant 0.00999999977 : f32
    %196 = vector.broadcast %cst_26 : f32 to vector<4x128xf32>
    %197 = arith.mulf %196, %193 : vector<4x128xf32>
    %198 = arith.select %195, %193, %197 : vector<4x128xi1>, vector<4x128xf32>
    %c0_27 = arith.constant 0 : index
    %c0_28 = arith.constant 0 : index
    %199 = vector.load %arg8[%c0_27, %c0_28] : memref<1x128xf32, #tpu.memory_space<vmem>>, vector<1x128xf32>
    %200 = vector.broadcast %199 : vector<1x128xf32> to vector<4x128xf32>
    %201 = arith.mulf %198, %200 : vector<4x128xf32>
    %cst_29 = arith.constant dense<0.000000e+00> : vector<4xf32>
    %202 = vector.multi_reduction <add>, %201, %cst_29 [1] : vector<4x128xf32> to vector<4xf32>
    %203 = vector.shape_cast %202 : vector<4xf32> to vector<4x1xf32>
    %c0_30 = arith.constant 0 : index
    %c0_31 = arith.constant 0 : index
    %204 = vector.load %arg9[%c0_30, %c0_31] : memref<1x128xf32, #tpu.memory_space<vmem>>, vector<1x128xf32>
    %205 = vector.broadcast %203 : vector<4x1xf32> to vector<4x128xf32>
    %206 = vector.broadcast %204 : vector<1x128xf32> to vector<4x128xf32>
    %207 = arith.addf %205, %206 : vector<4x128xf32>
    %208 = math.absf %207 : vector<4x128xf32>
    %cst_32 = arith.constant 0.000000e+00 : f32
    %209 = vector.broadcast %cst_32 : f32 to vector<4x128xf32>
    %210 = arith.subf %209, %208 : vector<4x128xf32>
    %211 = math.exp %210 : vector<4x128xf32>
    %cst_33 = arith.constant 0.000000e+00 : f32
    %212 = vector.broadcast %cst_33 : f32 to vector<4x128xf32>
    %213 = arith.cmpf oge, %207, %212 : vector<4x128xf32>
    %cst_34 = arith.constant 1.000000e+00 : f32
    %214 = vector.broadcast %cst_34 : f32 to vector<4x128xf32>
    %215 = arith.addf %214, %211 : vector<4x128xf32>
    %cst_35 = arith.constant 1.000000e+00 : f32
    %216 = vector.broadcast %cst_35 : f32 to vector<4x128xf32>
    %217 = arith.divf %216, %215 : vector<4x128xf32>
    %cst_36 = arith.constant 1.000000e+00 : f32
    %218 = vector.broadcast %cst_36 : f32 to vector<4x128xf32>
    %219 = arith.addf %218, %211 : vector<4x128xf32>
    %220 = arith.divf %211, %219 : vector<4x128xf32>
    %221 = arith.select %213, %217, %220 : vector<4x128xi1>, vector<4x128xf32>
    %222 = vector.shape_cast %221 : vector<4x128xf32> to vector<1x4x128xf32>
    %c0_37 = arith.constant 0 : index
    %c0_38 = arith.constant 0 : index
    %c0_39 = arith.constant 0 : index
    %223 = vector.load %arg10[%c0_37, %c0_38, %c0_39] : memref<1x4x128xf32, #tpu.memory_space<vmem>>, vector<1x4x128xf32>
    tpu.vector_store %arg10[%c0_37, %c0_38, %c0_39], %222 {strides = array<i32>} : memref<1x4x128xf32, #tpu.memory_space<vmem>>, vector<1x4x128xf32>,
    return
  }
  func.func @transform_0(%arg0: i32) -> (i32, i32, i32) {
    %c0_i32 = arith.constant 0 : i32
    %c0_i32_0 = arith.constant 0 : i32
    %c0_i32_1 = arith.constant 0 : i32
    return %arg0, %c0_i32, %c0_i32_0 : i32, i32, i32
  }
  func.func @transform_1(%arg0: i32) -> (i32, i32) {
    %c0_i32 = arith.constant 0 : i32
    %c0_i32_0 = arith.constant 0 : i32
    %c0_i32_1 = arith.constant 0 : i32
    return %c0_i32, %c0_i32_0 : i32, i32
  }
  func.func @transform_2(%arg0: i32) -> (i32, i32) {
    %c0_i32 = arith.constant 0 : i32
    %c0_i32_0 = arith.constant 0 : i32
    %c0_i32_1 = arith.constant 0 : i32
    return %c0_i32, %c0_i32_0 : i32, i32
  }
  func.func @transform_3(%arg0: i32) -> (i32, i32) {
    %c0_i32 = arith.constant 0 : i32
    %c0_i32_0 = arith.constant 0 : i32
    %c0_i32_1 = arith.constant 0 : i32
    return %c0_i32, %c0_i32_0 : i32, i32
  }
  func.func @transform_4(%arg0: i32) -> (i32, i32) {
    %c0_i32 = arith.constant 0 : i32
    %c0_i32_0 = arith.constant 0 : i32
    %c0_i32_1 = arith.constant 0 : i32
    return %c0_i32, %c0_i32_0 : i32, i32
  }
  func.func @transform_5(%arg0: i32) -> (i32, i32) {
    %c0_i32 = arith.constant 0 : i32
    %c0_i32_0 = arith.constant 0 : i32
    %c0_i32_1 = arith.constant 0 : i32
    return %c0_i32, %c0_i32_0 : i32, i32
  }
  func.func @transform_6(%arg0: i32) -> (i32, i32) {
    %c0_i32 = arith.constant 0 : i32
    %c0_i32_0 = arith.constant 0 : i32
    %c0_i32_1 = arith.constant 0 : i32
    return %c0_i32, %c0_i32_0 : i32, i32
  }
  func.func @transform_7(%arg0: i32) -> (i32, i32) {
    %c0_i32 = arith.constant 0 : i32
    %c0_i32_0 = arith.constant 0 : i32
    %c0_i32_1 = arith.constant 0 : i32
    return %c0_i32, %c0_i32_0 : i32, i32
  }
  func.func @transform_8(%arg0: i32) -> (i32, i32) {
    %c0_i32 = arith.constant 0 : i32
    %c0_i32_0 = arith.constant 0 : i32
    %c0_i32_1 = arith.constant 0 : i32
    return %c0_i32, %c0_i32_0 : i32, i32
  }
  func.func @transform_9(%arg0: i32) -> (i32, i32, i32) {
    %c0_i32 = arith.constant 0 : i32
    %c0_i32_0 = arith.constant 0 : i32
    %c0_i32_1 = arith.constant 0 : i32
    return %arg0, %c0_i32, %c0_i32_0 : i32, i32, i32
  }
}

</mosaic_0001>

<bundles_post_ra>
// kernel: discriminator_forward.1
= control target key start
LH: loop header
LB: loop body
LE: loop exit
PB: predicated region body
PF: predicated region fallthrough
CT: control target
= control target key end

     0   :  { %s8773_s30 = smov 0   ;;  %s11722_s0 = inlined_call_operand.vmem [shape: bf16[8,160,36], index: 0, kind: input, shape index: {}]   ;;  %s11723_s1 = inlined_call_operand.vmem [shape: bf16[36,128], index: 1, kind: input, shape index: {}]   ;;  %s11724_s2 = inlined_call_operand.vmem [shape: f32[1,128], index: 2, kind: input, shape index: {}]   ;;  %s11725_s3 = inlined_call_operand.vmem [shape: bf16[3200,128], index: 3, kind: input, shape index: {}]   ;;  %s11726_s4 = inlined_call_operand.vmem [shape: f32[1,128], index: 4, kind: input, shape index: {}]   ;;  %s11727_s5 = inlined_call_operand.vmem [shape: bf16[2048,128], index: 5, kind: input, shape index: {}]   ;;  %s11728_s6 = inlined_call_operand.vmem [shape: f32[1,128], index: 6, kind: input, shape index: {}]   ;;  %s11729_s7 = inlined_call_operand.vmem [shape: f32[1,128], index: 7, kind: input, shape index: {}]   ;;  %s11730_s8 = inlined_call_operand.vmem [shape: f32[1,128], index: 8, kind: input, shape index: {}]   ;;  %s11731_s9 = inlined_call_operand.vmem [shape: f32[2,4,128], index: 9, kind: output, shape index: {}]  }
   0x1 LB: > { %s8779_s10 = sadd.s32 4294967295, %s8721_s30   ;;  %p7073_p0 = scmp.ge.s32.totalorder %s8721_s30, 1  ;;  %s8721_s30 = sphi %s8773_s30, %s19_s30  }
   0x2   : > { %p289_p1 = scmp.lt.s32.totalorder %s8721_s30, 3 }
   0x4   : > { %p290_p2 = pnand %p7073_p0, %p289_p1 }
   0x6   : > { %293 = sbr.rel (%p290_p2) target bundleno = 1378 (0x562), region = 56 }
   0xd   : > { %v8338_v0 = vld [vmem:[%s11723_s1] sm:$0xff]   ;;  %v8339_v1 = vld [vmem:[%s11723_s1 + $0x8] sm:$0xff]   ;;  %s7074_s15 = sshll.u32 %s8779_s10, 2  ;;  %v8340_v2 = vld [vmem:[%s11723_s1 + $0x10] ss:$0 sps:$4 sm:$0x33]  }
   0xe   : > { %8218 = vmatprep.subr.bf16.mxu0 %v8338_v0  ;;  %p326_p3 = scmp.lt.s32.totalorder %s7074_s15, 7  ;;  %vm765_vm0 = vcmask 1041408   ;;  %vm644_vm1 = vcmask 293888   ;;  %v8379_v15 = vld [vmem:[%s11725_s3 + $0x140] sm:$0xff]   ;;  %v8381_v17 = vld [vmem:[%s11725_s3 + $0x148] sm:$0xff]   ;;  %v8384_v23 = vld [vmem:[%s11725_s3 + $0x150] sm:$0xff]  }
   0xf   : > { %8219 = vmatpush3.bf16.msra.mxu0 %v8338_v0  ;;  %v767_v3 = vsel %vm765_vm0, %v8340_v2, 0  ;;  %v8380_v16 = vld [vmem:[%s11725_s3 + $0x100] sm:$0xff]   ;;  %v8382_v21 = vld [vmem:[%s11725_s3 + $0x108] sm:$0xff]   ;;  %v8386_v24 = vld [vmem:[%s11725_s3 + $0x110] sm:$0xff]   ;;  %vm1281_vm2 = vcmask 1043456   ;;  %vm1670_vm3 = vcmask 1045504  }
  0x10   : > { %8220 = vmatprep.subr.bf16.mxu0 %v8339_v1  ;;  %s11997_s15 = smov (!%p326_p3, %s7074_s15), 7  ;;  %v8383_v19 = vld [vmem:[%s11725_s3 + $0x280] sm:$0xff]   ;;  %v8387_v35 = vld [vmem:[%s11725_s3 + $0x288] sm:$0xff]   ;;  %v8388_v36 = vld [vmem:[%s11725_s3 + $0x158] sm:$0xff]   ;;  %vm1272_vm4 = vsmask.f32 4352 }
  0x11   : > { %s8329_s18 = smul.u32 80, %s11997_s15  ;;  %v8385_v22 = vld [vmem:[%s11725_s3 + $0x240] sm:$0xff]   ;;  %7550 = vmatprep.subr.bf16.mxu1 %v8383_v19  ;;  %v8389_v38 = vld [vmem:[%s11725_s3 + $0x248] sm:$0xff]   ;;  %v8390_v39 = vld [vmem:[%s11725_s3 + $0x118] sm:$0xff]   ;;  %vm1310_vm5 = vsmask.f32 7424 }
  0x12   : > { %7551 = vmatpush3.bf16.msra.mxu1 %v8385_v22  ;;  %v8391_v41 = vld [vmem:[%s11725_s3 + $0x290] sm:$0xff]   ;;  %v8392_v42 = vld [vmem:[%s11725_s3 + $0x160] sm:$0xff]   ;;  %v8395_v45 = vld [vmem:[%s11725_s3 + $0x298] sm:$0xff]   ;;  %vm2096_vm6 = vcmask 1042432   ;;  %vm1935_vm7 = vcmask 1044480   ;;  %vm1259_vm8 = vcmask 1040384  }
  0x13   : > { %8221 = vmatpush3.bf16.msra.mxu0 %v8339_v1  ;;  %s8798_s21 = scalar_lea.vmem %s11722_s0, %s8329_s18  ;;  %7552 = vmatprep.subr.bf16.mxu1 %v8387_v35  ;;  %v8393_v43 = vld [vmem:[%s11725_s3 + $0x250] sm:$0xff]   ;;  %v8394_v44 = vld [vmem:[%s11725_s3 + $0x120] sm:$0xff]   ;;  %v8396_v46 = vld [vmem:[%s11725_s3 + $0x168] sm:$0xff]   ;;  %vm1319_vm9 = vcmask 1046528   ;;  %vm1222_vm10 = vsmask.f32 1280 }
  0x14   : > { %8328 = vmatprep.subr.msk.bf16.mxu0 %vm765_vm0, %v8340_v2  ;;  %v8341_v4 = vld [vmem:[%s8798_s21] sm:$0xff]   ;;  %v8342_v5 = vld [vmem:[%s8798_s21 + $0x8] sm:$0xff]   ;;  %v8343_v6 = vld [vmem:[%s8798_s21 + $0x10] sm:$0xff]   ;;  %vm5490_vm15 = vcmask 1041409   ;;  %p332_p4 = scmp.lt.s32.totalorder %s8779_s10, 1 }
  0x15   : > { %8224 = vmatprep.mubr.msk.bf16.mxu0 %vm644_vm1, %v8341_v4  ;;  %v8344_v7 = vld [vmem:[%s8798_s21 + $0x18] sm:$0xff]   ;;  %v8345_v8 = vld [vmem:[%s8798_s21 + $0x20] sm:$0xff]   ;;  %v8346_v9 = vld [vmem:[%s8798_s21 + $0x28] sm:$0xff]  }
  0x16   : > { %v8347_v10 = vld [vmem:[%s8798_s21 + $0x30] sm:$0xff]   ;;  %v8348_v11 = vld [vmem:[%s8798_s21 + $0x38] sm:$0xff]   ;;  %v8349_v12 = vld [vmem:[%s8798_s21 + $0x40] sm:$0xff]   ;;  %7553 = vmatpush3.bf16.msra.mxu1 %v8389_v38  ;;  %s11999_s10 = smov (!%p332_p4, %s8779_s10), 1 }
  0x17   : > { %8223 = vmatpush3.bf16.msra.mxu0 %v767_v3  ;;  %v8350_v13 = vld [vmem:[%s8798_s21 + $0x48] sm:$0xff]   ;;  %v8351_v14 = vld [vmem:[%s8798_s21 + $0x50] sm:$0xff]   ;;  %v8352_v18 = vld [vmem:[%s8798_s21 + $0x58] sm:$0xff]   ;;  %7554 = vmatprep.subr.bf16.mxu1 %v8391_v41  ;;  %s7076_s11 = sshll.u32 %s11999_s10, 2 }
  0x18   : > { %v8353_v20 = vld [vmem:[%s8798_s21 + $0x60] sm:$0xff]   ;;  %7750 = vmatprep.subr.bf16.mxu0 %v8379_v15  ;;  %v8354_v25 = vld [vmem:[%s8798_s21 + $0x68] sm:$0xff]   ;;  %v8355_v26 = vld [vmem:[%s8798_s21 + $0x70] sm:$0xff]   ;;  %s335_s14 = scalar_lea.vmem %s11731_s9, %s7076_s11 }
  0x19   : > { %v8356_v27 = vld [vmem:[%s8798_s21 + $0x78] sm:$0xff]   ;;  %v8357_v28 = vld [vmem:[%s8798_s21 + $0x80] sm:$0xff]   ;;  %v8358_v29 = vld [vmem:[%s8798_s21 + $0x88] sm:$0xff]  }
  0x1a   : > { %8225 = vmatmul.mubr.msk.bf16.vlgmr.msra.gmra.mrb[0].mxu0 %vm644_vm1, %v8342_v5  ;;  %v8359_v30 = vld [vmem:[%s8798_s21 + $0x90] sm:$0xff]   ;;  %v8360_v31 = vld [vmem:[%s8798_s21 + $0x98] sm:$0xff]   ;;  %v8361_v32 = vld [vmem:[%s8798_s21 + $0xa0] sm:$0xff]   ;;  %7555 = vmatpush3.bf16.msra.mxu1 %v8393_v43 }
  0x1b   : > { %8228 = vmatprep.mubr.msk.bf16.mxu0 %vm644_vm1, %v8343_v6  ;;  %7751 = vmatpush3.bf16.msra.mxu0 %v8380_v16  ;;  %v8362_v33 = vld [vmem:[%s8798_s21 + $0xa8] sm:$0xff]   ;;  %v8363_v34 = vld [vmem:[%s8798_s21 + $0xb0] sm:$0xff]   ;;  %v8364_v37 = vld [vmem:[%s8798_s21 + $0xb8] sm:$0xff]  }
  0x1c   : > { %7752 = vmatprep.subr.bf16.mxu0 %v8381_v17  ;;  %v8365_v40 = vld [vmem:[%s8798_s21 + $0xc0] sm:$0xff]   ;;  %v8397_v47 = vld [vmem:[%s11725_s3 + $0x258] sm:$0xff]   ;;  %v8398_v48 = vld [vmem:[%s11725_s3 + $0x128] sm:$0xff]   ;;  %7556 = vmatprep.subr.bf16.mxu1 %v8395_v45 }
  0x1d   : > { %v8366_v49 = vld [vmem:[%s8798_s21 + $0xc8] sm:$0xff]   ;;  %v8367_v50 = vld [vmem:[%s8798_s21 + $0xd0] sm:$0xff]   ;;  %v8401_v51 = vld [vmem:[%s11725_s3 + $0x2a0] sm:$0xff]  }
  0x1e   : > { %7557 = vmatpush3.bf16.msra.mxu1 %v8397_v47  ;;  %v8402_v52 = vld [vmem:[%s11725_s3 + $0x170] sm:$0xff]   ;;  %v8403_v53 = vld [vmem:[%s11725_s3 + $0x260] sm:$0xff]   ;;  %v8405_v55 = vld [vmem:[%s11725_s3 + $0x2a8] sm:$0xff]  }
  0x1f   : > { %7753 = vmatpush3.bf16.msra.mxu0 %v8382_v21  ;;  %v8404_v54 = vld [vmem:[%s11725_s3 + $0x130] sm:$0xff]   ;;  %7558 = vmatprep.subr.bf16.mxu1 %v8401_v51  ;;  %v8406_v56 = vld [vmem:[%s11725_s3 + $0x178] sm:$0xff]   ;;  %v8407_v58 = vld [vmem:[%s11725_s3 + $0x268] sm:$0xff]  }
  0x20   : > { %7754 = vmatprep.subr.bf16.mxu0 %v8384_v23  ;;  %v8368_v57 = vld [vmem:[%s8798_s21 + $0xd8] sm:$0xff]   ;;  %v8369_v60 = vld [vmem:[%s8798_s21 + $0xe0] sm:$0xff]   ;;  %v8409_v61 = vld [vmem:[%s11725_s3 + $0x2b0] sm:$0xff]  }
  0x21   : > { %v8408_v59 = vld [vmem:[%s11725_s3 + $0x138] sm:$0xff]   ;;  %v8410_v62 = vld [vmem:[%s11725_s3 + $0x270] sm:$0xff]   ;;  %v8370_v63 = vld [vmem:[%s8798_s21 + $0xe8] sm:$0xff]  }
  0x22   : > { %8229 = vmatmul.mubr.msk.bf16.gmra.mrb[4].mxu0 %vm644_vm1, %v8344_v7  ;;  %7559 = vmatpush3.bf16.msra.mxu1 %v8403_v53  ;;  %v8411_v0 = vld [vmem:[%s11725_s3 + $0x2b8] sm:$0xff]   ;;  %v8371_v2 = vld [vmem:[%s8798_s21 + $0xf0] sm:$0xff]   ;;  %v8373_v4 = vld [vmem:[%s8798_s21 + $0x100] sm:$0xff]  }
  0x23   : > { %8232 = vmatprep.mubr.msk.bf16.mxu0 %vm644_vm1, %v8345_v8  ;;  %7755 = vmatpush3.bf16.msra.mxu0 %v8386_v24  ;;  %v8412_v1 = vld [vmem:[%s11725_s3 + $0x278] sm:$0xff]   ;;  %v8374_v5 = vld [vmem:[%s8798_s21 + $0x108] sm:$0xff]   ;;  %v8375_v6 = vld [vmem:[%s8798_s21 + $0x110] sm:$0xff]  }
  0x24   : > { %7756 = vmatprep.subr.bf16.mxu0 %v8388_v36  ;;  %7560 = vmatprep.subr.bf16.mxu1 %v8405_v55  ;;  %v8372_v3 = vld [vmem:[%s8798_s21 + $0xf8] sm:$0xff]   ;;  %v8377_v8 = vld [vmem:[%s8798_s21 + $0x120] sm:$0xff]  }
  0x25   : > { %v8376_v7 = vld [vmem:[%s8798_s21 + $0x118] sm:$0xff]  }
  0x26   : > { %7561 = vmatpush3.bf16.msra.mxu1 %v8407_v58 }
  0x27   : > { %7757 = vmatpush3.bf16.msra.mxu0 %v8390_v39  ;;  %7562 = vmatprep.subr.bf16.mxu1 %v8409_v61 }
  0x28   : > { %7758 = vmatprep.subr.bf16.mxu0 %v8392_v42 }
  0x2a   : > { %8233 = vmatmul.mubr.msk.bf16.gmra.mrb[8].mxu0 %vm644_vm1, %v8346_v9  ;;  %7563 = vmatpush3.bf16.msra.mxu1 %v8410_v62  ;;  %v8378_v9 = vld [vmem:[%s8798_s21 + $0x128] sm:$0xff]  }
  0x2b   : > { %8236 = vmatprep.mubr.msk.bf16.mxu0 %vm644_vm1, %v8347_v10  ;;  %7759 = vmatpush3.bf16.msra.mxu0 %v8394_v44  ;;  %v8399_v10 = vld [vmem:[%s8798_s21 + $0x130] sm:$0xff]  }
  0x2c   : > { %7760 = vmatprep.subr.bf16.mxu0 %v8396_v46  ;;  %7564 = vmatprep.subr.bf16.mxu1 %v8411_v0 }
  0x2e   : > { %7565 = vmatpush3.bf16.msra.mxu1 %v8412_v1 }
  0x2f   : > { %7761 = vmatpush3.bf16.msra.mxu0 %v8398_v48 }
  0x30   : > { %7762 = vmatprep.subr.bf16.mxu0 %v8402_v52 }
  0x32   : > { %8237 = vmatmul.mubr.msk.bf16.gmra.mrb[12].mxu0 %vm644_vm1, %v8348_v11  ;;  %v8400_v11 = vld [vmem:[%s8798_s21 + $0x138] sm:$0xff]  }
  0x33   : > { %8240 = vmatprep.mubr.msk.bf16.mxu0 %vm644_vm1, %v8349_v12  ;;  %7763 = vmatpush3.bf16.msra.mxu0 %v8404_v54  ;;  %v8979_v12 = vld [vmem:[%s11725_s3 + $0x200] sm:$0xff]  }
  0x34   : > { %7764 = vmatprep.subr.bf16.mxu0 %v8406_v56 }
  0x37   : > { %7765 = vmatpush3.bf16.msra.mxu0 %v8408_v59 }
  0x38   : > { %8304 = vmatprep.subr.bf16.mxu0 %v8979_v12 }
  0x3a   : > { %8241 = vmatmul.mubr.msk.bf16.gmra.mrb[16].mxu0 %vm644_vm1, %v8350_v13  ;;  %v8415_v13 = vld [vmem:[%s11725_s3 + $0x300] sm:$0xff]  }
  0x3b   : > { %8244 = vmatprep.mubr.msk.bf16.mxu0 %vm644_vm1, %v8351_v14  ;;  %v8988_v14 = vld [vmem:[%s11724_s2] ss:$0 sm:$0xff]  ;;  %7590 = vmatprep.subr.bf16.mxu1 %v8415_v13 }
  0x42   : > { %8245 = vmatmul.mubr.msk.bf16.gmra.mrb[20].mxu0 %vm644_vm1, %v8352_v18 }
  0x43   : > { %8248 = vmatprep.mubr.msk.bf16.mxu0 %vm644_vm1, %v8353_v20 }
  0x4a   : > { %8249 = vmatmul.mubr.msk.bf16.gmra.mrb[24].mxu0 %vm644_vm1, %v8354_v25 }
  0x4b   : > { %8252 = vmatprep.mubr.msk.bf16.mxu0 %vm644_vm1, %v8355_v26 }
  0x52   : > { %8253 = vmatmul.mubr.msk.bf16.gmra.mrb[28].mxu0 %vm644_vm1, %v8356_v27 }
  0x53   : > { %8256 = vmatprep.mubr.msk.bf16.mxu0 %vm644_vm1, %v8357_v28 }
  0x5a   : > { %8257 = vmatmul.mubr.msk.bf16.gmra.mrb[32].mxu0 %vm644_vm1, %v8358_v29 }
  0x5b   : > { %8260 = vmatprep.mubr.msk.bf16.mxu0 %vm644_vm1, %v8359_v30 }
  0x62   : > { %8261 = vmatmul.mubr.msk.bf16.gmra.mrb[36].mxu0 %vm644_vm1, %v8360_v31 }
  0x63   : > { %8264 = vmatprep.mubr.msk.bf16.mxu0 %vm644_vm1, %v8361_v32 }
  0x6a   : > { %8265 = vmatmul.mubr.msk.bf16.gmra.mrb[40].mxu0 %vm644_vm1, %v8362_v33 }
  0x6b   : > { %8268 = vmatprep.mubr.msk.bf16.mxu0 %vm644_vm1, %v8363_v34 }
  0x72   : > { %8269 = vmatmul.mubr.msk.bf16.gmra.mrb[44].mxu0 %vm644_vm1, %v8364_v37 }
  0x73   : > { %8272 = vmatprep.mubr.msk.bf16.mxu0 %vm644_vm1, %v8365_v40 }
  0x7a   : > { %8273 = vmatmul.mubr.msk.bf16.gmra.mrb[48].mxu0 %vm644_vm1, %v8366_v49 }
  0x7b   : > { %8276 = vmatprep.mubr.msk.bf16.mxu0 %vm644_vm1, %v8367_v50 }
  0x82   : > { %8277 = vmatmul.mubr.msk.bf16.gmra.mrb[52].mxu0 %vm644_vm1, %v8368_v57 }
  0x83   : > { %8280 = vmatprep.mubr.msk.bf16.mxu0 %vm644_vm1, %v8369_v60 }
  0x8a   : > { %8281 = vmatmul.mubr.msk.bf16.gmra.mrb[56].mxu0 %vm644_vm1, %v8370_v63 }
  0x8b   : > { %8284 = vmatprep.mubr.msk.bf16.mxu0 %vm644_vm1, %v8371_v2 }
  0x92   : > { %8285 = vmatmul.mubr.msk.bf16.gmra.mrb[60].mxu0 %vm644_vm1, %v8372_v3 }
  0x93   : > { %8288 = vmatprep.mubr.msk.bf16.mxu0 %vm644_vm1, %v8373_v4 }
  0x9a   : > { %8289 = vmatmul.mubr.msk.bf16.gmra.mrb[64].mxu0 %vm644_vm1, %v8374_v5 }
  0x9b   : > { %8292 = vmatprep.mubr.msk.bf16.mxu0 %vm644_vm1, %v8375_v6  ;;  %v8414_v6 = vld [vmem:[%s11725_s3 + $0x208] sm:$0xff]  }
  0xa2   : > { %8293 = vmatmul.mubr.msk.bf16.gmra.mrb[68].mxu0 %vm644_vm1, %v8376_v7 }
  0xa3   : > { %8296 = vmatprep.mubr.msk.bf16.mxu0 %vm644_vm1, %v8377_v8 }
  0xaa   : > { %8297 = vmatmul.mubr.msk.bf16.gmra.mrb[72].mxu0 %vm644_vm1, %v8378_v9 }
  0xab   : > { %8300 = vmatprep.mubr.msk.bf16.mxu0 %vm644_vm1, %v8399_v10 }
  0xb2   : > { %8301 = vmatmul.mubr.msk.bf16.gmra.mrb[76].mxu0 %vm644_vm1, %v8400_v11  ;;  %vm5493_vm1 = vcmask 1042434  }
  0xed   : > { %v8226_v15 = vpop.f32.mrb[0].mxu0 }
  0xee   : > { %v803_v16 = vpop.f32.mrb[1].mxu0  ;;  %v812_v18 = vadd.f32 %v8226_v15, %v8988_v14 }
  0xef   : > { %v8227_v17 = vpop.f32.mrb[2].mxu0  ;;  %v804_v21 = vadd.f32 %v8988_v14, %v803_v16 }
  0xf0   : > { %v815_v19 = vadd.f32 %v8227_v17, %v8988_v14  ;;  %v806_v20 = vpop.f32.mrb[3].mxu0 }
  0xf1   : > { %v807_v22 = vadd.f32 %v8988_v14, %v806_v20 }
  0xf2   : > { %v8994_v23 = vpack.c.bf16 %v815_v19, %v812_v18 }
  0xf3   : > { %v8996_v24 = vpack.c.bf16 %v807_v22, %v804_v21 }
  0xf4   : > { %11834 = vst [vmem:[#allocation2_spill] sm:$0xff] %v8994_v23  ;;  %v1282_v25 = vrot.slane %v8994_v23, 4  ;;  %v9000_v26 = vshll.u32 %v8994_v23, 16  ;;  %v9003_v27 = vshrl.u32 %v8994_v23, 16 }
  0xf5   : > { %11835 = vst [vmem:[#allocation3_spill] sm:$0xff] %v8996_v24  ;;  %v8230_v28 = vpop.f32.mrb[4].mxu0  ;;  %v1214_v29 = vrot.slane %v8996_v24, 4  ;;  %v9007_v30 = vshrl.u32 %v8996_v24, 16  ;;  %v9010_v31 = vshll.u32 %v8996_v24, 16 }
  0xf6   : > { %11836 = vst [vmem:[#allocation4_spill] sm:$0xff] %v9003_v27  ;;  %v819_v32 = vpop.f32.mrb[5].mxu0  ;;  %v1273_v33 = vrot.slane %v9000_v26, 4  ;;  %v828_v34 = vadd.f32 %v8230_v28, %v8988_v14  ;;  %v1434_v42 = vrot.slane %v1282_v25, 2  ;;  %v1332_v43 = vrot.slane %v9003_v27, 3 }
  0xf7   : > { %v8231_v35 = vpop.f32.mrb[6].mxu0  ;;  %v1283_v36 = vsel %vm1281_vm2, %v1214_v29, %v1282_v25  ;;  %v1202_v37 = vrot.slane %v9007_v30, 3  ;;  %v1203_v38 = vrot.slane %v9010_v31, 4  ;;  %v820_v44 = vadd.f32 %v8988_v14, %v819_v32 }
  0xf8   : > { %v831_v39 = vadd.f32 %v8231_v35, %v8988_v14  ;;  %v822_v40 = vpop.f32.mrb[7].mxu0  ;;  %v1401_v41 = vrot.slane %v1283_v36, 1  ;;  %v1469_v46 = vrot.slane %v1282_v25, 3  ;;  %v1333_v50 = vor.u32 %v1332_v43, %v1273_v33 }
  0xf9   : > { %v823_v45 = vadd.f32 %v8988_v14, %v822_v40  ;;  %v1204_v47 = vor.u32 %v1203_v38, %v1202_v37  ;;  %v8417_v38 = vld [vmem:[%s11725_s3 + $0x2c0] sm:$0xff]  }
  0xfa   : > { %v9021_v48 = vpack.c.bf16 %v831_v39, %v828_v34  ;;  %v1512_v49 = vsel %vm765_vm0, %v1214_v29, %v1401_v41  ;;  %v1433_v57 = vrot.slane %v1333_v50, 2  ;;  %v1468_v62 = vrot.slane %v1333_v50, 3  ;;  %v8416_v29 = vld [vmem:[%s11725_s3 + $0x210] sm:$0xff]  }
  0xfb   : > { %v9024_v51 = vpack.c.bf16 %v823_v45, %v820_v44  ;;  %v1609_v52 = vsel %vm1281_vm2, %v1512_v49, %v1434_v42  ;;  %v1274_v53 = vsel %vm1272_vm4, %v1204_v47, %v1273_v33  ;;  %v8418_v44 = vld [vmem:[%s11725_s3 + $0x308] sm:$0xff]  }
  0xfc   : > { %v1687_v54 = vsel %vm1670_vm3, %v1609_v52, %v1469_v46  ;;  %v1400_v55 = vrot.slane %v1274_v53, 1  ;;  %v9034_v60 = vshll.u32 %v9021_v48, 16  ;;  %v9038_v0 = vshrl.u32 %v9021_v48, 16  ;;  %v8419_v52 = vld [vmem:[%s11725_s3 + $0x218] sm:$0xff]  }
  0xfd   : > { %11837 = vst [vmem:[#allocation5_spill] sm:$0xff] %v9024_v51  ;;  %v8234_v56 = vpop.f32.mrb[8].mxu0  ;;  %3562 = vmatprep.mubr.bf16.mxu0 %v1687_v54  ;;  %v9030_v58 = vshrl.u32 %v9024_v51, 16  ;;  %v11733_v59 = vshll.u32 %v9024_v51, 16  ;;  %v2097_v11 = vrot.slane %v9024_v51, 5  ;;  %v2072_v20 = vrot.slane %v9024_v51, 4 }
  0xfe   : > { %v835_v61 = vpop.f32.mrb[9].mxu0  ;;  %v1509_v63 = vsel %vm765_vm0, %v1204_v47, %v1400_v55  ;;  %v844_v1 = vadd.f32 %v8234_v56, %v8988_v14  ;;  %v2004_v5 = vrot.slane %v9034_v60, 1  ;;  %v2098_v21 = vrot.slane %v9021_v48, 5 }
  0xff   : > { %11838 = vst [vmem:[#allocation6_spill] sm:$0xff] %v9030_v58  ;;  %v8235_v2 = vpop.f32.mrb[10].mxu0  ;;  %v1607_v3 = vsel %vm1281_vm2, %v1509_v63, %v1433_v57  ;;  %v1923_v4 = vrot.slane %v11733_v59, 1  ;;  %v836_v7 = vadd.f32 %v8988_v14, %v835_v61  ;;  %v9068_v32 = vrot.slane %v9021_v48, 6 }
 0x100   : > { %v847_v8 = vadd.f32 %v8235_v2, %v8988_v14  ;;  %v838_v9 = vpop.f32.mrb[11].mxu0  ;;  %v1684_v10 = vsel %vm1670_vm3, %v1607_v3, %v1468_v62  ;;  %v2005_v16 = vsel %vm1310_vm5, %v9030_v58, %v2004_v5  ;;  %v2006_v17 = vor.u32 %v2004_v5, %v9038_v0 }
 0x101   : > { %v839_v13 = vadd.f32 %v8988_v14, %v838_v9  ;;  %3563 = vmatmul.mubr.bf16.vlgmr.msra.gmra.mrb[80].mxu0 %v1684_v10  ;;  %v1924_v15 = vor.u32 %v1923_v4, %v9030_v58  ;;  %v2100_v19 = vrot.slane %v2005_v16, 5  ;;  %v2099_v33 = vsel %vm2096_vm6, %v2097_v11, %v2098_v21  ;;  %v8421_v10 = vld [vmem:[%s11725_s3 + $0x310] sm:$0xff]  }
 0x102   : > { %v9057_v18 = vpack.c.bf16 %v847_v8, %v844_v1  ;;  %8305 = vmatpush3.bf16.msra.mxu0 %v8979_v12  ;;  %v2101_v28 = vrot.slane %v2006_v17, 5  ;;  %v2153_v36 = vrot.slane %v2006_v17, 6  ;;  %v2174_v37 = vrot.slane %v2006_v17, 7  ;;  %v8422_v8 = vld [vmem:[%s11725_s3 + $0x220] sm:$0xff]  }
 0x103   : > { %v9062_v22 = vpack.c.bf16 %v839_v13, %v836_v7  ;;  %v2073_v25 = vrot.slane %v1924_v15, 4  ;;  %8306 = vmatprep.subr.bf16.mxu0 %v8414_v6  ;;  %v2173_v42 = vrot.slane %v9021_v48, 7  ;;  %v2199_v43 = vsel %vm765_vm0, %v2072_v20, %v2099_v33  ;;  %v8420_v7 = vld [vmem:[%s11725_s3 + $0x2c8] sm:$0xff]  }
 0x104   : > { %v2102_v12 = vsel %vm2096_vm6, %v2100_v19, %v2101_v28  ;;  %v2270_v50 = vsel %vm1281_vm2, %v2199_v43, %v9068_v32  ;;  %v1948_v57 = vrot.slane %v9030_v58, 3  ;;  %v1952_v62 = vrot.slane %v9038_v0, 3  ;;  %v8423_v28 = vld [vmem:[%s11725_s3 + $0x2d0] sm:$0xff]  }
 0x105   : > { %v2025_v34 = vshrl.u32 %v9062_v22, 16  ;;  %v8238_v35 = vpop.f32.mrb[12].mxu0  ;;  %v2028_v39 = vshll.u32 %v9062_v22, 16  ;;  %v2202_v41 = vsel %vm765_vm0, %v2073_v25, %v2102_v12  ;;  %v2318_v56 = vsel %vm1670_vm3, %v2270_v50, %v2173_v42 }
 0x106   : > { %v851_v40 = vpop.f32.mrb[13].mxu0  ;;  %8307 = vmatpush3.bf16.msra.mxu0 %v8414_v6  ;;  %v860_v45 = vadd.f32 %v8238_v35, %v8988_v14  ;;  %v2272_v49 = vsel %vm1281_vm2, %v2202_v41, %v2153_v36  ;;  %v1955_v63 = vrot.slane %v9034_v60, 4  ;;  %v1936_v4 = vrot.slane %v9024_v51, 3 }
 0x107   : > { %v852_v46 = vadd.f32 %v8988_v14, %v851_v40  ;;  %v8239_v47 = vpop.f32.mrb[14].mxu0  ;;  %8308 = vmatprep.subr.bf16.mxu0 %v8416_v29  ;;  %v2321_v55 = vsel %vm1670_vm3, %v2272_v49, %v2174_v37  ;;  %v2060_v1 = vrot.slane %v2025_v34, 3  ;;  %v2061_v3 = vrot.slane %v2028_v39, 4  ;;  %v8424_v40 = vld [vmem:[%s11725_s3 + $0x318] sm:$0xff]  }
 0x108   : > { %v863_v53 = vadd.f32 %v8239_v47, %v8988_v14  ;;  %v854_v54 = vpop.f32.mrb[15].mxu0  ;;  %2805 = vmatprep.mubr.bf16.mxu1 %v2321_v55  ;;  %v1937_v5 = vrot.slane %v9021_v48, 3  ;;  %v1956_v9 = vor.u32 %v1955_v63, %v1952_v62  ;;  %v7165_v12 = vrot.slane %v9062_v22, 10 }
 0x109   : > { %v855_v61 = vadd.f32 %v8988_v14, %v854_v54  ;;  %2806 = vmatmul.mubr.bf16.vlgmr.msra.gmra.mrb[0].mxu1 %v2318_v56  ;;  %v2062_v11 = vor.u32 %v2061_v3, %v2060_v1  ;;  %v8428_v54 = vld [vmem:[%s11725_s3 + $0x230] sm:$0xff]   ;;  %v8427_v56 = vld [vmem:[%s11725_s3 + $0x320] sm:$0xff]   ;;  %v2076_v62 = vrot.slane %v9068_v32, 4  ;;  %v2107_v63 = vrot.slane %v9068_v32, 5 }
 0x10a   : > { %v9100_v2 = vpack.c.bf16 %v863_v53, %v860_v45  ;;  %8309 = vmatpush3.bf16.msra.mxu0 %v8416_v29  ;;  %7591 = vmatpush3.bf16.msra.mxu1 %v8417_v38  ;;  %v1957_v13 = vsel %vm1272_vm4, %v1948_v57, %v1956_v9  ;;  %v2105_v15 = vrot.slane %v1956_v9, 5  ;;  %v1938_v16 = vsel %vm1935_vm7, %v1936_v4, %v1937_v5  ;;  %v8425_v29 = vld [vmem:[%s11725_s3 + $0x228] sm:$0xff]   ;;  %v8426_v53 = vld [vmem:[%s11725_s3 + $0x2d8] sm:$0xff]   ;;  %v8429_v4 = vld [vmem:[%s11725_s3 + $0x2e0] sm:$0xff]  }
 0x10b   : > { %v9106_v6 = vpack.c.bf16 %v855_v61, %v852_v46  ;;  %8310 = vmatprep.subr.bf16.mxu0 %v8419_v52  ;;  %7592 = vmatprep.subr.bf16.mxu1 %v8418_v44  ;;  %v2075_v19 = vrot.slane %v1957_v13, 4  ;;  %v2176_v20 = vrot.slane %v2062_v11, 7  ;;  %v2074_v21 = vrot.slane %v1938_v16, 4  ;;  %v8430_v11 = vld [vmem:[%s11725_s3 + $0x328] sm:$0xff]  }
 0x10c   : > { %11839 = vst [vmem:[#allocation7_spill] sm:$0xff] %v9100_v2  ;;  %v2155_v33 = vrot.slane %v1956_v9, 6  ;;  %v2103_v35 = vrot.slane %v1937_v5, 5  ;;  %v2154_v42 = vrot.slane %v1937_v5, 6  ;;  %v2020_v57 = vrot.slane %v9062_v22, 6  ;;  %v8431_v5 = vld [vmem:[%s11725_s3 + $0x238] sm:$0xff]  }
 0x10d   : > { %v8242_v48 = vpop.f32.mrb[16].mxu0  ;;  %v2208_v41 = vsel %vm765_vm0, %v2075_v19, %v2105_v15  ;;  %v2211_v16 = vsel %vm765_vm0, %v2076_v62, %v2107_v63  ;;  %v8432_v19 = vld [vmem:[%s11725_s3 + $0x2e8] sm:$0xff]  }
 0x10e   : > { %v867_v17 = vpop.f32.mrb[17].mxu0  ;;  %8311 = vmatpush3.bf16.msra.mxu0 %v8419_v52  ;;  %7593 = vmatpush3.bf16.msra.mxu1 %v8420_v7  ;;  %v876_v36 = vadd.f32 %v8242_v48, %v8988_v14  ;;  %v2276_v45 = vsel %vm1281_vm2, %v2208_v41, %v2155_v33  ;;  %v2205_v46 = vsel %vm765_vm0, %v2074_v21, %v2103_v35  ;;  %v1992_v7 = vrot.slane %v9038_v0, 6  ;;  %v8433_v33 = vld [vmem:[%s11725_s3 + $0x330] sm:$0xff]  }
 0x10f   : > { %v8243_v25 = vpop.f32.mrb[18].mxu0  ;;  %8312 = vmatprep.subr.bf16.mxu0 %v8422_v8  ;;  %7594 = vmatprep.subr.bf16.mxu1 %v8421_v10  ;;  %v868_v43 = vadd.f32 %v8988_v14, %v867_v17  ;;  %v9139_v49 = vsel %vm1670_vm3, %v2276_v45, %v2176_v20  ;;  %v2274_v50 = vsel %vm1281_vm2, %v2205_v46, %v2154_v42  ;;  %v2156_v0 = vrot.slane %v2020_v57, 6  ;;  %v8434_v20 = vld [vmem:[%s11725_s3 + $0x480] sm:$0xff]   ;;  %v8435_v45 = vld [vmem:[%s11725_s3 + $0x2f0] sm:$0xff]  }
 0x110   : > { %v879_v37 = vadd.f32 %v8243_v25, %v8988_v14  ;;  %v870_v38 = vpop.f32.mrb[19].mxu0  ;;  %v9151_v55 = vsel %vm1670_vm3, %v2274_v50, %v7165_v12 }
 0x111   : > { %v871_v44 = vadd.f32 %v8988_v14, %v870_v38  ;;  %v9190_v21 = vsel %vm1281_vm2, %v2211_v16, %v2156_v0  ;;  %v8441_v16 = vld [vmem:[%s11725_s3 + $0x380] sm:$0xff]  }
 0x112   : > { %v9136_v47 = vpack.c.bf16 %v879_v37, %v876_v36  ;;  %8313 = vmatpush3.bf16.msra.mxu0 %v8422_v8  ;;  %7595 = vmatpush3.bf16.msra.mxu1 %v8423_v28  ;;  %v1993_v8 = vrot.slane %v9034_v60, 7 }
 0x113   : > { %v9142_v52 = vpack.c.bf16 %v871_v44, %v868_v43  ;;  %8314 = vmatprep.subr.bf16.mxu0 %v8425_v29  ;;  %7596 = vmatprep.subr.bf16.mxu1 %v8424_v40 }
 0x114   : > { %11840 = vst [vmem:[#allocation8_spill] sm:$0xff] %v9136_v47  ;;  %v9174_v15 = vor.u32 %v1993_v8, %v1992_v7 }
 0x115   : > { %v8246_v61 = vpop.f32.mrb[20].mxu0 }
 0x116   : > { %v883_v1 = vpop.f32.mrb[21].mxu0  ;;  %8315 = vmatpush3.bf16.msra.mxu0 %v8425_v29  ;;  %7597 = vmatpush3.bf16.msra.mxu1 %v8426_v53  ;;  %v892_v9 = vadd.f32 %v8246_v61, %v8988_v14  ;;  %v8437_v61 = vld [vmem:[%s11725_s3 + $0x338] sm:$0xff]  }
 0x117   : > { %v8247_v3 = vpop.f32.mrb[22].mxu0  ;;  %8316 = vmatprep.subr.bf16.mxu0 %v8428_v54  ;;  %7598 = vmatprep.subr.bf16.mxu1 %v8427_v56  ;;  %v884_v48 = vadd.f32 %v8988_v14, %v883_v1 }
 0x118   : > { %v895_v32 = vadd.f32 %v8247_v3, %v8988_v14  ;;  %v886_v10 = vpop.f32.mrb[23].mxu0 }
 0x119   : > { %v887_v13 = vadd.f32 %v8988_v14, %v886_v10 }
 0x11a   : > { %v9178_v60 = vpack.c.bf16 %v895_v32, %v892_v9  ;;  %8317 = vmatpush3.bf16.msra.mxu0 %v8428_v54  ;;  %7599 = vmatpush3.bf16.msra.mxu1 %v8429_v4 }
 0x11b   : > { %v9181_v17 = vpack.c.bf16 %v887_v13, %v884_v48  ;;  %8318 = vmatprep.subr.bf16.mxu0 %v8431_v5  ;;  %7600 = vmatprep.subr.bf16.mxu1 %v8430_v11  ;;  %v8439_v11 = vld [vmem:[%s11725_s3 + $0x2f8] sm:$0xff]  }
 0x11c   : > { %11841 = vst [vmem:[#allocation9_spill] sm:$0xff] %v9178_v60  ;;  %v1284_v25 = vrot.slane %v9178_v60, 4  ;;  %v9194_v28 = vshll.u32 %v9178_v60, 16  ;;  %v9197_v29 = vshrl.u32 %v9178_v60, 16 }
 0x11d   : > { %11842 = vst [vmem:[#allocation10_spill] sm:$0xff] %v9181_v17  ;;  %v8250_v35 = vpop.f32.mrb[24].mxu0  ;;  %v1215_v12 = vrot.slane %v9181_v17, 4  ;;  %v9204_v36 = vshrl.u32 %v9181_v17, 16  ;;  %v9207_v37 = vshll.u32 %v9181_v17, 16 }
 0x11e   : > { %11843 = vst [vmem:[#allocation11_spill] sm:$0xff] %v9194_v28  ;;  %11844 = vst [vmem:[#allocation12_spill] sm:$0xff] %v9197_v29  ;;  %v899_v38 = vpop.f32.mrb[25].mxu0  ;;  %v1275_v40 = vrot.slane %v9194_v28, 4  ;;  %8319 = vmatpush3.bf16.msra.mxu0 %v8431_v5  ;;  %7601 = vmatpush3.bf16.msra.mxu1 %v8432_v19  ;;  %v908_v46 = vadd.f32 %v8250_v35, %v8988_v14  ;;  %v1334_v56 = vrot.slane %v9197_v29, 3  ;;  %v1443_v1 = vrot.slane %v1284_v25, 2 }
 0x11f   : > { %11845 = vst [vmem:[#allocation13_spill] sm:$0xff] %v9204_v36  ;;  %11846 = vst [vmem:[#allocation14_spill] sm:$0xff] %v9207_v37  ;;  %v8251_v41 = vpop.f32.mrb[26].mxu0  ;;  %v1285_v42 = vsel %vm1281_vm2, %v1215_v12, %v1284_v25  ;;  %v1205_v43 = vrot.slane %v9204_v36, 3  ;;  %v1206_v44 = vrot.slane %v9207_v37, 4  ;;  %7882 = vmatprep.subr.bf16.mxu0 %v8434_v20  ;;  %7602 = vmatprep.subr.bf16.mxu1 %v8433_v33  ;;  %v1477_v5 = vrot.slane %v1284_v25, 3 }
 0x120   : > { %v911_v50 = vadd.f32 %v8251_v41, %v8988_v14  ;;  %v902_v53 = vpop.f32.mrb[27].mxu0  ;;  %v1409_v54 = vrot.slane %v1285_v42, 1  ;;  %v900_v62 = vadd.f32 %v8988_v14, %v899_v38  ;;  %v1335_v8 = vor.u32 %v1334_v56, %v1275_v40 }
 0x121   : > { %v903_v63 = vadd.f32 %v8988_v14, %v902_v53  ;;  %v1207_v3 = vor.u32 %v1206_v44, %v1205_v43 }
 0x122   : > { %v9224_v4 = vpack.c.bf16 %v911_v50, %v908_v46  ;;  %v1537_v7 = vsel %vm765_vm0, %v1215_v12, %v1409_v54  ;;  %7603 = vmatpush3.bf16.msra.mxu1 %v8435_v45  ;;  %v1442_v0 = vrot.slane %v1335_v8, 2  ;;  %v1476_v20 = vrot.slane %v1335_v8, 3 }
 0x123   : > { %v9227_v9 = vpack.c.bf16 %v903_v63, %v900_v62  ;;  %v1627_v32 = vsel %vm1281_vm2, %v1537_v7, %v1443_v1  ;;  %v1276_v10 = vsel %vm1272_vm4, %v1207_v3, %v1275_v40  ;;  %7604 = vmatprep.subr.bf16.mxu1 %v8437_v61 }
 0x124   : > { %v1714_v48 = vsel %vm1670_vm3, %v1627_v32, %v1477_v5  ;;  %v1408_v13 = vrot.slane %v1276_v10, 1  ;;  %v9243_v35 = vshll.u32 %v9224_v4, 16  ;;  %v9248_v41 = vshrl.u32 %v9224_v4, 16 }
 0x125   : > { %11847 = vst [vmem:[#allocation15_spill] sm:$0xff] %v9227_v9  ;;  %v8254_v19 = vpop.f32.mrb[28].mxu0  ;;  %3570 = vmatprep.mubr.bf16.mxu0 %v1714_v48  ;;  %v9239_v25 = vshrl.u32 %v9227_v9, 16  ;;  %v11732_v33 = vshll.u32 %v9227_v9, 16  ;;  %v2078_v42 = vrot.slane %v9227_v9, 4  ;;  %v2111_v61 = vrot.slane %v9227_v9, 5 }
 0x126   : > { %v924_v12 = vadd.f32 %v8254_v19, %v8988_v14  ;;  %v915_v38 = vpop.f32.mrb[29].mxu0  ;;  %v1534_v40 = vsel %vm765_vm0, %v1207_v3, %v1408_v13  ;;  %v2007_v50 = vrot.slane %v9243_v35, 1  ;;  %7605 = vmatpush3.bf16.msra.mxu1 %v8439_v11  ;;  %v2112_v62 = vrot.slane %v9224_v4, 5 }
 0x127   : > { %11848 = vst [vmem:[#allocation16_spill] sm:$0xff] %v9239_v25  ;;  %v916_v43 = vadd.f32 %v8988_v14, %v915_v38  ;;  %v8255_v44 = vpop.f32.mrb[30].mxu0  ;;  %v1625_v45 = vsel %vm1281_vm2, %v1534_v40, %v1442_v0  ;;  %v1925_v46 = vrot.slane %v11732_v33, 1  ;;  %7630 = vmatprep.subr.bf16.mxu1 %v8441_v16  ;;  %v2027_v10 = vrot.slane %v2025_v34, 6 }
 0x128   : > { %v927_v53 = vadd.f32 %v8255_v44, %v8988_v14  ;;  %v918_v54 = vpop.f32.mrb[31].mxu0  ;;  %v1711_v56 = vsel %vm1670_vm3, %v1625_v45, %v1476_v20  ;;  %v2008_v3 = vsel %vm1310_vm5, %v9239_v25, %v2007_v50  ;;  %v2009_v5 = vor.u32 %v2007_v50, %v9248_v41 }
 0x129   : > { %v919_v63 = vadd.f32 %v8988_v14, %v918_v54  ;;  %3571 = vmatmul.mubr.bf16.gmra.mrb[84].mxu0 %v1711_v56  ;;  %v1926_v1 = vor.u32 %v1925_v46, %v9239_v25  ;;  %v2114_v8 = vrot.slane %v2008_v3, 5  ;;  %v2113_v32 = vsel %vm2096_vm6, %v2111_v61, %v2112_v62 }
 0x12a   : > { %v9265_v7 = vpack.c.bf16 %v927_v53, %v924_v12  ;;  %v2115_v13 = vrot.slane %v2009_v5, 5  ;;  %v9273_v0 = vrot.slane %v9224_v4, 6  ;;  %v2158_v16 = vrot.slane %v2009_v5, 6 }
 0x12b   : > { %v9270_v11 = vpack.c.bf16 %v919_v63, %v916_v43  ;;  %v2079_v48 = vrot.slane %v1926_v1, 4  ;;  %v2179_v19 = vrot.slane %v9224_v4, 7  ;;  %v2217_v20 = vsel %vm765_vm0, %v2078_v42, %v2113_v32 }
 0x12c   : > { %11849 = vst [vmem:[#allocation17_spill] sm:$0xff] %v9265_v7  ;;  %v2030_v12 = vrot.slane %v2028_v39, 7  ;;  %v2116_v43 = vsel %vm2096_vm6, %v2114_v8, %v2115_v13  ;;  %v2282_v44 = vsel %vm1281_vm2, %v2217_v20, %v9273_v0  ;;  %v2180_v50 = vrot.slane %v2009_v5, 7 }
 0x12d   : > { %v11736_v38 = vshrl.u32 %v9270_v11, 16  ;;  %v11734_v40 = vshll.u32 %v9270_v11, 16  ;;  %v8258_v34 = vpop.f32.mrb[32].mxu0  ;;  %v2220_v53 = vsel %vm765_vm0, %v2079_v48, %v2116_v43  ;;  %v2336_v42 = vsel %vm1670_vm3, %v2282_v44, %v2179_v19 }
 0x12e   : > { %v940_v45 = vadd.f32 %v8258_v34, %v8988_v14  ;;  %v931_v46 = vpop.f32.mrb[33].mxu0  ;;  %v2284_v56 = vsel %vm1281_vm2, %v2220_v53, %v2158_v16  ;;  %v1958_v61 = vrot.slane %v9239_v25, 3  ;;  %v1962_v62 = vrot.slane %v9248_v41, 3 }
 0x12f   : > { %v932_v39 = vadd.f32 %v8988_v14, %v931_v46  ;;  %v8259_v54 = vpop.f32.mrb[34].mxu0  ;;  %v2339_v3 = vsel %vm1670_vm3, %v2284_v56, %v2180_v50  ;;  %v1965_v5 = vrot.slane %v9243_v35, 4  ;;  %v2063_v8 = vrot.slane %v11736_v38, 3 }
 0x130   : > { %v943_v63 = vadd.f32 %v8259_v54, %v8988_v14  ;;  %v934_v1 = vpop.f32.mrb[35].mxu0  ;;  %2813 = vmatprep.mubr.bf16.mxu1 %v2339_v3  ;;  %v2064_v48 = vrot.slane %v11734_v40, 4  ;;  %v1939_v13 = vrot.slane %v9227_v9, 3  ;;  %v1940_v16 = vrot.slane %v9224_v4, 3 }
 0x131   : > { %v935_v32 = vadd.f32 %v8988_v14, %v934_v1  ;;  %2814 = vmatmul.mubr.bf16.gmra.mrb[4].mxu1 %v2336_v42  ;;  %v1966_v20 = vor.u32 %v1965_v5, %v1962_v62  ;;  %v2031_v34 = vor.u32 %v2030_v12, %v2027_v10  ;;  %v2177_v50 = vrot.slane %v2020_v57, 7 }
 0x132   : > { %v9301_v19 = vpack.c.bf16 %v943_v63, %v940_v45  ;;  %v2065_v44 = vor.u32 %v2064_v48, %v2063_v8  ;;  %v1941_v46 = vsel %vm1935_vm7, %v1939_v13, %v1940_v16  ;;  %v7166_v56 = vrot.slane %v9270_v11, 10 }
 0x133   : > { %v9303_v43 = vpack.c.bf16 %v935_v32, %v932_v39  ;;  %v1967_v53 = vsel %vm1272_vm4, %v1958_v61, %v1966_v20  ;;  %v2119_v54 = vrot.slane %v1966_v20, 5  ;;  %v2077_v4 = vrot.slane %v9174_v15, 4 }
 0x134   : > { %11850 = vst [vmem:[#allocation18_spill] sm:$0xff] %v9301_v19  ;;  %v2081_v63 = vrot.slane %v1967_v53, 4  ;;  %v2182_v42 = vrot.slane %v2065_v44, 7  ;;  %v2080_v62 = vrot.slane %v1941_v46, 4  ;;  %v2117_v10 = vrot.slane %v1940_v16, 5 }
 0x135   : > { %11851 = vst [vmem:[#allocation19_spill] sm:$0xff] %v9303_v43  ;;  %v8262_v45 = vpop.f32.mrb[36].mxu0  ;;  %v2160_v39 = vrot.slane %v1966_v20, 6  ;;  %v2159_v1 = vrot.slane %v1940_v16, 6  ;;  %v2109_v3 = vrot.slane %v9174_v15, 5  ;;  %v2157_v8 = vrot.slane %v2031_v34, 6 }
 0x136   : > { %v947_v12 = vpop.f32.mrb[37].mxu0  ;;  %v956_v22 = vadd.f32 %v8262_v45, %v8988_v14  ;;  %v2226_v61 = vsel %vm765_vm0, %v2081_v63, %v2119_v54  ;;  %v2223_v5 = vsel %vm765_vm0, %v2080_v62, %v2117_v10  ;;  %v2178_v46 = vrot.slane %v2031_v34, 7 }
 0x137   : > { %v8263_v57 = vpop.f32.mrb[38].mxu0  ;;  %v2288_v13 = vsel %vm1281_vm2, %v2226_v61, %v2160_v39  ;;  %v2286_v44 = vsel %vm1281_vm2, %v2223_v5, %v2159_v1  ;;  %v948_v16 = vadd.f32 %v8988_v14, %v947_v12  ;;  %v2214_v45 = vsel %vm765_vm0, %v2077_v4, %v2109_v3 }
 0x138   : > { %v959_v32 = vadd.f32 %v8263_v57, %v8988_v14  ;;  %v950_v48 = vpop.f32.mrb[39].mxu0  ;;  %v9321_v20 = vsel %vm1670_vm3, %v2288_v13, %v2182_v42  ;;  %v9324_v53 = vsel %vm1670_vm3, %v2286_v44, %v7166_v56  ;;  %v2280_v62 = vsel %vm1281_vm2, %v2214_v45, %v2157_v8 }
 0x139   : > { %v951_v15 = vadd.f32 %v8988_v14, %v950_v48  ;;  %v9333_v34 = vsel %vm1670_vm3, %v2280_v62, %v2178_v46  ;;  %v9337_v12 = vsel %vm1670_vm3, %v9190_v21, %v2177_v50  ;;  %v9340_v56 = vrot.slane %v8994_v23, 7 }
 0x13a   : > { %v9326_v54 = vpack.c.bf16 %v959_v32, %v956_v22  ;;  %v1995_v1 = vrot.slane %v9248_v41, 6  ;;  %v1996_v4 = vrot.slane %v9243_v35, 7  ;;  %v1260_v8 = vrot.slane %v8996_v24, 7 }
 0x13b   : > { %v9329_v63 = vpack.c.bf16 %v951_v15, %v948_v16  ;;  %v11735_v32 = vrot.slane %v9057_v18, 3  ;;  %v1404_v35 = vrot.slane %v9340_v56, 1  ;;  %v9387_v33 = vrot.slane %v9178_v60, 7 }
 0x13c   : > { %11852 = vst [vmem:[#allocation20_spill] sm:$0xff] %v9326_v54  ;;  %v9348_v21 = vor.u32 %v1996_v4, %v1995_v1  ;;  %v1262_v1 = vsel %vm1259_vm8, %v1260_v8, %v9340_v56  ;;  %v9377_v4 = vrot.slane %v9106_v6, 3 }
 0x13d   : > { %11853 = vst [vmem:[#allocation21_spill] sm:$0xff] %v9329_v63  ;;  %v8266_v10 = vpop.f32.mrb[40].mxu0 }
 0x13e   : > { %v963_v42 = vpop.f32.mrb[41].mxu0  ;;  %v972_v3 = vadd.f32 %v8266_v10, %v8988_v14  ;;  %11860 = vst [vmem:[#allocation28_spill] sm:$0xff] %v9377_v4 }
 0x13f   : > { %v8267_v39 = vpop.f32.mrb[42].mxu0  ;;  %v964_v61 = vadd.f32 %v8988_v14, %v963_v42 }
 0x140   : > { %v975_v22 = vadd.f32 %v8267_v39, %v8988_v14  ;;  %v966_v57 = vpop.f32.mrb[43].mxu0 }
 0x141   : > { %v967_v5 = vadd.f32 %v8988_v14, %v966_v57 }
 0x142   : > { %v9350_v50 = vpack.c.bf16 %v975_v22, %v972_v3  ;;  %v9381_v3 = vrot.slane %v11735_v32, 1 }
 0x143   : > { %v9354_v41 = vpack.c.bf16 %v967_v5, %v964_v61 }
 0x144   : > { %11854 = vst [vmem:[#allocation22_spill] sm:$0xff] %v9350_v50  ;;  %v1286_v48 = vrot.slane %v9350_v50, 4  ;;  %v9359_v13 = vshll.u32 %v9350_v50, 16  ;;  %v9362_v44 = vshrl.u32 %v9350_v50, 16 }
 0x145   : > { %11855 = vst [vmem:[#allocation23_spill] sm:$0xff] %v9354_v41  ;;  %v8270_v16 = vpop.f32.mrb[44].mxu0  ;;  %v1216_v15 = vrot.slane %v9354_v41, 4  ;;  %v9367_v45 = vshrl.u32 %v9354_v41, 16  ;;  %v9370_v62 = vshll.u32 %v9354_v41, 16 }
 0x146   : > { %11856 = vst [vmem:[#allocation24_spill] sm:$0xff] %v9359_v13  ;;  %11857 = vst [vmem:[#allocation25_spill] sm:$0xff] %v9362_v44  ;;  %v979_v42 = vpop.f32.mrb[45].mxu0  ;;  %v1277_v39 = vrot.slane %v9359_v13, 4  ;;  %v988_v59 = vadd.f32 %v8270_v16, %v8988_v14  ;;  %v1336_v40 = vrot.slane %v9362_v44, 3  ;;  %v1452_v25 = vrot.slane %v1286_v48, 2 }
 0x147   : > { %11858 = vst [vmem:[#allocation26_spill] sm:$0xff] %v9367_v45  ;;  %11859 = vst [vmem:[#allocation27_spill] sm:$0xff] %v9370_v62  ;;  %v8271_v22 = vpop.f32.mrb[46].mxu0  ;;  %v1287_v57 = vsel %vm1281_vm2, %v1216_v15, %v1286_v48  ;;  %v1208_v61 = vrot.slane %v9367_v45, 3  ;;  %v1209_v5 = vrot.slane %v9370_v62, 4  ;;  %v980_v32 = vadd.f32 %v8988_v14, %v979_v42 }
 0x148   : > { %v991_v8 = vadd.f32 %v8271_v22, %v8988_v14  ;;  %v982_v10 = vpop.f32.mrb[47].mxu0  ;;  %v1417_v46 = vrot.slane %v1287_v57, 1  ;;  %v1485_v47 = vrot.slane %v1286_v48, 3  ;;  %v1337_v13 = vor.u32 %v1336_v40, %v1277_v39 }
 0x149   : > { %v983_v38 = vadd.f32 %v8988_v14, %v982_v10  ;;  %v1210_v58 = vor.u32 %v1209_v5, %v1208_v61  ;;  %v9402_v57 = vsel %vm765_vm0, %v1262_v1, %v1404_v35 }
 0x14a   : > { %v9394_v54 = vpack.c.bf16 %v991_v8, %v988_v59  ;;  %v1562_v60 = vsel %vm765_vm0, %v1216_v15, %v1417_v46  ;;  %v1451_v10 = vrot.slane %v1337_v13, 2  ;;  %v1484_v48 = vrot.slane %v1337_v13, 3 }
 0x14b   : > { %v9397_v29 = vpack.c.bf16 %v983_v38, %v980_v32  ;;  %v1645_v16 = vsel %vm1281_vm2, %v1562_v60, %v1452_v25  ;;  %v1278_v22 = vsel %vm1272_vm4, %v1210_v58, %v1277_v39  ;;  %v9416_v25 = vld [vmem:[%s11724_s2] ss:$0 sm:$0xff] }
 0x14c   : > { %v1741_v42 = vsel %vm1670_vm3, %v1645_v16, %v1485_v47  ;;  %v1416_v14 = vrot.slane %v1278_v22, 1  ;;  %v9411_v60 = vshll.u32 %v9394_v54, 16  ;;  %v9421_v13 = vshrl.u32 %v9394_v54, 16 }
 0x14d   : > { %11861 = vst [vmem:[#allocation29_spill] sm:$0xff] %v9397_v29  ;;  %v8274_v61 = vpop.f32.mrb[48].mxu0  ;;  %3578 = vmatprep.mubr.bf16.mxu0 %v1741_v42  ;;  %v9407_v40 = vshrl.u32 %v9397_v29, 16  ;;  %v11747_v38 = vshll.u32 %v9397_v29, 16  ;;  %v2084_v46 = vrot.slane %v9397_v29, 4  ;;  %v2125_v42 = vrot.slane %v9397_v29, 5 }
 0x14e   : > { %v1004_v47 = vadd.f32 %v9416_v25, %v8274_v61  ;;  %v995_v32 = vpop.f32.mrb[49].mxu0  ;;  %v1559_v35 = vsel %vm765_vm0, %v1210_v58, %v1416_v14  ;;  %v2010_v8 = vrot.slane %v9411_v60, 1  ;;  %v2126_v14 = vrot.slane %v9394_v54, 5 }
 0x14f   : > { %11862 = vst [vmem:[#allocation30_spill] sm:$0xff] %v9407_v40  ;;  %v996_v15 = vadd.f32 %v9416_v25, %v995_v32  ;;  %v8275_v39 = vpop.f32.mrb[50].mxu0  ;;  %v1643_v1 = vsel %vm1281_vm2, %v1559_v35, %v1451_v10  ;;  %v1927_v5 = vrot.slane %v11747_v38, 1  ;;  %v2185_v45 = vrot.slane %v9394_v54, 7 }
 0x150   : > { %v1007_v16 = vadd.f32 %v9416_v25, %v8275_v39  ;;  %v998_v22 = vpop.f32.mrb[51].mxu0  ;;  %v1738_v58 = vsel %vm1670_vm3, %v1643_v1, %v1484_v48  ;;  %v2011_v10 = vsel %vm1310_vm5, %v9407_v40, %v2010_v8  ;;  %v2012_v35 = vor.u32 %v2010_v8, %v9421_v13 }
 0x151   : > { %v999_v61 = vadd.f32 %v9416_v25, %v998_v22  ;;  %3579 = vmatmul.mubr.bf16.gmra.mrb[88].mxu0 %v1738_v58  ;;  %v1928_v32 = vor.u32 %v1927_v5, %v9407_v40  ;;  %v2128_v39 = vrot.slane %v2011_v10, 5  ;;  %v2127_v59 = vsel %vm2096_vm6, %v2125_v42, %v2126_v14 }
 0x152   : > { %v9438_v38 = vpack.c.bf16 %v1007_v16, %v1004_v47  ;;  %v11864_v48 = vshrl.u32 %v9270_v11, 16  ;;  %v2129_v22 = vrot.slane %v2012_v35, 5  ;;  %v9446_v58 = vrot.slane %v9394_v54, 6 }
 0x153   : > { %v9443_v44 = vpack.c.bf16 %v999_v61, %v996_v15  ;;  %v2085_v23 = vrot.slane %v1928_v32, 4  ;;  %v2163_v5 = vrot.slane %v2012_v35, 6  ;;  %v2235_v8 = vsel %vm765_vm0, %v2084_v46, %v2127_v59 }
 0x154   : > { %11863 = vst [vmem:[#allocation31_spill] sm:$0xff] %v9438_v38  ;;  %v2035_v1 = vrot.slane %v11864_v48, 6  ;;  %v11865_v47 = vshll.u32 %v9270_v11, 16  ;;  %v2130_v15 = vsel %vm2096_vm6, %v2128_v39, %v2129_v22  ;;  %v2294_v61 = vsel %vm1281_vm2, %v2235_v8, %v9446_v58 }
 0x155   : > { %v8278_v10 = vpop.f32.mrb[52].mxu0  ;;  %v2186_v62 = vrot.slane %v2012_v35, 7  ;;  %v2238_v24 = vsel %vm765_vm0, %v2085_v23, %v2130_v15  ;;  %v2354_v59 = vsel %vm1670_vm3, %v2294_v61, %v2185_v45  ;;  %v1968_v14 = vrot.slane %v9407_v40, 3 }
 0x156   : > { %v2038_v16 = vrot.slane %v11865_v47, 7  ;;  %v1020_v32 = vadd.f32 %v9416_v25, %v8278_v10  ;;  %v1011_v48 = vpop.f32.mrb[53].mxu0  ;;  %v2296_v42 = vsel %vm1281_vm2, %v2238_v24, %v2163_v5  ;;  %v1972_v39 = vrot.slane %v9421_v13, 3 }
 0x157   : > { %v1012_v46 = vadd.f32 %v9416_v25, %v1011_v48  ;;  %v8279_v47 = vpop.f32.mrb[54].mxu0  ;;  %v2357_v10 = vsel %vm1670_vm3, %v2296_v42, %v2186_v62  ;;  %v1975_v35 = vrot.slane %v9411_v60, 4  ;;  %v11866_v23 = vshrl.u32 %v9443_v44, 16 }
 0x158   : > { %v1023_v22 = vadd.f32 %v9416_v25, %v8279_v47  ;;  %v1014_v8 = vpop.f32.mrb[55].mxu0  ;;  %2821 = vmatprep.mubr.bf16.mxu1 %v2357_v10  ;;  %v11867_v61 = vshll.u32 %v9443_v44, 16  ;;  %v1942_v5 = vrot.slane %v9397_v29, 3  ;;  %v1943_v48 = vrot.slane %v9394_v54, 3 }
 0x159   : > { %v2066_v15 = vrot.slane %v11866_v23, 3  ;;  %v1015_v45 = vadd.f32 %v9416_v25, %v1014_v8  ;;  %2822 = vmatmul.mubr.bf16.gmra.mrb[8].mxu1 %v2354_v59  ;;  %v1412_v62 = vrot.slane %v9387_v33, 1  ;;  %v1976_v42 = vor.u32 %v1975_v35, %v1972_v39 }
 0x15a   : > { %v2067_v24 = vrot.slane %v11867_v61, 4  ;;  %v9474_v40 = vpack.c.bf16 %v1023_v22, %v1020_v32  ;;  %v2021_v47 = vrot.slane %v9270_v11, 6  ;;  %v1944_v8 = vsel %vm1935_vm7, %v1942_v5, %v1943_v48 }
 0x15b   : > { %v9478_v28 = vpack.c.bf16 %v1015_v45, %v1012_v46  ;;  %v2039_v10 = vor.u32 %v2038_v16, %v2035_v1  ;;  %v1977_v61 = vsel %vm1272_vm4, %v1968_v14, %v1976_v42  ;;  %v2133_v27 = vrot.slane %v1976_v42, 5 }
 0x15c   : > { %11868 = vst [vmem:[#allocation32_spill] sm:$0xff] %v9474_v40  ;;  %v2068_v23 = vor.u32 %v2067_v24, %v2066_v15  ;;  %v7167_v36 = vrot.slane %v9443_v44, 10  ;;  %v2083_v54 = vrot.slane %v9348_v21, 4  ;;  %v2087_v59 = vrot.slane %v1977_v61, 4 }
 0x15d   : > { %11869 = vst [vmem:[#allocation33_spill] sm:$0xff] %v9478_v28  ;;  %v8282_v32 = vpop.f32.mrb[56].mxu0  ;;  %v2086_v37 = vrot.slane %v1944_v8, 4  ;;  %v2131_v39 = vrot.slane %v1943_v48, 5  ;;  %v11870_v11 = vrot.slane %v9181_v17, 7  ;;  %v2165_v15 = vrot.slane %v1976_v42, 6 }
 0x15e   : > { %v2188_v22 = vrot.slane %v2068_v23, 7  ;;  %v1027_v35 = vpop.f32.mrb[57].mxu0  ;;  %v2164_v1 = vrot.slane %v1943_v48, 6  ;;  %v2123_v16 = vrot.slane %v9348_v21, 5  ;;  %v1036_v14 = vadd.f32 %v9416_v25, %v8282_v32 }
 0x15f   : > { %v1265_v46 = vsel %vm1259_vm8, %v11870_v11, %v9387_v33  ;;  %v8283_v45 = vpop.f32.mrb[58].mxu0  ;;  %v2244_v24 = vsel %vm765_vm0, %v2087_v59, %v2133_v27  ;;  %v2241_v5 = vsel %vm765_vm0, %v2086_v37, %v2131_v39  ;;  %v2162_v23 = vrot.slane %v2039_v10, 6 }
 0x160   : > { %v1039_v8 = vadd.f32 %v9416_v25, %v8283_v45  ;;  %v1030_v61 = vpop.f32.mrb[59].mxu0  ;;  %v2300_v40 = vsel %vm1281_vm2, %v2244_v24, %v2165_v15  ;;  %v2298_v17 = vsel %vm1281_vm2, %v2241_v5, %v2164_v1  ;;  %v2184_v11 = vrot.slane %v2039_v10, 7 }
 0x161   : > { %v1028_v48 = vadd.f32 %v9416_v25, %v1027_v35  ;;  %v1031_v21 = vadd.f32 %v9416_v25, %v1030_v61  ;;  %v9498_v42 = vsel %vm1670_vm3, %v2300_v40, %v2188_v22  ;;  %v9501_v27 = vsel %vm1670_vm3, %v2298_v17, %v7167_v36 }
 0x162   : > { %v9503_v37 = vpack.c.bf16 %v1039_v8, %v1036_v14  ;;  %v1267_v32 = vrot.slane %v9350_v50, 7  ;;  %v2232_v59 = vsel %vm765_vm0, %v2083_v54, %v2123_v16  ;;  %v2082_v39 = vrot.slane %v9273_v0, 4 }
 0x163   : > { %v9508_v15 = vpack.c.bf16 %v1031_v21, %v1028_v48  ;;  %v1266_v10 = vrot.slane %v9354_v41, 7  ;;  %v2292_v35 = vsel %vm1281_vm2, %v2232_v59, %v2162_v23  ;;  %v2121_v40 = vrot.slane %v9273_v0, 5 }
 0x164   : > { %11871 = vst [vmem:[#allocation34_spill] sm:$0xff] %v9503_v37  ;;  %v11872_v22 = vrot.slane %v9340_v56, 2  ;;  %v9518_v36 = vsel %vm1670_vm3, %v2292_v35, %v2184_v11  ;;  %v2161_v1 = vrot.slane %v2021_v47, 6  ;;  %v11873_v16 = vrot.slane %v9024_v51, 10 }
 0x165   : > { %v8286_v54 = vpop.f32.mrb[60].mxu0  ;;  %v3876_v45 = vrot.slane %v9377_v4, 2  ;;  %v2183_v24 = vrot.slane %v2021_v47, 7  ;;  %v1446_v0 = vrot.slane %v9387_v33, 2  ;;  %v1546_v56 = vsel %vm765_vm0, %v1265_v46, %v1412_v62 }
 0x166   : > { %v1615_v17 = vsel %vm1281_vm2, %v9402_v57, %v11872_v22  ;;  %v1043_v5 = vpop.f32.mrb[61].mxu0  ;;  %v1420_v23 = vrot.slane %v1267_v32, 1  ;;  %v11874_v57 = vrot.slane %v9057_v18, 3  ;;  %v7162_v11 = vrot.slane %v9227_v9, 10 }
 0x167   : > { %v9523_v14 = vsel %vm1670_vm3, %v1615_v17, %v11873_v16  ;;  %v8287_v61 = vpop.f32.mrb[62].mxu0  ;;  %v1268_v48 = vsel %vm1259_vm8, %v1266_v10, %v1267_v32  ;;  %v2229_v21 = vsel %vm765_vm0, %v2082_v39, %v2121_v40  ;;  %v1998_v47 = vrot.slane %v9421_v13, 6 }
 0x168   : > { %v3926_v8 = vsel %vm765_vm0, %v11874_v57, %v9381_v3  ;;  %v1052_v59 = vadd.f32 %v9416_v25, %v8286_v54  ;;  %v1055_v33 = vadd.f32 %v9416_v25, %v8287_v61  ;;  %v1046_v62 = vpop.f32.mrb[63].mxu0  ;;  %v2290_v46 = vsel %vm1281_vm2, %v2229_v21, %v2161_v1 }
 0x169   : > { %v1999_v35 = vrot.slane %v9411_v60, 7  ;;  %v1044_v3 = vadd.f32 %v9416_v25, %v1043_v5  ;;  %v1047_v22 = vadd.f32 %v9416_v25, %v1046_v62  ;;  %v1455_v17 = vrot.slane %v1267_v32, 2 }
 0x16a   : > { %v9543_v10 = vsel %vm1670_vm3, %v2290_v46, %v2183_v24  ;;  %v9545_v39 = vpack.c.bf16 %v1055_v33, %v1052_v59  ;;  %v7163_v13 = vrot.slane %v9397_v29, 10  ;;  %v1571_v40 = vsel %vm765_vm0, %v1268_v48, %v1420_v23 }
 0x16b   : > { %v9549_v54 = vor.u32 %v1999_v35, %v1998_v47  ;;  %v9551_v16 = vpack.c.bf16 %v1047_v22, %v1044_v3  ;;  %v1633_v60 = vsel %vm1281_vm2, %v1546_v56, %v1446_v0  ;;  %v9556_v5 = vsel %vm1281_vm2, %v3926_v8, %v3876_v45 }
 0x16c   : > { %11875 = vst [vmem:[#allocation35_spill] sm:$0xff] %v9545_v39  ;;  %v1288_v32 = vrot.slane %v9545_v39, 4  ;;  %v9560_v24 = vshll.u32 %v9545_v39, 16  ;;  %v9563_v57 = vshrl.u32 %v9545_v39, 16  ;;  %v9566_v23 = vsel %vm1670_vm3, %v1633_v60, %v7162_v11 }
 0x16d   : > { %11876 = vst [vmem:[#allocation36_spill] sm:$0xff] %v9551_v16  ;;  %v8290_v61 = vpop.f32.mrb[64].mxu0  ;;  %v1217_v48 = vrot.slane %v9551_v16, 4  ;;  %v9570_v0 = vshrl.u32 %v9551_v16, 16  ;;  %v9573_v45 = vshll.u32 %v9551_v16, 16  ;;  %v1651_v56 = vsel %vm1281_vm2, %v1571_v40, %v1455_v17 }
 0x16e   : > { %11877 = vst [vmem:[#allocation37_spill] sm:$0xff] %v9560_v24  ;;  %11878 = vst [vmem:[#allocation38_spill] sm:$0xff] %v9563_v57  ;;  %v1059_v8 = vpop.f32.mrb[65].mxu0  ;;  %v1279_v21 = vrot.slane %v9560_v24, 4  ;;  %v9578_v47 = vsel %vm1670_vm3, %v1651_v56, %v7163_v13  ;;  %v9581_v11 = vrot.slane %v9545_v39, 7  ;;  %v11880_v59 = vshrl.u32 %v9443_v44, 16 }
 0x16f   : > { %11879 = vst [vmem:[#allocation39_spill] sm:$0xff] %v9570_v0  ;;  %v8291_v62 = vpop.f32.mrb[66].mxu0  ;;  %v1289_v46 = vsel %vm1281_vm2, %v1217_v48, %v1288_v32  ;;  %v1211_v35 = vrot.slane %v9570_v0, 3  ;;  %v1212_v3 = vrot.slane %v9573_v45, 4  ;;  %v1269_v22 = vrot.slane %v9551_v16, 7 }
 0x170   : > { %v9585_v33 = vrot.slane %v11880_v59, 6  ;;  %v1068_v17 = vadd.f32 %v9416_v25, %v8290_v61  ;;  %v1071_v13 = vadd.f32 %v9416_v25, %v8291_v62  ;;  %v1062_v40 = vpop.f32.mrb[67].mxu0  ;;  %v1425_v60 = vrot.slane %v1289_v46, 1 }
 0x171   : > { %v1338_v56 = vrot.slane %v9563_v57, 3  ;;  %v1060_v59 = vadd.f32 %v9416_v25, %v1059_v8  ;;  %v1063_v1 = vadd.f32 %v9416_v25, %v1062_v40  ;;  %v1461_v29 = vrot.slane %v1288_v32, 2 }
 0x172   : > { %v1213_v9 = vor.u32 %v1212_v3, %v1211_v35  ;;  %v9596_v51 = vpack.c.bf16 %v1071_v13, %v1068_v17  ;;  %v1493_v39 = vrot.slane %v1288_v32, 3  ;;  %v1587_v37 = vsel %vm765_vm0, %v1217_v48, %v1425_v60 }
 0x173   : > { %v1339_v16 = vor.u32 %v1338_v56, %v1279_v21  ;;  %v9599_v50 = vpack.c.bf16 %v1063_v1, %v1060_v59  ;;  %v1663_v61 = vsel %vm1281_vm2, %v1587_v37, %v1461_v29  ;;  %v11881_v46 = vshll.u32 %v9443_v44, 16 }
 0x174   : > { %v1280_v62 = vsel %vm1272_vm4, %v1213_v9, %v1279_v21  ;;  %v1768_v8 = vsel %vm1670_vm3, %v1663_v61, %v1493_v39  ;;  %v9608_v35 = vsel %vm1259_vm8, %v1269_v22, %v9581_v11  ;;  %v9615_v37 = vshll.u32 %v9596_v51, 16 }
 0x175   : > { %v2046_v57 = vrot.slane %v11881_v46, 7  ;;  %v1424_v40 = vrot.slane %v1280_v62, 1  ;;  %v1460_v41 = vrot.slane %v1339_v16, 2  ;;  %v8294_v32 = vpop.f32.mrb[68].mxu0  ;;  %3586 = vmatprep.mubr.bf16.mxu0 %v1768_v8  ;;  %v1492_v48 = vrot.slane %v1339_v16, 3 }
 0x176   : > { %v9611_v1 = vshrl.u32 %v9599_v50, 16  ;;  %v11787_v29 = vshll.u32 %v9599_v50, 16  ;;  %v1084_v21 = vadd.f32 %v9416_v25, %v8294_v32  ;;  %v1075_v39 = vpop.f32.mrb[69].mxu0  ;;  %v9620_v17 = vshrl.u32 %v9596_v51, 16 }
 0x177   : > { %v1584_v3 = vsel %vm765_vm0, %v1213_v9, %v1424_v40  ;;  %v2090_v22 = vrot.slane %v9599_v50, 4  ;;  %v1076_v16 = vadd.f32 %v9416_v25, %v1075_v39  ;;  %v8295_v13 = vpop.f32.mrb[70].mxu0  ;;  %v2013_v59 = vrot.slane %v9615_v37, 1 }
 0x178   : > { %v1661_v60 = vsel %vm1281_vm2, %v1584_v3, %v1460_v41  ;;  %v1929_v56 = vrot.slane %v11787_v29, 1  ;;  %v1087_v61 = vadd.f32 %v9416_v25, %v8295_v13  ;;  %v1078_v62 = vpop.f32.mrb[71].mxu0  ;;  %v2139_v46 = vrot.slane %v9599_v50, 5 }
 0x179   : > { %v1765_v9 = vsel %vm1670_vm3, %v1661_v60, %v1492_v48  ;;  %v2140_v8 = vrot.slane %v9596_v51, 5  ;;  %v1079_v40 = vadd.f32 %v9416_v25, %v1078_v62  ;;  %v2014_v41 = vsel %vm1310_vm5, %v9611_v1, %v2013_v59 }
 0x17a   : > { %3587 = vmatmul.mubr.bf16.gmra.mrb[92].mxu0 %v1765_v9  ;;  %v1930_v32 = vor.u32 %v1929_v56, %v9611_v1  ;;  %v2015_v39 = vor.u32 %v2013_v59, %v9620_v17  ;;  %v9637_v3 = vpack.c.bf16 %v1087_v61, %v1084_v21  ;;  %v2142_v13 = vrot.slane %v2014_v41, 5 }
 0x17b   : > { %8320 = vmatprep.mubr.bf16.mxu0 %v9523_v14  ;;  %v2141_v48 = vsel %vm2096_vm6, %v2139_v46, %v2140_v8  ;;  %v1428_v60 = vrot.slane %v9581_v11, 1  ;;  %v9642_v29 = vpack.c.bf16 %v1079_v40, %v1076_v16  ;;  %v9645_v56 = vrot.slane %v9596_v51, 6 }
 0x17c   : > { %11882 = vst [vmem:[#allocation40_spill] sm:$0xff] %v9637_v3  ;;  %v2091_v62 = vrot.slane %v1930_v32, 4  ;;  %v2143_v9 = vrot.slane %v2015_v39, 5  ;;  %v2168_v24 = vrot.slane %v2015_v39, 6  ;;  %v2191_v0 = vrot.slane %v9596_v51, 7 }
 0x17d   : > { %v2253_v21 = vsel %vm765_vm0, %v2090_v22, %v2141_v48  ;;  %v9650_v59 = vor.u32 %v2046_v57, %v9585_v33  ;;  %v11792_v14 = vshrl.u32 %v9642_v29, 16  ;;  %v11793_v61 = vshll.u32 %v9642_v29, 16  ;;  %v8298_v8 = vpop.f32.mrb[72].mxu0  ;;  %v8436_v57 = vld [vmem:[%s11725_s3 + $0x440] sm:$0xff]  }
 0x17e   : > { %v2144_v16 = vsel %vm2096_vm6, %v2142_v13, %v2143_v9  ;;  %v2306_v46 = vsel %vm1281_vm2, %v2253_v21, %v9645_v56  ;;  %v2192_v40 = vrot.slane %v2015_v39, 7  ;;  %v1100_v33 = vadd.f32 %v9416_v25, %v8298_v8  ;;  %v1091_v22 = vpop.f32.mrb[73].mxu0 }
 0x17f   : > { %v2256_v32 = vsel %vm765_vm0, %v2091_v62, %v2144_v16  ;;  %v2372_v41 = vsel %vm1670_vm3, %v2306_v46, %v2191_v0  ;;  %v1092_v13 = vadd.f32 %v9416_v25, %v1091_v22  ;;  %v8299_v9 = vpop.f32.mrb[74].mxu0  ;;  %v1978_v21 = vrot.slane %v9611_v1, 3  ;;  %v8438_v0 = vld [vmem:[%s11725_s3 + $0x488] sm:$0xff]  }
 0x180   : > { %v2308_v48 = vsel %vm1281_vm2, %v2256_v32, %v2168_v24  ;;  %v1982_v39 = vrot.slane %v9620_v17, 3  ;;  %v1103_v16 = vadd.f32 %v9416_v25, %v8299_v9  ;;  %v1094_v46 = vpop.f32.mrb[75].mxu0  ;;  %v1985_v8 = vrot.slane %v9615_v37, 4  ;;  %v8440_v9 = vld [vmem:[%s11725_s3 + $0x448] sm:$0xff]  }
 0x181   : > { %v2375_v62 = vsel %vm1670_vm3, %v2308_v48, %v2192_v40  ;;  %v2069_v24 = vrot.slane %v11792_v14, 3  ;;  %v1095_v32 = vadd.f32 %v9416_v25, %v1094_v46  ;;  %v2070_v40 = vrot.slane %v11793_v61, 4 }
 0x182   : > { %2829 = vmatprep.mubr.bf16.mxu1 %v2375_v62  ;;  %8321 = vmatmul.mubr.bf16.vlgmr.msra.gmra.mrb[96].mxu0 %v9566_v23  ;;  %v1945_v22 = vrot.slane %v9599_v50, 3  ;;  %v1946_v48 = vrot.slane %v9596_v51, 3  ;;  %v1464_v14 = vrot.slane %v9581_v11, 2  ;;  %v1596_v23 = vsel %vm765_vm0, %v9608_v35, %v1428_v60  ;;  %v8442_v51 = vld [vmem:[%s11725_s3 + $0x490] sm:$0xff]  }
 0x183   : > { %2830 = vmatmul.mubr.bf16.gmra.mrb[12].mxu1 %v2372_v41  ;;  %7883 = vmatpush3.bf16.msra.mxu0 %v8436_v57  ;;  %v9687_v62 = vpack.c.bf16 %v1103_v16, %v1100_v33  ;;  %v1986_v25 = vor.u32 %v1985_v8, %v1982_v39  ;;  %v9694_v41 = vpack.c.bf16 %v1095_v32, %v1092_v13  ;;  %v2022_v11 = vrot.slane %v9443_v44, 6  ;;  %v8444_v44 = vld [vmem:[%s11725_s3 + $0x450] sm:$0xff]  }
 0x184   : > { %2870 = vmatprep.mubr.bf16.mxu1 %v9139_v49  ;;  %8324 = vmatprep.mubr.bf16.mxu0 %v9578_v47  ;;  %v2071_v57 = vor.u32 %v2070_v40, %v2069_v24  ;;  %v1947_v46 = vsel %vm1935_vm7, %v1945_v22, %v1946_v48  ;;  %v7164_v35 = vrot.slane %v9599_v50, 10  ;;  %v7168_v49 = vrot.slane %v9642_v29, 10  ;;  %v8443_v40 = vld [vmem:[%s11725_s3 + $0x340] sm:$0xff]  }
 0x185   : > { %11883 = vst [vmem:[#allocation41_spill] sm:$0xff] %v9694_v41  ;;  %7884 = vmatprep.subr.bf16.mxu0 %v8438_v0  ;;  %v1987_v60 = vsel %vm1272_vm4, %v1978_v21, %v1986_v25  ;;  %v2147_v33 = vrot.slane %v1986_v25, 5  ;;  %v2092_v16 = vrot.slane %v1947_v46, 4  ;;  %v2145_v8 = vrot.slane %v1946_v48, 5  ;;  %v9701_v61 = vpop.f32.mrb[76].mxu0 }
 0x186   : > { %v2093_v47 = vrot.slane %v1987_v60, 4  ;;  %v2194_v39 = vrot.slane %v2071_v57, 7  ;;  %v1669_v13 = vsel %vm1281_vm2, %v1596_v23, %v1464_v14  ;;  %v2170_v0 = vrot.slane %v1986_v25, 6  ;;  %v9708_v32 = vpop.f32.mrb[77].mxu0  ;;  %v8445_v25 = vld [vmem:[%s11725_s3 + $0x388] sm:$0xff]  }
 0x187   : > { %7885 = vmatpush3.bf16.msra.mxu0 %v8440_v9  ;;  %v2169_v24 = vrot.slane %v1946_v48, 6  ;;  %v2089_v21 = vrot.slane %v9549_v54, 4  ;;  %v2259_v9 = vsel %vm765_vm0, %v2092_v16, %v2145_v8  ;;  %v2137_v14 = vrot.slane %v9549_v54, 5  ;;  %v9717_v57 = vpop.f32.mrb[78].mxu0  ;;  %v8446_v54 = vld [vmem:[%s11725_s3 + $0x498] sm:$0xff]  }
 0x188   : > { %7886 = vmatprep.subr.bf16.mxu0 %v8442_v51  ;;  %v2262_v22 = vsel %vm765_vm0, %v2093_v47, %v2147_v33  ;;  %v2167_v23 = vrot.slane %v9650_v59, 6  ;;  %v1777_v48 = vsel %vm1670_vm3, %v1669_v13, %v7164_v35  ;;  %v2088_v60 = vrot.slane %v9446_v58, 4  ;;  %v9726_v33 = vpop.f32.mrb[79].mxu0  ;;  %v8448_v13 = vld [vmem:[%s11725_s3 + $0x458] sm:$0xff]  }
 0x189   : > { %v2312_v51 = vsel %vm1281_vm2, %v2262_v22, %v2170_v0  ;;  %v2310_v46 = vsel %vm1281_vm2, %v2259_v9, %v2169_v24  ;;  %v2190_v16 = vrot.slane %v9650_v59, 7  ;;  %v2135_v8 = vrot.slane %v9446_v58, 5  ;;  %v8447_v58 = vld [vmem:[%s11725_s3 + $0x348] sm:$0xff]   ;;  %v8451_v9 = vld [vmem:[%s11725_s3 + $0x350] sm:$0xff]  }
 0x18a   : > { %8325 = vmatmul.mubr.bf16.gmra.mrb[100].mxu0 %v1777_v48  ;;  %v9732_v47 = vsel %vm1670_vm3, %v2312_v51, %v2194_v39  ;;  %v9735_v35 = vsel %vm1670_vm3, %v2310_v46, %v7168_v49  ;;  %v2250_v0 = vsel %vm765_vm0, %v2089_v21, %v2137_v14  ;;  %v11884_v39 = vrot.slane %v9377_v4, 3  ;;  %v8454_v48 = vld [vmem:[%s11725_s3 + $0x4a8] sm:$0xff]  }
 0x18b   : > { %2871 = vmatmul.mubr.bf16.vlgmr.msra.gmra.mrb[16].mxu1 %v9151_v55  ;;  %7887 = vmatpush3.bf16.msra.mxu0 %v8444_v44  ;;  %v8450_v55 = vld [vmem:[%s11725_s3 + $0x4a0] sm:$0xff]   ;;  %v2304_v59 = vsel %vm1281_vm2, %v2250_v0, %v2167_v23  ;;  %v2166_v44 = vrot.slane %v2022_v11, 6  ;;  %v2189_v24 = vrot.slane %v2022_v11, 7  ;;  %v2247_v21 = vsel %vm765_vm0, %v2088_v60, %v2135_v8  ;;  %v8453_v23 = vld [vmem:[%s11725_s3 + $0x398] sm:$0xff]  }
 0x18c   : > { %7631 = vmatpush3.bf16.msra.mxu1 %v8443_v40  ;;  %2878 = vmatprep.mubr.bf16.mxu1 %v9321_v20  ;;  %v4039_v49 = vsel %vm1670_vm3, %v9556_v5, %v11884_v39  ;;  %v8449_v20 = vld [vmem:[%s11725_s3 + $0x390] sm:$0xff]   ;;  %v9760_v5 = vsel %vm1670_vm3, %v2304_v59, %v2190_v16  ;;  %v8452_v40 = vld [vmem:[%s11725_s3 + $0x460] sm:$0xff]   ;;  %v2001_v11 = vrot.slane %v9620_v17, 6  ;;  %v2002_v17 = vrot.slane %v9615_v37, 7  ;;  %v8455_v37 = vld [vmem:[%s11725_s3 + $0x358] sm:$0xff]  }
 0x18d   : > { %4582 = vmatprep.mubr.bf16.mxu0 %v4039_v49  ;;  %7632 = vmatprep.subr.bf16.mxu1 %v8445_v25  ;;  %v2302_v22 = vsel %vm1281_vm2, %v2247_v21, %v2166_v44  ;;  %v11885_v25 = vshrl.u32 %v9642_v29, 16  ;;  %v11886_v46 = vshll.u32 %v9642_v29, 16  ;;  %v3821_v16 = vrot.slane %v9106_v6, 1  ;;  %v8457_v0 = vld [vmem:[%s11725_s3 + $0x3a0] sm:$0xff]   ;;  %v8460_v44 = vld [vmem:[%s11725_s3 + $0x470] sm:$0xff]  }
 0x18e   : > { %7888 = vmatprep.subr.bf16.mxu0 %v8446_v54  ;;  %v9772_v14 = vsel %vm1670_vm3, %v2302_v22, %v2189_v24  ;;  %v8456_v54 = vld [vmem:[%s11725_s3 + $0x468] sm:$0xff]   ;;  %v2003_v8 = vor.u32 %v2002_v17, %v2001_v11  ;;  %v9801_v39 = vrot.slane %v9057_v18, 1  ;;  %v3762_v49 = vrot.slane %v9265_v7, 3  ;;  %v8459_v22 = vld [vmem:[%s11725_s3 + $0x360] sm:$0xff]  }
 0x18f   : > { %7889 = vmatpush3.bf16.msra.mxu0 %v8448_v13  ;;  %v2051_v51 = vrot.slane %v11885_v25, 6  ;;  %v2054_v60 = vrot.slane %v11886_v46, 7  ;;  %v8458_v13 = vld [vmem:[%s11725_s3 + $0x4b0] sm:$0xff]   ;;  %v2023_v21 = vrot.slane %v9642_v29, 6  ;;  %v8462_v29 = vld [vmem:[%s11725_s3 + $0x4b8] sm:$0xff]  }
 0x190   : > { %7633 = vmatpush3.bf16.msra.mxu1 %v8447_v58  ;;  %7890 = vmatprep.subr.bf16.mxu0 %v8450_v55  ;;  %11887 = vst [vmem:[#allocation42_spill] sm:$0xff] %v9801_v39  ;;  %v2151_v58 = vrot.slane %v2003_v8, 5  ;;  %v3822_v24 = vsel %vm1319_vm9, %v9801_v39, %v3821_v16 }
 0x191   : > { %7634 = vmatprep.subr.bf16.mxu1 %v8449_v20  ;;  %v9810_v20 = vrot.slane %v9303_v43, 3  ;;  %v2171_v25 = vrot.slane %v2023_v21, 6  ;;  %v3875_v46 = vrot.slane %v3822_v24, 2 }
 0x193   : > { %2879 = vmatmul.mubr.bf16.gmra.mrb[20].mxu1 %v9324_v53  ;;  %7891 = vmatpush3.bf16.msra.mxu0 %v8452_v40  ;;  %v2055_v53 = vor.u32 %v2054_v60, %v2051_v51  ;;  %11888 = vst [vmem:[#allocation43_spill] sm:$0xff] %v9810_v20  ;;  %v2094_v40 = vrot.slane %v9645_v56, 4  ;;  %v2195_v51 = vrot.slane %v2023_v21, 7  ;;  %v3860_v60 = vrot.slane %v3762_v49, 1 }
 0x194   : > { %7635 = vmatpush3.bf16.msra.mxu1 %v8451_v9  ;;  %2886 = vmatprep.mubr.bf16.mxu1 %v9498_v42  ;;  %v2095_v42 = vrot.slane %v2003_v8, 4  ;;  %v2149_v9 = vrot.slane %v9645_v56, 5  ;;  %v8464_v8 = vld [vmem:[%s11725_s3 + $0x478] sm:$0xff]   ;;  %v3763_v21 = vrot.slane %v9438_v38, 3 }
 0x195   : > { %7636 = vmatprep.subr.bf16.mxu1 %v8453_v23  ;;  %7892 = vmatprep.subr.bf16.mxu0 %v8454_v48  ;;  %v2172_v55 = vrot.slane %v2055_v53, 6  ;;  %v2196_v59 = vrot.slane %v2055_v53, 7  ;;  %v8461_v23 = vld [vmem:[%s11725_s3 + $0x3a8] sm:$0xff]   ;;  %v3854_v48 = vrot.slane %v9801_v39, 1  ;;  %v3942_v24 = vsel %vm765_vm0, %v3762_v49, %v3860_v60  ;;  %v8468_v49 = vld [vmem:[%s11725_s3 + $0x540] sm:$0xff]  }
 0x196   : > { %v2268_v11 = vsel %vm765_vm0, %v2095_v42, %v2151_v58  ;;  %v2265_v56 = vsel %vm765_vm0, %v2094_v40, %v2149_v9  ;;  %v9846_v42 = vrot.slane %v9265_v7, 1  ;;  %v3898_v40 = vrot.slane %v3821_v16, 3  ;;  %v8470_v60 = vld [vmem:[%s11725_s3 + $0x588] sm:$0xff]  }
 0x197   : > { %7893 = vmatpush3.bf16.msra.mxu0 %v8456_v54  ;;  %v2316_v17 = vsel %vm1281_vm2, %v2268_v11, %v2172_v55  ;;  %v2314_v53 = vsel %vm1281_vm2, %v2265_v56, %v2171_v25  ;;  %v3923_v55 = vsel %vm765_vm0, %v9801_v39, %v3854_v48  ;;  %v9864_v9 = vrot.slane %v9478_v28, 3  ;;  %v8469_v48 = vld [vmem:[%s11725_s3 + $0x3b8] sm:$0xff]  }
 0x198   : > { %7637 = vmatpush3.bf16.msra.mxu1 %v8455_v37  ;;  %7894 = vmatprep.subr.bf16.mxu0 %v8458_v13  ;;  %v9828_v54 = vsel %vm1670_vm3, %v2316_v17, %v2196_v59  ;;  %v3882_v37 = vrot.slane %v9810_v20, 2  ;;  %v3823_v13 = vrot.slane %v9303_v43, 1  ;;  %11889 = vst [vmem:[#allocation44_spill] sm:$0xff] %v9846_v42  ;;  %v9849_v58 = vsel %vm1670_vm3, %v2314_v53, %v2195_v51 }
 0x199   : > { %7638 = vmatprep.subr.bf16.mxu1 %v8457_v0  ;;  %v8463_v0 = vld [vmem:[%s11725_s3 + $0x368] sm:$0xff]   ;;  %v3986_v59 = vsel %vm1281_vm2, %v3923_v55, %v3875_v46  ;;  %11890 = vst [vmem:[#allocation45_spill] sm:$0xff] %v9864_v9  ;;  %v3859_v16 = vrot.slane %v9846_v42, 1  ;;  %v3825_v17 = vrot.slane %v9478_v28, 1  ;;  %v3764_v25 = vrot.slane %v9637_v3, 3  ;;  %v8473_v55 = vld [vmem:[%s11725_s3 + $0x40] sm:$0xff]  }
 0x19a   : > { %v3824_v11 = vsel %vm1319_vm9, %v9846_v42, %v3823_v13  ;;  %v11794_v51 = vshll.u32 %v9142_v52, 16  ;;  %v9887_v53 = vrot.slane %v9438_v38, 1  ;;  %v11919_v28 = vld [vmem:[#allocation22_spill] sm:$0xff] }
 0x19b   : > { %2887 = vmatmul.mubr.bf16.gmra.mrb[24].mxu1 %v9501_v27  ;;  %7895 = vmatpush3.bf16.msra.mxu0 %v8460_v44  ;;  %v8466_v27 = vld [vmem:[%s11725_s3 + $0x580] sm:$0xff]   ;;  %v3904_v44 = vrot.slane %v9810_v20, 3  ;;  %v3881_v56 = vrot.slane %v3824_v11, 2  ;;  %v1324_v7 = vrot.slane %v11919_v28, 1 }
 0x19c   : > { %7639 = vmatpush3.bf16.msra.mxu1 %v8459_v22  ;;  %2894 = vmatprep.mubr.bf16.mxu1 %v9732_v47  ;;  %v8465_v47 = vld [vmem:[%s11725_s3 + $0x3b0] sm:$0xff]   ;;  %v4000_v22 = vsel %vm1281_vm2, %v3942_v24, %v3882_v37  ;;  %v3888_v37 = vrot.slane %v9864_v9, 2  ;;  %11891 = vst [vmem:[#allocation46_spill] sm:$0xff] %v9887_v53  ;;  %v3870_v24 = vrot.slane %v3764_v25, 1 }
 0x19d   : > { %7640 = vmatprep.subr.bf16.mxu1 %v8461_v23  ;;  %7896 = vmatprep.subr.bf16.mxu0 %v8462_v29  ;;  %v8467_v23 = vld [vmem:[%s11725_s3 + $0x370] sm:$0xff]   ;;  %v4036_v29 = vsel %vm1670_vm3, %v3986_v59, %v3898_v40  ;;  %v4057_v46 = vsel %vm1670_vm3, %v4000_v22, %v3904_v44  ;;  %v3826_v44 = vsel %vm1319_vm9, %v9887_v53, %v3825_v17  ;;  %v4691_v40 = vshll.u32 %v9100_v2, 16 }
 0x19e   : > { %v8474_v59 = vld [vmem:[%s11725_s3 + $0x590] sm:$0xff]   ;;  %v4776_v22 = vrot.slane %v11794_v51, 1  ;;  %v8475_v51 = vld [vmem:[%s11725_s3] sm:$0xff]  }
 0x19f   : > { %7897 = vmatpush3.bf16.msra.mxu0 %v8464_v8  ;;  %v3865_v8 = vrot.slane %v3763_v21, 1 }
 0x1a0   : > { %7641 = vmatpush3.bf16.msra.mxu1 %v8463_v0  ;;  %7962 = vmatprep.subr.bf16.mxu0 %v8466_v27  ;;  %v8471_v0 = vld [vmem:[%s11725_s3 + $0x378] sm:$0xff]   ;;  %v8472_v27 = vld [vmem:[%s11725_s3 + $0x548] sm:$0xff]  }
 0x1a1   : > { %7642 = vmatprep.subr.bf16.mxu1 %v8465_v47  ;;  %v3939_v47 = vsel %vm765_vm0, %v9846_v42, %v3859_v16  ;;  %v3903_v16 = vrot.slane %v3823_v13, 3  ;;  %v9929_v13 = vrot.slane %v9637_v3, 1  ;;  %v11918_v3 = vld [vmem:[#allocation20_spill] sm:$0xff] }
 0x1a2   : > { %4583 = vmatmul.mubr.bf16.vlgmr.msra.gmra.mrb[104].mxu0 %v4036_v29  ;;  %v3998_v11 = vsel %vm1281_vm2, %v3939_v47, %v3881_v56  ;;  %v3887_v56 = vrot.slane %v3826_v44, 2  ;;  %v4693_v47 = vrot.slane %v4691_v40, 1  ;;  %v8479_v40 = vld [vmem:[%s11725_s3 + $0x8] sm:$0xff]   ;;  %v4805_v4 = vshrl.u32 %v11918_v3, 16 }
 0x1a3   : > { %2895 = vmatmul.mubr.bf16.gmra.mrb[28].mxu1 %v9735_v35  ;;  %4590 = vmatprep.mubr.bf16.mxu0 %v4057_v46  ;;  %v9898_v35 = vrot.slane %v9694_v41, 3  ;;  %v11796_v46 = vshrl.u32 %v9142_v52, 16  ;;  %11894 = vst [vmem:[#allocation49_spill] sm:$0xff] %v9929_v13 }
 0x1a4   : > { %7643 = vmatpush3.bf16.msra.mxu1 %v8467_v23  ;;  %7963 = vmatpush3.bf16.msra.mxu0 %v8468_v49  ;;  %v3909_v23 = vrot.slane %v9864_v9, 3  ;;  %v3958_v49 = vsel %vm765_vm0, %v3763_v21, %v3865_v8  ;;  %v3827_v8 = vrot.slane %v9694_v41, 1 }
 0x1a5   : > { %11892 = vst [vmem:[#allocation47_spill] sm:$0xff] %v9898_v35  ;;  %2935 = vmatprep.mubr.bf16.mxu1 %v9333_v34  ;;  %7644 = vmatprep.subr.bf16.mxu1 %v8469_v48  ;;  %v9913_v34 = vshrl.u32 %v9100_v2, 16  ;;  %v4012_v29 = vsel %vm1281_vm2, %v3958_v49, %v3888_v37  ;;  %v3864_v48 = vrot.slane %v9887_v53, 1  ;;  %v3894_v21 = vrot.slane %v9898_v35, 2 }
 0x1a6   : > { %7964 = vmatprep.subr.bf16.mxu0 %v8470_v60  ;;  %v8476_v60 = vld [vmem:[%s11725_s3 + $0x550] sm:$0xff]   ;;  %v4054_v37 = vsel %vm1670_vm3, %v3998_v11, %v3903_v16  ;;  %v9939_v44 = vor.u32 %v4776_v22, %v11796_v46  ;;  %v4075_v49 = vsel %vm1670_vm3, %v4012_v29, %v3909_v23  ;;  %v11795_v11 = vshll.u32 %v9329_v63, 16 }
 0x1a7   : > { %11893 = vst [vmem:[#allocation48_spill] sm:$0xff] %v9913_v34  ;;  %v3908_v23 = vrot.slane %v3825_v17, 3  ;;  %v3828_v29 = vsel %vm1319_vm9, %v9929_v13, %v3827_v8  ;;  %v8482_v17 = vld [vmem:[%s11725_s3 + $0x5a0] sm:$0xff]  }
 0x1a8   : > { %7645 = vmatpush3.bf16.msra.mxu1 %v8471_v0  ;;  %7965 = vmatpush3.bf16.msra.mxu0 %v8472_v27  ;;  %v8477_v0 = vld [vmem:[%s11725_s3 + $0x48] sm:$0xff]   ;;  %v3974_v27 = vsel %vm765_vm0, %v3764_v25, %v3870_v24  ;;  %v3955_v25 = vsel %vm765_vm0, %v9887_v53, %v3864_v48  ;;  %v3914_v24 = vrot.slane %v9898_v35, 3  ;;  %v3869_v48 = vrot.slane %v9929_v13, 1 }
 0x1a9   : > { %7670 = vmatprep.subr.bf16.mxu1 %v8473_v55  ;;  %7966 = vmatprep.subr.bf16.mxu0 %v8474_v59  ;;  %v8478_v55 = vld [vmem:[%s11725_s3 + $0x598] sm:$0xff]   ;;  %v4777_v59 = vsel %vm1310_vm5, %v9913_v34, %v4776_v22  ;;  %v4010_v16 = vsel %vm1281_vm2, %v3955_v25, %v3887_v56  ;;  %v8484_v25 = vld [vmem:[%s11725_s3 + $0x560] sm:$0xff]   ;;  %v4854_v35 = vrot.slane %v9301_v19, 5 }
 0x1aa   : > { %4591 = vmatmul.mubr.bf16.gmra.mrb[108].mxu0 %v4054_v37  ;;  %v8480_v22 = vld [vmem:[%s11725_s3 + $0x558] sm:$0xff]   ;;  %v4847_v56 = vrot.slane %v4777_v59, 5  ;;  %v8714_v37 = vld [vmem:[%s11724_s2] ss:$0 sm:$0xff]  ;;  %v4698_v59 = vshll.u32 %v9301_v19, 16 }
 0x1ab   : > { %2936 = vmatmul.mubr.bf16.vlgmr.msra.gmra.mrb[32].mxu1 %v9337_v12  ;;  %4598 = vmatprep.mubr.bf16.mxu0 %v4075_v49  ;;  %v4024_v12 = vsel %vm1281_vm2, %v3974_v27, %v3894_v21  ;;  %v4848_v21 = vrot.slane %v9939_v44, 5  ;;  %v9981_v27 = vshrl.u32 %v9301_v19, 16  ;;  %v4072_v49 = vsel %vm1670_vm3, %v4010_v16, %v3908_v23 }
 0x1ac   : > { %7671 = vmatpush3.bf16.msra.mxu1 %v8475_v51  ;;  %7967 = vmatpush3.bf16.msra.mxu0 %v8476_v60  ;;  %v8481_v51 = vld [vmem:[%s11725_s3 + $0x50] sm:$0xff]   ;;  %v4694_v60 = vor.u32 %v4693_v47, %v9913_v34  ;;  %v4093_v47 = vsel %vm1670_vm3, %v4024_v12, %v3914_v24  ;;  %v1108_v46 = vadd.f32 %v8714_v37, %v9708_v32  ;;  %v8485_v24 = vld [vmem:[%s11725_s3 + $0x58] sm:$0xff]   ;;  %v1167_v12 = vrot.slane %v9010_v31, 1  ;;  %v8486_v32 = vld [vmem:[%s11725_s3 + $0x5a8] sm:$0xff]  }
 0x1ad   : > { %2943 = vmatprep.mubr.bf16.mxu1 %v9518_v36  ;;  %7672 = vmatprep.subr.bf16.mxu1 %v8477_v0  ;;  %v4779_v36 = vrot.slane %v11795_v11, 1  ;;  %v1116_v0 = vadd.f32 %v8714_v37, %v9701_v61  ;;  %11895 = vst [vmem:[#allocation50_spill] sm:$0xff] %v9981_v27  ;;  %v3893_v61 = vrot.slane %v3828_v29, 2  ;;  %v11798_v11 = vshrl.u32 %v9329_v63, 16  ;;  %v11920_v34 = vld [vmem:[#allocation36_spill] sm:$0xff] }
 0x1ae   : > { %7968 = vmatprep.subr.bf16.mxu0 %v8478_v55  ;;  %v8483_v55 = vld [vmem:[%s11725_s3 + $0x10] sm:$0xff]   ;;  %v1119_v23 = vadd.f32 %v8714_v37, %v9717_v57  ;;  %v4849_v16 = vsel %vm2096_vm6, %v4847_v56, %v4848_v21  ;;  %v11797_v29 = vshll.u32 %v9508_v15, 16  ;;  %v8487_v56 = vld [vmem:[%s11725_s3 + $0x18] sm:$0xff]   ;;  %v8488_v21 = vld [vmem:[%s11725_s3 + $0x568] sm:$0xff]  }
 0x1af   : > { %v10007_v57 = vor.u32 %v4779_v36, %v11798_v11 }
 0x1b0   : > { %7673 = vmatpush3.bf16.msra.mxu1 %v8479_v40  ;;  %7969 = vmatpush3.bf16.msra.mxu0 %v8480_v22  ;;  %v3971_v40 = vsel %vm765_vm0, %v9929_v13, %v3869_v48  ;;  %v4829_v22 = vrot.slane %v4694_v60, 4  ;;  %v4700_v48 = vrot.slane %v4698_v59, 1  ;;  %v4780_v60 = vsel %vm1310_vm5, %v9981_v27, %v4779_v36  ;;  %v8489_v36 = vld [vmem:[%s11725_s3 + $0x60] sm:$0xff]   ;;  %v11904_v13 = vld [vmem:[#allocation27_spill] sm:$0xff] }
 0x1b1   : > { %7674 = vmatprep.subr.bf16.mxu1 %v8481_v51  ;;  %7970 = vmatprep.subr.bf16.mxu0 %v8482_v17  ;;  %v10010_v51 = vpack.c.bf16 %v1119_v23, %v1116_v0  ;;  %v1111_v17 = vadd.f32 %v8714_v37, %v9726_v33  ;;  %v3913_v33 = vrot.slane %v3827_v8, 3  ;;  %v4022_v0 = vsel %vm1281_vm2, %v3971_v40, %v3893_v61  ;;  %v11897_v40 = vld [vmem:[#allocation32_spill] sm:$0xff] }
 0x1b2   : > { %4599 = vmatmul.mubr.bf16.gmra.mrb[112].mxu0 %v4072_v49  ;;  %v8490_v49 = vld [vmem:[%s11725_s3 + $0x5b0] sm:$0xff]   ;;  %v4845_v8 = vrot.slane %v9142_v52, 5  ;;  %v4844_v59 = vrot.slane %v9100_v2, 5  ;;  %v4701_v23 = vor.u32 %v4700_v48, %v9981_v27  ;;  %v4901_v48 = vrot.slane %v9939_v44, 7 }
 0x1b3   : > { %11896 = vst [vmem:[#allocation51_spill] sm:$0xff] %v10010_v51  ;;  %2944 = vmatmul.mubr.bf16.gmra.mrb[36].mxu1 %v9543_v10  ;;  %4606 = vmatprep.mubr.bf16.mxu0 %v4093_v47  ;;  %v4921_v10 = vsel %vm765_vm0, %v4829_v22, %v4849_v16  ;;  %v10025_v37 = vpack.c.bf16 %v1111_v17, %v1108_v46  ;;  %v4885_v47 = vrot.slane %v9939_v44, 6  ;;  %v4705_v22 = vshll.u32 %v11897_v40, 16  ;;  %v8492_v17 = vld [vmem:[%s11725_s3 + $0x570] sm:$0xff]   ;;  %v8494_v44 = vld [vmem:[%s11725_s3 + $0x5b8] sm:$0xff]  }
 0x1b4   : > { %7675 = vmatpush3.bf16.msra.mxu1 %v8483_v55  ;;  %7971 = vmatpush3.bf16.msra.mxu0 %v8484_v25  ;;  %v1168_v46 = vor.u32 %v1167_v12, %v9007_v30  ;;  %v4858_v55 = vrot.slane %v10007_v57, 5  ;;  %v4782_v25 = vrot.slane %v11797_v29, 1  ;;  %v10047_v16 = vshrl.u32 %v11897_v40, 16 }
 0x1b5   : > { %2951 = vmatprep.mubr.bf16.mxu1 %v9760_v5  ;;  %7676 = vmatprep.subr.bf16.mxu1 %v8485_v24  ;;  %v4857_v5 = vrot.slane %v4780_v60, 5  ;;  %v4967_v61 = vsel %vm1281_vm2, %v4921_v10, %v4885_v47  ;;  %v1311_v24 = vrot.slane %v9000_v26, 1  ;;  %v4090_v12 = vsel %vm1670_vm3, %v4022_v0, %v3913_v33  ;;  %v11899_v0 = vld [vmem:[#allocation14_spill] sm:$0xff] }
 0x1b6   : > { %7972 = vmatprep.subr.bf16.mxu0 %v8486_v32  ;;  %11898 = vst [vmem:[#allocation52_spill] sm:$0xff] %v10047_v16  ;;  %v8491_v32 = vld [vmem:[%s11725_s3 + $0x20] sm:$0xff]   ;;  %v11799_v60 = vshrl.u32 %v9508_v15, 16  ;;  %v1397_v10 = vrot.slane %v1168_v46, 1  ;;  %v1174_v47 = vrot.slane %v11899_v0, 1  ;;  %v5000_v29 = vsel %vm1670_vm3, %v4967_v61, %v4901_v48  ;;  %v11900_v48 = vld [vmem:[#allocation13_spill] sm:$0xff] }
 0x1b7   : > { %v1312_v33 = vsel %vm1310_vm5, %v1168_v46, %v1311_v24  ;;  %v4783_v61 = vsel %vm1310_vm5, %v10047_v16, %v4782_v25  ;;  %v1181_v9 = vrot.slane %v11904_v13, 1 }
 0x1b8   : > { %7677 = vmatpush3.bf16.msra.mxu1 %v8487_v56  ;;  %7973 = vmatpush3.bf16.msra.mxu0 %v8488_v21  ;;  %v8493_v56 = vld [vmem:[%s11725_s3 + $0x68] sm:$0xff]   ;;  %v4846_v21 = vsel %vm2096_vm6, %v4844_v59, %v4845_v8  ;;  %v10072_v11 = vor.u32 %v4782_v25, %v11799_v60  ;;  %v4833_v8 = vrot.slane %v4701_v23, 4  ;;  %v4707_v59 = vrot.slane %v4705_v22, 1  ;;  %v8497_v25 = vld [vmem:[%s11725_s3 + $0x70] sm:$0xff]  }
 0x1b9   : > { %7678 = vmatprep.subr.bf16.mxu1 %v8489_v36  ;;  %7974 = vmatprep.subr.bf16.mxu0 %v8490_v49  ;;  %v4828_v36 = vrot.slane %v9100_v2, 4  ;;  %v4859_v49 = vsel %vm2096_vm6, %v4857_v5, %v4858_v55  ;;  %v8496_v5 = vld [vmem:[%s11725_s3 + $0x578] sm:$0xff]   ;;  %v4884_v55 = vrot.slane %v9142_v52, 6  ;;  %v1430_v23 = vrot.slane %v1312_v33, 2 }
 0x1ba   : > { %4607 = vmatmul.mubr.bf16.gmra.mrb[116].mxu0 %v4090_v12  ;;  %v8495_v12 = vld [vmem:[%s11725_s3 + $0x28] sm:$0xff]   ;;  %v4933_v22 = vsel %vm765_vm0, %v4833_v8, %v4859_v49  ;;  %v1175_v60 = vor.u32 %v1174_v47, %v11900_v48  ;;  %v4889_v2 = vrot.slane %v10007_v57, 6  ;;  %v4708_v49 = vor.u32 %v4707_v59, %v10047_v16  ;;  %v8499_v59 = vld [vmem:[%s11725_s3 + $0x78] sm:$0xff]  }
 0x1bb   : > { %2952 = vmatmul.mubr.bf16.gmra.mrb[40].mxu1 %v9772_v14  ;;  %5332 = vmatprep.mubr.bf16.mxu0 %v5000_v29  ;;  %v4900_v14 = vrot.slane %v9142_v52, 7  ;;  %v4918_v29 = vsel %vm765_vm0, %v4828_v36, %v4846_v21  ;;  %v11901_v21 = vld [vmem:[#allocation4_spill] sm:$0xff]  ;;  %v4867_v36 = vrot.slane %v4783_v61, 5  ;;  %v11902_v8 = vld [vmem:[#allocation11_spill] sm:$0xff]  ;;  %v4905_v47 = vrot.slane %v10007_v57, 7 }
 0x1bc   : > { %7679 = vmatpush3.bf16.msra.mxu1 %v8491_v32  ;;  %7975 = vmatpush3.bf16.msra.mxu0 %v8492_v17  ;;  %v1501_v32 = vsel %vm765_vm0, %v1168_v46, %v1397_v10  ;;  %v4855_v17 = vrot.slane %v9329_v63, 5  ;;  %v1340_v33 = vor.u32 %v1311_v24, %v11901_v21  ;;  %v1313_v46 = vrot.slane %v11902_v8, 1  ;;  %v8498_v10 = vld [vmem:[%s11725_s3 + $0x30] sm:$0xff]   ;;  %v11903_v61 = vld [vmem:[#allocation3_spill] sm:$0xff] }
 0x1bd   : > { %2959 = vmatprep.mubr.bf16.mxu1 %v9828_v54  ;;  %7680 = vmatprep.subr.bf16.mxu1 %v8493_v56  ;;  %v4868_v54 = vrot.slane %v10072_v11, 5  ;;  %v4965_v56 = vsel %vm1281_vm2, %v4918_v29, %v4884_v55  ;;  %v4975_v24 = vsel %vm1281_vm2, %v4933_v22, %v4889_v2  ;;  %v10108_v55 = vrot.slane %v11903_v61, 1 }
 0x1be   : > { %7976 = vmatprep.subr.bf16.mxu0 %v8494_v44  ;;  %v1601_v44 = vsel %vm1281_vm2, %v1501_v32, %v1430_v23  ;;  %v1405_v29 = vrot.slane %v1175_v60, 1  ;;  %v4997_v57 = vsel %vm1670_vm3, %v4965_v56, %v4900_v14  ;;  %v1465_v2 = vrot.slane %v1340_v33, 3  ;;  %v8500_v14 = vld [vmem:[%s11725_s3 + $0x38] sm:$0xff]  }
 0x1bf   : > { %v4832_v23 = vrot.slane %v9301_v19, 4  ;;  %v4869_v22 = vsel %vm2096_vm6, %v4867_v36, %v4868_v54  ;;  %v4888_v32 = vrot.slane %v9329_v63, 6  ;;  %v8501_v54 = vld [vmem:[%s11725_s3 + $0xc0] sm:$0xff]  }
 0x1c0   : > { %7681 = vmatpush3.bf16.msra.mxu1 %v8495_v12  ;;  %7977 = vmatpush3.bf16.msra.mxu0 %v8496_v5  ;;  %v4856_v12 = vsel %vm2096_vm6, %v4854_v35, %v4855_v17  ;;  %v1314_v5 = vsel %vm1310_vm5, %v1175_v60, %v1313_v46  ;;  %v1429_v35 = vrot.slane %v11903_v61, 2  ;;  %v4837_v17 = vrot.slane %v4708_v49, 4 }
 0x1c1   : > { %7682 = vmatprep.subr.bf16.mxu1 %v8497_v25  ;;  %v5012_v25 = vsel %vm1670_vm3, %v4975_v24, %v4905_v47  ;;  %v1675_v53 = vsel %vm1670_vm3, %v1601_v44, %v1465_v2  ;;  %v4930_v33 = vsel %vm765_vm0, %v4832_v23, %v4856_v12  ;;  %v1439_v36 = vrot.slane %v1314_v5, 2  ;;  %v11905_v47 = vld [vmem:[#allocation26_spill] sm:$0xff] }
 0x1c2   : > { %v4945_v56 = vsel %vm765_vm0, %v4837_v17, %v4869_v22  ;;  %v1526_v49 = vsel %vm765_vm0, %v1175_v60, %v1405_v29  ;;  %v1182_v24 = vor.u32 %v1181_v9, %v11905_v47  ;;  %v4904_v44 = vrot.slane %v9329_v63, 7  ;;  %v11906_v12 = vld [vmem:[#allocation2_spill] sm:$0xff]  ;;  %v11908_v60 = vld [vmem:[#allocation24_spill] sm:$0xff] }
 0x1c3   : > { %5333 = vmatmul.mubr.bf16.vlgmr.msra.gmra.mrb[120].mxu0 %v4997_v57  ;;  %2960 = vmatmul.mubr.bf16.gmra.mrb[44].mxu1 %v9849_v58  ;;  %v1498_v58 = vsel %vm765_vm0, %v11903_v61, %v10108_v55  ;;  %v10140_v57 = vrot.slane %v11906_v12, 3  ;;  %v4973_v2 = vsel %vm1281_vm2, %v4930_v33, %v4888_v32  ;;  %v4864_v22 = vrot.slane %v11897_v40, 5  ;;  %v8502_v9 = vld [vmem:[%s11725_s3 + $0x80] sm:$0xff]   ;;  %v8503_v32 = vld [vmem:[%s11725_s3 + $0xc8] sm:$0xff]  }
 0x1c4   : > { %7683 = vmatpush3.bf16.msra.mxu1 %v8498_v10  ;;  %5340 = vmatprep.mubr.bf16.mxu0 %v5012_v25  ;;  %v4865_v10 = vrot.slane %v9508_v15, 5  ;;  %v1599_v23 = vsel %vm1281_vm2, %v1498_v58, %v1429_v35  ;;  %v1315_v29 = vrot.slane %v11908_v60, 1  ;;  %v4909_v25 = vrot.slane %v10072_v11, 7 }
 0x1c5   : > { %3432 = vmatprep.mubr.bf16.mxu1 %v1675_v53  ;;  %7684 = vmatprep.subr.bf16.mxu1 %v8499_v59  ;;  %v4893_v53 = vrot.slane %v10072_v11, 6  ;;  %v11907_v59 = vld [vmem:[#allocation12_spill] sm:$0xff]  ;;  %v1619_v19 = vsel %vm1281_vm2, %v1526_v49, %v1439_v36  ;;  %v1413_v33 = vrot.slane %v1182_v24, 1  ;;  %v1188_v58 = vrot.slane %v9573_v45, 1 }
 0x1c6   : > { %v1341_v5 = vor.u32 %v1313_v46, %v11907_v59  ;;  %v11909_v46 = vld [vmem:[#allocation10_spill] sm:$0xff]  ;;  %v4866_v35 = vsel %vm2096_vm6, %v4864_v22, %v4865_v10  ;;  %v5009_v11 = vsel %vm1670_vm3, %v4973_v2, %v4904_v44  ;;  %v1672_v36 = vsel %vm1670_vm3, %v1599_v23, %v10140_v57  ;;  %v8504_v44 = vld [vmem:[%s11725_s3 + $0x88] sm:$0xff]   ;;  %v8505_v22 = vld [vmem:[%s11725_s3 + $0xd0] sm:$0xff]  }
 0x1c7   : > { %v4983_v17 = vsel %vm1281_vm2, %v4945_v56, %v4893_v53  ;;  %v10155_v20 = vrot.slane %v11909_v46, 1  ;;  %v4836_v49 = vrot.slane %v11897_v40, 4  ;;  %v1438_v53 = vrot.slane %v11909_v46, 2 }
 0x1c8   : > { %7685 = vmatpush3.bf16.msra.mxu1 %v8500_v14  ;;  %v1316_v14 = vsel %vm1310_vm5, %v1182_v24, %v1315_v29  ;;  %v1473_v56 = vrot.slane %v1341_v5, 3 }
 0x1c9   : > { %7710 = vmatprep.subr.bf16.mxu1 %v8501_v54  ;;  %v5024_v54 = vsel %vm1670_vm3, %v4983_v17, %v4909_v25  ;;  %v4942_v2 = vsel %vm765_vm0, %v4836_v49, %v4866_v35  ;;  %v1523_v5 = vsel %vm765_vm0, %v11909_v46, %v10155_v20  ;;  %v1448_v23 = vrot.slane %v1316_v14, 2  ;;  %v11912_v49 = vld [vmem:[#allocation37_spill] sm:$0xff] }
 0x1ca   : > { %v1702_v10 = vsel %vm1670_vm3, %v1619_v19, %v1473_v56  ;;  %v11910_v19 = vld [vmem:[#allocation25_spill] sm:$0xff]  ;;  %v1551_v17 = vsel %vm765_vm0, %v1182_v24, %v1413_v33  ;;  %v1617_v56 = vsel %vm1281_vm2, %v1523_v5, %v1438_v53  ;;  %v1317_v14 = vrot.slane %v11912_v49, 1  ;;  %v11914_v33 = vld [vmem:[#allocation23_spill] sm:$0xff] }
 0x1cb   : > { %5341 = vmatmul.mubr.bf16.gmra.mrb[124].mxu0 %v5009_v11  ;;  %3433 = vmatmul.mubr.bf16.vlgmr.msra.gmra.mrb[48].mxu1 %v1672_v36  ;;  %v1342_v25 = vor.u32 %v1315_v29, %v11910_v19  ;;  %v11911_v11 = vld [vmem:[#allocation39_spill] sm:$0xff]  ;;  %v8506_v29 = vld [vmem:[%s11725_s3 + $0x90] sm:$0xff]   ;;  %v1637_v24 = vsel %vm1281_vm2, %v1551_v17, %v1448_v23  ;;  %v8507_v53 = vld [vmem:[%s11725_s3 + $0xd8] sm:$0xff]   ;;  %v1447_v17 = vrot.slane %v11914_v33, 2 }
 0x1cc   : > { %7711 = vmatpush3.bf16.msra.mxu1 %v8502_v9  ;;  %5348 = vmatprep.mubr.bf16.mxu0 %v5024_v54  ;;  %v4892_v9 = vrot.slane %v9508_v15, 6  ;;  %v1189_v36 = vor.u32 %v1188_v58, %v11911_v11  ;;  %v11913_v54 = vld [vmem:[#allocation9_spill] sm:$0xff]  ;;  %v10196_v58 = vrot.slane %v11914_v33, 1 }
 0x1cd   : > { %3440 = vmatprep.mubr.bf16.mxu1 %v1702_v10  ;;  %7712 = vmatprep.subr.bf16.mxu1 %v8503_v32  ;;  %v4908_v32 = vrot.slane %v9508_v15, 7  ;;  %v10189_v10 = vrot.slane %v11913_v54, 3 }
 0x1ce   : > { %v4981_v35 = vsel %vm1281_vm2, %v4942_v2, %v4892_v9  ;;  %v1481_v2 = vrot.slane %v1342_v25, 3  ;;  %v1421_v5 = vrot.slane %v1189_v36, 1  ;;  %v1548_v25 = vsel %vm765_vm0, %v11914_v33, %v10196_v58 }
 0x1cf   : > { %v5021_v9 = vsel %vm1670_vm3, %v4981_v35, %v4908_v32  ;;  %v1699_v40 = vsel %vm1670_vm3, %v1617_v56, %v10189_v10  ;;  %v11915_v56 = vld [vmem:[#allocation38_spill] sm:$0xff] }
 0x1d0   : > { %7713 = vmatpush3.bf16.msra.mxu1 %v8504_v44  ;;  %v1318_v44 = vsel %vm1310_vm5, %v1189_v36, %v1317_v14  ;;  %v1729_v23 = vsel %vm1670_vm3, %v1637_v24, %v1481_v2  ;;  %v1343_v24 = vor.u32 %v1317_v14, %v11915_v56  ;;  %v1198_v2 = vrot.slane %v11903_v61, 3 }
 0x1d1   : > { %7714 = vmatprep.subr.bf16.mxu1 %v8505_v22  ;;  %v8508_v22 = vld [vmem:[%s11725_s3 + $0x98] sm:$0xff]   ;;  %v1457_v35 = vrot.slane %v1318_v44, 2  ;;  %v10226_v14 = vrot.slane %v11919_v28, 3 }
 0x1d3   : > { %5349 = vmatmul.mubr.bf16.gmra.mrb[128].mxu0 %v5021_v9  ;;  %3441 = vmatmul.mubr.bf16.gmra.mrb[52].mxu1 %v1699_v40  ;;  %v8509_v40 = vld [vmem:[%s11725_s3 + $0xe0] sm:$0xff]  }
 0x1d4   : > { %7715 = vmatpush3.bf16.msra.mxu1 %v8506_v29  ;;  %3448 = vmatprep.mubr.bf16.mxu1 %v1729_v23  ;;  %v7766_v32 = vpop.f32.mrb[80].mxu0  ;;  %v1576_v29 = vsel %vm765_vm0, %v1189_v36, %v1421_v5  ;;  %v11916_v23 = vld [vmem:[#allocation8_spill] sm:$0xff]  ;;  %v8510_v36 = vld [vmem:[%s11725_s3 + $0xa0] sm:$0xff]  }
 0x1d5   : > { %7716 = vmatprep.subr.bf16.mxu1 %v8507_v53  ;;  %v7767_v9 = vpop.f32.mrb[81].mxu0  ;;  %v4797_v42 = vshrl.u32 %v11916_v23, 16  ;;  %v4800_v41 = vshll.u32 %v11916_v23, 16  ;;  %v1635_v53 = vsel %vm1281_vm2, %v1548_v25, %v1447_v17  ;;  %v1655_v5 = vsel %vm1281_vm2, %v1576_v29, %v1457_v35 }
 0x1d6   : > { %v10221_v16 = vadd.f32 %v7767_v9, %v7766_v32  ;;  %v7769_v44 = vpop.f32.mrb[82].mxu0  ;;  %v10233_v23 = vrot.slane %v11920_v34, 1  ;;  %v4808_v32 = vshll.u32 %v11918_v3, 16  ;;  %v1489_v17 = vrot.slane %v1343_v24, 3 }
 0x1d7   : > { %v7770_v27 = vpop.f32.mrb[83].mxu0  ;;  %v1399_v25 = vrot.slane %v1198_v2, 1  ;;  %v1726_v39 = vsel %vm1670_vm3, %v1635_v53, %v10226_v14  ;;  %v10248_v24 = vrot.slane %v4797_v42, 3  ;;  %v1199_v35 = vrot.slane %v11909_v46, 3  ;;  %v8513_v42 = vld [vmem:[%s11725_s3 + $0xf0] sm:$0xff]  }
 0x1d8   : > { %11917 = vst [vmem:[#allocation14_spill] sm:$0xff] %v10221_v16  ;;  %7717 = vmatpush3.bf16.msra.mxu1 %v8508_v22  ;;  %v10236_v9 = vadd.f32 %v7770_v27, %v7769_v44  ;;  %v8511_v22 = vld [vmem:[%s11725_s3 + $0xe8] sm:$0xff]   ;;  %v11922_v16 = vld [vmem:[#allocation34_spill] sm:$0xff]  ;;  %v1756_v27 = vsel %vm1670_vm3, %v1655_v5, %v1489_v17  ;;  %v1573_v53 = vsel %vm765_vm0, %v11920_v34, %v10233_v23  ;;  %v10261_v5 = vrot.slane %v4808_v32, 4 }
 0x1d9   : > { %7718 = vmatprep.subr.bf16.mxu1 %v8509_v40  ;;  %v4813_v38 = vshrl.u32 %v11922_v16, 16  ;;  %v4816_v29 = vshll.u32 %v11922_v16, 16  ;;  %v1456_v40 = vrot.slane %v11920_v34, 2  ;;  %11923 = vst [vmem:[#allocation4_spill] sm:$0xff] %v10248_v24  ;;  %v8512_v44 = vld [vmem:[%s11725_s3 + $0xa8] sm:$0xff]   ;;  %v1432_v16 = vrot.slane %v10140_v57, 2 }
 0x1da   : > { %11921 = vst [vmem:[#allocation13_spill] sm:$0xff] %v10236_v9  ;;  %v10257_v9 = vrot.slane %v4800_v41, 4  ;;  %11926 = vst [vmem:[#allocation27_spill] sm:$0xff] %v10261_v5  ;;  %v11928_v3 = vrot.slane %v11906_v12, 1  ;;  %v1398_v41 = vrot.slane %v10108_v55, 1  ;;  %v1467_v5 = vrot.slane %v10140_v57, 3 }
 0x1db   : > { %3449 = vmatmul.mubr.bf16.gmra.mrb[56].mxu1 %v1726_v39  ;;  %v10259_v39 = vrot.slane %v4805_v4, 3  ;;  %v10267_v17 = vrot.slane %v4813_v38, 3  ;;  %v10275_v32 = vrot.slane %v4816_v29, 4  ;;  %v1653_v38 = vsel %vm1281_vm2, %v1573_v53, %v1456_v40  ;;  %v8515_v40 = vld [vmem:[%s11725_s3 + $0xf8] sm:$0xff]  }
 0x1dc   : > { %7719 = vmatpush3.bf16.msra.mxu1 %v8510_v36  ;;  %3456 = vmatprep.mubr.bf16.mxu1 %v1756_v27  ;;  %11924 = vst [vmem:[#allocation11_spill] sm:$0xff] %v10257_v9  ;;  %v1506_v36 = vsel %vm765_vm0, %v1198_v2, %v1399_v25  ;;  %v7566_v27 = vpop.f32.mrb[0].mxu1  ;;  %v1321_v4 = vsel %vm1319_vm9, %v10108_v55, %v11928_v3  ;;  %v8514_v3 = vld [vmem:[%s11725_s3 + $0xb0] sm:$0xff]   ;;  %v1322_v53 = vrot.slane %v11913_v54, 1  ;;  %v11933_v57 = vshrl.u32 %v9142_v52, 16 }
 0x1dd   : > { %11925 = vst [vmem:[#allocation3_spill] sm:$0xff] %v10259_v39  ;;  %7720 = vmatprep.subr.bf16.mxu1 %v8511_v22  ;;  %11927 = vst [vmem:[#allocation26_spill] sm:$0xff] %v10267_v17  ;;  %v10278_v22 = vshrl.u32 %v9687_v62, 16  ;;  %v7567_v2 = vpop.f32.mrb[1].mxu1  ;;  %v11931_v39 = vld [vmem:[#allocation35_spill] sm:$0xff]  ;;  %v1605_v29 = vsel %vm1281_vm2, %v1506_v36, %v1432_v16 }
 0x1de   : > { %11929 = vst [vmem:[#allocation2_spill] sm:$0xff] %v10275_v32  ;;  %v10282_v25 = vadd.f32 %v7567_v2, %v7566_v27  ;;  %v7569_v17 = vpop.f32.mrb[2].mxu1  ;;  %v10285_v9 = vrot.slane %v11931_v39, 3  ;;  %v1407_v32 = vrot.slane %v1199_v35, 1  ;;  %v1200_v27 = vrot.slane %v11914_v33, 3 }
 0x1df   : > { %v7570_v24 = vpop.f32.mrb[3].mxu1  ;;  %v4821_v2 = vshrl.u32 %v10010_v51, 16  ;;  %v10306_v36 = vrot.slane %v11933_v57, 3  ;;  %v1681_v43 = vsel %vm1670_vm3, %v1605_v29, %v1467_v5  ;;  %v8517_v5 = vld [vmem:[%s11725_s3 + $0x1c0] sm:$0xff]  }
 0x1e0   : > { %11930 = vst [vmem:[#allocation12_spill] sm:$0xff] %v10282_v25  ;;  %7721 = vmatpush3.bf16.msra.mxu1 %v8512_v44  ;;  %v1431_v44 = vrot.slane %v1321_v4, 2  ;;  %v10298_v25 = vadd.f32 %v7570_v24, %v7569_v17  ;;  %v1753_v16 = vsel %vm1670_vm3, %v1653_v38, %v10285_v9  ;;  %v4824_v4 = vshll.u32 %v10010_v51, 16 }
 0x1e1   : > { %7722 = vmatprep.subr.bf16.mxu1 %v8513_v42  ;;  %v1503_v42 = vsel %vm765_vm0, %v10108_v55, %v1398_v41  ;;  %v11934_v24 = vshrl.u32 %v9329_v63, 16  ;;  %v8516_v55 = vld [vmem:[%s11725_s3 + $0xb8] sm:$0xff]   ;;  %v1441_v41 = vrot.slane %v10189_v10, 2  ;;  %v1531_v38 = vsel %vm765_vm0, %v1199_v35, %v1407_v32 }
 0x1e2   : > { %11932 = vst [vmem:[#allocation24_spill] sm:$0xff] %v10298_v25  ;;  %v1603_v29 = vsel %vm1281_vm2, %v1503_v42, %v1431_v44  ;;  %v1415_v57 = vrot.slane %v1200_v27, 1  ;;  %v10332_v35 = vrot.slane %v4821_v2, 3  ;;  %v11939_v32 = vrot.slane %v11906_v12, 1  ;;  %v8518_v2 = vld [vmem:[%s11725_s3 + $0x180] sm:$0xff]  }
 0x1e3   : > { %3457 = vmatmul.mubr.bf16.gmra.mrb[60].mxu1 %v1753_v16  ;;  %v10313_v17 = vrot.slane %v11934_v24, 3  ;;  %v1201_v16 = vrot.slane %v11920_v34, 3  ;;  %v11936_v24 = vshrl.u32 %v9508_v15, 16  ;;  %v1414_v51 = vrot.slane %v10196_v58, 1 }
 0x1e4   : > { %7723 = vmatpush3.bf16.msra.mxu1 %v8514_v3  ;;  %3497 = vmatprep.mubr.bf16.mxu1 %v1681_v43  ;;  %v1323_v43 = vsel %vm1319_vm9, %v10155_v20, %v1322_v53  ;;  %v1406_v3 = vrot.slane %v10155_v20, 1  ;;  %11938 = vst [vmem:[#allocation39_spill] sm:$0xff] %v10332_v35  ;;  %v1623_v44 = vsel %vm1281_vm2, %v1531_v38, %v1441_v41  ;;  %v1474_v41 = vrot.slane %v1322_v53, 3 }
 0x1e5   : > { %11935 = vst [vmem:[#allocation10_spill] sm:$0xff] %v10313_v17  ;;  %7724 = vmatprep.subr.bf16.mxu1 %v8515_v40  ;;  %v10330_v25 = vrot.slane %v11936_v24, 3  ;;  %v1466_v40 = vrot.slane %v11939_v32, 3  ;;  %v10337_v17 = vrot.slane %v4824_v4, 4  ;;  %v1325_v42 = vsel %vm1319_vm9, %v10196_v58, %v1324_v7  ;;  %v8519_v4 = vld [vmem:[%s11725_s3 + $0x1c8] sm:$0xff]  }
 0x1e6   : > { %v1475_v32 = vrot.slane %v10189_v10, 3  ;;  %v1440_v35 = vrot.slane %v1323_v43, 2  ;;  %v1528_v38 = vsel %vm765_vm0, %v10155_v20, %v1406_v3  ;;  %v1483_v63 = vrot.slane %v10226_v14, 3 }
 0x1e7   : > { %11937 = vst [vmem:[#allocation25_spill] sm:$0xff] %v10330_v25  ;;  %v1678_v24 = vsel %vm1670_vm3, %v1603_v29, %v1466_v40  ;;  %v1423_v25 = vrot.slane %v1201_v16, 1  ;;  %v1556_v29 = vsel %vm765_vm0, %v1200_v27, %v1415_v57  ;;  %v1449_v10 = vrot.slane %v1325_v42, 2 }
 0x1e8   : > { %7725 = vmatpush3.bf16.msra.mxu1 %v8516_v55  ;;  %v1450_v55 = vrot.slane %v10226_v14, 2  ;;  %v1708_v40 = vsel %vm1670_vm3, %v1623_v44, %v1475_v32  ;;  %v11940_v43 = vrot.slane %v11931_v39, 1  ;;  %v1422_v20 = vrot.slane %v10233_v23, 1  ;;  %v8520_v14 = vld [vmem:[%s11725_s3 + $0x188] sm:$0xff]   ;;  %v11942_v32 = vld [vmem:[#allocation5_spill] sm:$0xff] }
 0x1e9   : > { %7790 = vmatprep.subr.bf16.mxu1 %v8517_v5  ;;  %v1553_v5 = vsel %vm765_vm0, %v10196_v58, %v1414_v51  ;;  %v1223_v3 = vrot.slane %v9007_v30, 6  ;;  %v1224_v27 = vrot.slane %v9010_v31, 7  ;;  %v1621_v51 = vsel %vm1281_vm2, %v1528_v38, %v1440_v35  ;;  %v8521_v30 = vld [vmem:[%s11725_s3 + $0x1d0] sm:$0xff]  }
 0x1ea   : > { %v1327_v53 = vsel %vm1319_vm9, %v10233_v23, %v11940_v43  ;;  %v1641_v58 = vsel %vm1281_vm2, %v1556_v29, %v1450_v55  ;;  %v1459_v57 = vrot.slane %v10285_v9, 2  ;;  %v1581_v44 = vsel %vm765_vm0, %v1201_v16, %v1423_v25 }
 0x1eb   : > { %3498 = vmatmul.mubr.bf16.vlgmr.msra.gmra.mrb[64].mxu1 %v1678_v24  ;;  %v1229_v31 = vrot.slane %v9000_v26, 7  ;;  %v1296_v42 = vrot.slane %v11901_v21, 6  ;;  %v11941_v24 = vld [vmem:[#allocation6_spill] sm:$0xff]  ;;  %v1482_v38 = vrot.slane %v1324_v7, 3  ;;  %v1639_v55 = vsel %vm1281_vm2, %v1553_v5, %v1449_v10  ;;  %v8522_v7 = vld [vmem:[%s11725_s3 + $0x190] sm:$0xff]  }
 0x1ec   : > { %7791 = vmatpush3.bf16.msra.mxu1 %v8518_v2  ;;  %3505 = vmatprep.mubr.bf16.mxu1 %v1708_v40  ;;  %v1360_v2 = vrot.slane %v11941_v24, 6  ;;  %v11943_v40 = vshll.u32 %v11942_v32, 16  ;;  %v1491_v29 = vrot.slane %v10285_v9, 3  ;;  %v1458_v25 = vrot.slane %v1327_v53, 2 }
 0x1ed   : > { %7792 = vmatprep.subr.bf16.mxu1 %v8519_v4  ;;  %v1659_v16 = vsel %vm1281_vm2, %v1581_v44, %v1459_v57  ;;  %v1578_v4 = vsel %vm765_vm0, %v10233_v23, %v1422_v20  ;;  %v1225_v43 = vor.u32 %v1224_v27, %v1223_v3  ;;  %v1349_v26 = vrot.slane %v11942_v32, 6  ;;  %v8523_v23 = vld [vmem:[%s11725_s3 + $0x1d8] sm:$0xff]  }
 0x1ee   : > { %v1363_v35 = vrot.slane %v11943_v40, 7  ;;  %v1705_v21 = vsel %vm1670_vm3, %v1621_v51, %v1474_v41  ;;  %v1735_v10 = vsel %vm1670_vm3, %v1641_v58, %v1483_v63  ;;  %v10393_v9 = vrot.slane %v11906_v12, 6  ;;  %v8524_v44 = vld [vmem:[%s11725_s3 + $0x198] sm:$0xff]  }
 0x1ef   : > { %v1732_v5 = vsel %vm1670_vm3, %v1639_v55, %v1482_v38  ;;  %v10399_v53 = vor.u32 %v1296_v42, %v1229_v31  ;;  %v4712_v20 = vshll.u32 %v9687_v62, 16  ;;  %v1762_v3 = vsel %vm1670_vm3, %v1659_v16, %v1491_v29 }
 0x1f0   : > { %7793 = vmatpush3.bf16.msra.mxu1 %v8520_v14  ;;  %v1364_v41 = vor.u32 %v1363_v35, %v1360_v2  ;;  %v10404_v63 = vsel %vm1281_vm2, %v1578_v4, %v1458_v25  ;;  %v1218_v12 = vrot.slane %v11903_v61, 6  ;;  %v11832_v27 = vshll.u32 %v10025_v37, 16  ;;  %v8525_v2 = vld [vmem:[%s11725_s3 + $0x1e0] sm:$0xff]  }
 0x1f1   : > { %7794 = vmatprep.subr.bf16.mxu1 %v8521_v30  ;;  %v1230_v14 = vsel %vm1222_vm10, %v1225_v43, %v1229_v31  ;;  %v10411_v51 = vsel %vm765_vm0, %v10393_v9, %v1349_v26  ;;  %v4714_v58 = vrot.slane %v4712_v20, 1  ;;  %v4768_v57 = vshrl.u32 %v10025_v37, 16 }
 0x1f2   : > { %v1402_v61 = vrot.slane %v10393_v9, 1  ;;  %v1435_v30 = vrot.slane %v10393_v9, 2  ;;  %v1231_v24 = vrot.slane %v11900_v48, 6  ;;  %v4785_v31 = vrot.slane %v11832_v27, 1  ;;  %v11944_v9 = vld [vmem:[#allocation16_spill] sm:$0xff] }
 0x1f3   : > { %3506 = vmatmul.mubr.bf16.gmra.mrb[68].mxu1 %v1705_v21  ;;  %v10426_v32 = vsel %vm1222_vm10, %v1296_v42, %v1364_v41  ;;  %v1403_v40 = vrot.slane %v10399_v53, 1  ;;  %v1436_v35 = vrot.slane %v10399_v53, 2  ;;  %v1232_v38 = vrot.slane %v11899_v0, 7  ;;  %v8526_v0 = vld [vmem:[%s11725_s3 + $0x1a0] sm:$0xff]   ;;  %v11945_v53 = vld [vmem:[#allocation15_spill] sm:$0xff] }
 0x1f4   : > { %7795 = vmatpush3.bf16.msra.mxu1 %v8522_v7  ;;  %3513 = vmatprep.mubr.bf16.mxu1 %v1735_v10  ;;  %v1470_v55 = vrot.slane %v10411_v51, 3  ;;  %v1237_v48 = vrot.slane %v11902_v8, 7  ;;  %v4715_v29 = vor.u32 %v4714_v58, %v10278_v22  ;;  %v4786_v25 = vsel %vm1310_vm5, %v10278_v22, %v4785_v31  ;;  %v8527_v10 = vld [vmem:[%s11725_s3 + $0x1e8] sm:$0xff]  }
 0x1f5   : > { %7796 = vmatprep.subr.bf16.mxu1 %v8523_v23  ;;  %v4787_v16 = vor.u32 %v4785_v31, %v4768_v57  ;;  %v4877_v42 = vrot.slane %v4786_v25, 5  ;;  %v4840_v4 = vrot.slane %v9687_v62, 4  ;;  %v4874_v43 = vrot.slane %v9687_v62, 5 }
 0x1f6   : > { %v1300_v8 = vrot.slane %v11907_v59, 6  ;;  %v4841_v26 = vrot.slane %v4715_v29, 4  ;;  %v4875_v21 = vrot.slane %v10025_v37, 5  ;;  %v4896_v7 = vrot.slane %v10025_v37, 6 }
 0x1f7   : > { %v1369_v23 = vrot.slane %v11944_v9, 6  ;;  %v11946_v41 = vshll.u32 %v11945_v53, 16  ;;  %v4878_v51 = vrot.slane %v4787_v16, 5  ;;  %v4897_v58 = vrot.slane %v4787_v16, 6 }
 0x1f8   : > { %7797 = vmatpush3.bf16.msra.mxu1 %v8524_v44  ;;  %v1515_v44 = vsel %vm765_vm0, %v1218_v12, %v1402_v61  ;;  %v4913_v59 = vrot.slane %v4787_v16, 7  ;;  %v4876_v31 = vsel %vm2096_vm6, %v4874_v43, %v4875_v21  ;;  %v4912_v29 = vrot.slane %v10025_v37, 7 }
 0x1f9   : > { %7798 = vmatprep.subr.bf16.mxu1 %v8525_v2  ;;  %v1372_v20 = vrot.slane %v11946_v41, 7  ;;  %v1518_v2 = vsel %vm765_vm0, %v1230_v14, %v1403_v40  ;;  %v1233_v25 = vor.u32 %v1232_v38, %v1231_v24  ;;  %v4879_v27 = vsel %vm2096_vm6, %v4877_v42, %v4878_v51  ;;  %v8528_v41 = vld [vmem:[%s11725_s3 + $0x1a8] sm:$0xff]   ;;  %v8529_v40 = vld [vmem:[%s11725_s3 + $0x1f0] sm:$0xff]  }
 0x1fa   : > { %v4954_v9 = vsel %vm765_vm0, %v4840_v4, %v4876_v31  ;;  %v11947_v12 = vrot.slane %v11931_v39, 1  ;;  %v10463_v16 = vor.u32 %v1300_v8, %v1237_v48  ;;  %v10471_v38 = vrot.slane %v11913_v54, 6 }
 0x1fb   : > { %3514 = vmatmul.mubr.bf16.gmra.mrb[72].mxu1 %v1732_v5  ;;  %v4957_v5 = vsel %vm765_vm0, %v4841_v26, %v4879_v27  ;;  %v4989_v14 = vsel %vm1281_vm2, %v4954_v9, %v4896_v7  ;;  %v1611_v27 = vsel %vm1281_vm2, %v1515_v44, %v1435_v30  ;;  %v1351_v26 = vrot.slane %v11945_v53, 6  ;;  %v8530_v30 = vld [vmem:[%s11725_s3 + $0x1b0] sm:$0xff]  }
 0x1fc   : > { %7799 = vmatpush3.bf16.msra.mxu1 %v8526_v0  ;;  %3521 = vmatprep.mubr.bf16.mxu1 %v1762_v3  ;;  %v1490_v61 = vrot.slane %v11947_v12, 3  ;;  %v7772_v24 = vpop.f32.mrb[84].mxu0  ;;  %v1373_v3 = vor.u32 %v1372_v20, %v1369_v23  ;;  %v4991_v42 = vsel %vm1281_vm2, %v4957_v5, %v4897_v58  ;;  %v5033_v4 = vsel %vm1670_vm3, %v4989_v14, %v4912_v29 }
 0x1fd   : > { %7800 = vmatprep.subr.bf16.mxu1 %v8527_v10  ;;  %v7773_v43 = vpop.f32.mrb[85].mxu0  ;;  %v1471_v0 = vrot.slane %v10426_v32, 3  ;;  %v5036_v21 = vsel %vm1670_vm3, %v4991_v42, %v4913_v59  ;;  %v1613_v23 = vsel %vm1281_vm2, %v1518_v2, %v1436_v35  ;;  %v10485_v20 = vsel %vm1670_vm3, %v1611_v27, %v1470_v55  ;;  %v8531_v55 = vld [vmem:[%s11725_s3 + $0x1f8] sm:$0xff]  }
 0x1fe   : > { %v10479_v7 = vadd.f32 %v7773_v43, %v7772_v24  ;;  %v7775_v10 = vpop.f32.mrb[86].mxu0  ;;  %v1759_v54 = vsel %vm1670_vm3, %v10404_v63, %v1490_v61  ;;  %5356 = vmatprep.mubr.bf16.mxu0 %v5036_v21  ;;  %v1238_v53 = vsel %vm1222_vm10, %v1233_v25, %v1237_v48  ;;  %v1411_v51 = vrot.slane %v10463_v16, 1  ;;  %v8532_v61 = vld [vmem:[%s11725_s3 + $0x1b8] sm:$0xff]  }
 0x1ff   : > { %v7776_v32 = vpop.f32.mrb[87].mxu0  ;;  %v1219_v58 = vrot.slane %v11909_v46, 6  ;;  %v1239_v63 = vrot.slane %v11905_v47, 6  ;;  %5357 = vmatmul.mubr.bf16.gmra.mrb[132].mxu0 %v5033_v4  ;;  %v1374_v44 = vsel %vm1222_vm10, %v1300_v8, %v1373_v3  ;;  %v1410_v59 = vrot.slane %v10471_v38, 1  ;;  %v11948_v8 = vld [vmem:[#allocation30_spill] sm:$0xff] }
 0x200   : > { %7801 = vmatpush3.bf16.msra.mxu1 %v8528_v41  ;;  %v10494_v35 = vadd.f32 %v7776_v32, %v7775_v10  ;;  %v1240_v48 = vrot.slane %v11904_v13, 7  ;;  %v1693_v31 = vsel %vm1670_vm3, %v1613_v23, %v1471_v0  ;;  %v1445_v46 = vrot.slane %v10463_v16, 2  ;;  %v11949_v41 = vld [vmem:[#allocation29_spill] sm:$0xff] }
 0x201   : > { %7802 = vmatprep.subr.bf16.mxu1 %v8529_v40  ;;  %v10506_v47 = vsel %vm765_vm0, %v10471_v38, %v1351_v26  ;;  %v1444_v29 = vrot.slane %v10471_v38, 2  ;;  %v1245_v2 = vrot.slane %v11908_v60, 7  ;;  %v1304_v25 = vrot.slane %v11910_v19, 6  ;;  %v8533_v19 = vld [vmem:[%s11725_s3 + $0x400] sm:$0xff]  }
 0x202   : > { %v1378_v9 = vrot.slane %v11948_v8, 6  ;;  %v11950_v12 = vshll.u32 %v11949_v41, 16  ;;  %v1479_v16 = vrot.slane %v1374_v44, 3  ;;  %v1543_v5 = vsel %vm765_vm0, %v1238_v53, %v1411_v51  ;;  %v8535_v53 = vld [vmem:[%s11725_s3 + $0x408] sm:$0xff]  }
 0x203   : > { %3522 = vmatmul.mubr.bf16.gmra.mrb[76].mxu1 %v1759_v54  ;;  %v1253_v14 = vrot.slane %v11912_v49, 7  ;;  %v1308_v60 = vrot.slane %v11915_v56, 6  ;;  %v1540_v24 = vsel %vm765_vm0, %v1219_v58, %v1410_v59  ;;  %v1241_v40 = vor.u32 %v1240_v48, %v1239_v63 }
 0x204   : > { %v1381_v13 = vrot.slane %v11950_v12, 7  ;;  %7803 = vmatpush3.bf16.msra.mxu1 %v8530_v30  ;;  %3627 = vmatprep.mubr.bf16.mxu1 %v1693_v31  ;;  %v1247_v3 = vrot.slane %v11911_v11, 6  ;;  %v1248_v38 = vrot.slane %v9573_v45, 7  ;;  %v7572_v42 = vpop.f32.mrb[4].mxu1  ;;  %v1478_v4 = vrot.slane %v10506_v47, 3  ;;  %v8540_v47 = vld [vmem:[%s11725_s3 + $0x3d8] sm:$0xff]  }
 0x205   : > { %7804 = vmatprep.subr.bf16.mxu1 %v8531_v55  ;;  %v1292_v43 = vrot.slane %v11919_v28, 6  ;;  %v1387_v49 = vrot.slane %v9611_v1, 6  ;;  %v11951_v56 = vshll.u32 %v9599_v50, 16  ;;  %v7573_v27 = vpop.f32.mrb[5].mxu1  ;;  %v1631_v26 = vsel %vm1281_vm2, %v1543_v5, %v1445_v46  ;;  %v8534_v28 = vld [vmem:[%s11725_s3 + $0x3c0] sm:$0xff]  }
 0x206   : > { %v1305_v21 = vor.u32 %v1304_v25, %v1245_v2  ;;  %v1382_v10 = vor.u32 %v1381_v13, %v1378_v9  ;;  %v1353_v54 = vrot.slane %v11949_v41, 6  ;;  %v10533_v11 = vadd.f32 %v7573_v27, %v7572_v42  ;;  %v7575_v45 = vpop.f32.mrb[6].mxu1 }
 0x207   : > { %v1390_v0 = vrot.slane %v11951_v56, 7  ;;  %v1720_v1 = vsel %vm1670_vm3, %v1631_v26, %v1479_v16  ;;  %v1629_v23 = vsel %vm1281_vm2, %v1540_v24, %v1444_v29  ;;  %v1309_v32 = vor.u32 %v1308_v60, %v1253_v14  ;;  %v7576_v30 = vpop.f32.mrb[7].mxu1  ;;  %v11952_v56 = vld [vmem:[#allocation17_spill] sm:$0xff] }
 0x208   : > { %7805 = vmatpush3.bf16.msra.mxu1 %v8532_v61  ;;  %v1246_v51 = vsel %vm1222_vm10, %v1241_v40, %v1245_v2  ;;  %v1249_v58 = vor.u32 %v1248_v38, %v1247_v3  ;;  %v1293_v63 = vrot.slane %v11931_v39, 6  ;;  %v3728_v55 = vshll.u32 %v9057_v18, 16  ;;  %v8536_v39 = vld [vmem:[%s11725_s3 + $0x3c8] sm:$0xff]  }
 0x209   : > { %7842 = vmatprep.subr.bf16.mxu1 %v8533_v19  ;;  %v10546_v44 = vadd.f32 %v7576_v30, %v7575_v45  ;;  %v1220_v59 = vrot.slane %v11914_v33, 6  ;;  %v1418_v48 = vrot.slane %v1292_v43, 1  ;;  %v1391_v31 = vor.u32 %v1390_v0, %v1387_v49  ;;  %v8539_v0 = vld [vmem:[%s11725_s3 + $0x418] sm:$0xff]  }
 0x20a   : > { %v1383_v46 = vsel %vm1222_vm10, %v1304_v25, %v1382_v10  ;;  %v1419_v29 = vrot.slane %v1305_v21, 1  ;;  %v1354_v8 = vsel %vm765_vm0, %v1292_v43, %v1353_v54  ;;  %v3782_v2 = vshll.u32 %v9106_v6, 16 }
 0x20b   : > { %3628 = vmatmul.mubr.bf16.vlgmr.msra.gmra.mrb[80].mxu1 %v10485_v20  ;;  %v1454_v9 = vrot.slane %v1305_v21, 2  ;;  %v1453_v41 = vrot.slane %v1292_v43, 2  ;;  %v1427_v33 = vrot.slane %v1309_v32, 1  ;;  %v1355_v12 = vrot.slane %v9599_v50, 6  ;;  %v8537_v20 = vld [vmem:[%s11725_s3 + $0x410] sm:$0xff]  }
 0x20c   : > { %7843 = vmatpush3.bf16.msra.mxu1 %v8534_v28  ;;  %3635 = vmatprep.mubr.bf16.mxu1 %v1720_v1  ;;  %v1254_v25 = vsel %vm1222_vm10, %v1249_v58, %v1253_v14  ;;  %v1221_v13 = vrot.slane %v11920_v34, 6  ;;  %v1426_v61 = vrot.slane %v1293_v63, 1  ;;  %v3730_v16 = vrot.slane %v3728_v55, 1  ;;  %v8538_v34 = vld [vmem:[%s11725_s3 + $0x3d0] sm:$0xff]   ;;  %v11953_v1 = vld [vmem:[#allocation19_spill] sm:$0xff] }
 0x20d   : > { %7844 = vmatprep.subr.bf16.mxu1 %v8535_v53  ;;  %v1487_v5 = vrot.slane %v1383_v46, 3  ;;  %v1486_v19 = vrot.slane %v1354_v8, 3  ;;  %v1565_v24 = vsel %vm765_vm0, %v1220_v59, %v1418_v48  ;;  %v1392_v40 = vsel %vm1222_vm10, %v1308_v60, %v1391_v31  ;;  %v8541_v48 = vld [vmem:[%s11725_s3 + $0x420] sm:$0xff]  }
 0x20e   : > { %v1568_v50 = vsel %vm765_vm0, %v1246_v51, %v1419_v29  ;;  %v1463_v3 = vrot.slane %v1309_v32, 2  ;;  %v3726_v38 = vshrl.u32 %v9057_v18, 16  ;;  %v3813_v14 = vrot.slane %v3782_v2, 1  ;;  %v11954_v29 = vld [vmem:[#allocation42_spill] sm:$0xff] }
 0x20f   : > { %v1593_v42 = vsel %vm765_vm0, %v1254_v25, %v1427_v33  ;;  %v1356_v43 = vsel %vm765_vm0, %v1293_v63, %v1355_v12  ;;  %v1462_v49 = vrot.slane %v1293_v63, 2  ;;  %v3735_v60 = vshll.u32 %v11952_v56, 16 }
 0x210   : > { %7845 = vmatpush3.bf16.msra.mxu1 %v8536_v39  ;;  %v1647_v27 = vsel %vm1281_vm2, %v1565_v24, %v1453_v41  ;;  %v1495_v26 = vrot.slane %v1392_v40, 3  ;;  %v1590_v21 = vsel %vm765_vm0, %v1221_v13, %v1426_v61  ;;  %v3731_v10 = vor.u32 %v3730_v16, %v3726_v38  ;;  %v11956_v13 = vld [vmem:[#allocation31_spill] sm:$0xff]  ;;  %v11957_v16 = vld [vmem:[#allocation48_spill] sm:$0xff]  ;;  %v8542_v24 = vld [vmem:[%s11725_s3 + $0x3e0] sm:$0xff]  }
 0x211   : > { %7846 = vmatprep.subr.bf16.mxu1 %v8537_v20  ;;  %v1717_v54 = vsel %vm1670_vm3, %v1629_v23, %v1478_v4  ;;  %v1649_v45 = vsel %vm1281_vm2, %v1568_v50, %v1454_v9  ;;  %v1744_v28 = vsel %vm1670_vm3, %v1647_v27, %v1486_v19  ;;  %v3787_v32 = vshll.u32 %v11953_v1, 16 }
 0x212   : > { %v1747_v30 = vsel %vm1670_vm3, %v1649_v45, %v1487_v5  ;;  %v1667_v53 = vsel %vm1281_vm2, %v1593_v42, %v1463_v3  ;;  %v1494_v51 = vrot.slane %v1356_v43, 3  ;;  %v3814_v58 = vsel %vm1310_vm5, %v3731_v10, %v3813_v14  ;;  %v11958_v3 = vld [vmem:[#allocation33_spill] sm:$0xff]  ;;  %v11960_v42 = vld [vmem:[#allocation11_spill] sm:$0xff] }
 0x213   : > { %3636 = vmatmul.mubr.bf16.gmra.mrb[84].mxu1 %v1717_v54  ;;  %v1665_v4 = vsel %vm1281_vm2, %v1590_v21, %v1462_v49  ;;  %v3833_v23 = vshrl.u32 %v9106_v6, 16  ;;  %v3873_v63 = vrot.slane %v9057_v18, 2  ;;  %v3737_v59 = vrot.slane %v3735_v60, 1 }
 0x214   : > { %7847 = vmatpush3.bf16.msra.mxu1 %v8538_v34  ;;  %3643 = vmatprep.mubr.bf16.mxu1 %v1747_v30  ;;  %v1774_v31 = vsel %vm1670_vm3, %v1667_v53, %v1495_v26  ;;  %v3853_v46 = vrot.slane %v3731_v10, 1  ;;  %v3918_v8 = vsel %vm765_vm0, %v9057_v18, %v11954_v29  ;;  %v11955_v39 = vshll.u32 %v9142_v52, 16  ;;  %v11959_v34 = vld [vmem:[#allocation4_spill] sm:$0xff] }
 0x215   : > { %7848 = vmatprep.subr.bf16.mxu1 %v8539_v0  ;;  %v3849_v41 = vor.u32 %v3833_v23, %v3813_v14  ;;  %v3874_v33 = vrot.slane %v3814_v58, 2  ;;  %v3733_v12 = vshrl.u32 %v11952_v56, 16  ;;  %v3815_v20 = vrot.slane %v3787_v32, 1  ;;  %v8545_v29 = vld [vmem:[%s11725_s3 + $0x430] sm:$0xff]  }
 0x216   : > { %v4743_v9 = vrot.slane %v11955_v39, 4  ;;  %v10615_v25 = vsel %vm1670_vm3, %v1665_v4, %v1494_v51  ;;  %v3742_v61 = vshll.u32 %v11956_v13, 16  ;;  %v4736_v5 = vrot.slane %v11957_v16, 3 }
 0x217   : > { %v3982_v40 = vsel %vm1281_vm2, %v3918_v8, %v3873_v63  ;;  %v3738_v50 = vor.u32 %v3737_v59, %v3733_v12  ;;  %v3792_v14 = vshll.u32 %v11958_v3, 16  ;;  %v4803_v43 = vor.u32 %v11960_v42, %v11959_v34  ;;  %v8544_v63 = vld [vmem:[%s11725_s3 + $0x3e8] sm:$0xff]  }
 0x218   : > { %v4744_v19 = vor.u32 %v4743_v9, %v10306_v36  ;;  %7849 = vmatpush3.bf16.msra.mxu1 %v8540_v47  ;;  %v8543_v36 = vld [vmem:[%s11725_s3 + $0x428] sm:$0xff]   ;;  %v3921_v49 = vsel %vm765_vm0, %v3731_v10, %v3853_v46  ;;  %v3837_v0 = vshrl.u32 %v11953_v1, 16  ;;  %v3897_v21 = vrot.slane %v3849_v41, 3  ;;  %v11961_v10 = vld [vmem:[#allocation21_spill] sm:$0xff]  ;;  %v11964_v41 = vld [vmem:[#allocation10_spill] sm:$0xff] }
 0x219   : > { %7850 = vmatprep.subr.bf16.mxu1 %v8541_v48  ;;  %v3984_v54 = vsel %vm1281_vm2, %v3921_v49, %v3874_v33  ;;  %v3816_v45 = vsel %vm1310_vm5, %v3738_v50, %v3815_v20  ;;  %v3744_v51 = vrot.slane %v3742_v61, 1  ;;  %v11962_v47 = vshll.u32 %v11961_v10, 16  ;;  %v11967_v34 = vld [vmem:[#allocation27_spill] sm:$0xff] }
 0x21a   : > { %v4745_v27 = vsel %vm1272_vm4, %v4736_v5, %v4744_v19  ;;  %v4852_v26 = vrot.slane %v4744_v19, 5  ;;  %v3850_v53 = vor.u32 %v3837_v0, %v3815_v20  ;;  %v4887_v58 = vrot.slane %v4744_v19, 6  ;;  %v11965_v20 = vld [vmem:[#allocation28_spill] sm:$0xff] }
 0x21b   : > { %v4831_v30 = vrot.slane %v4745_v27, 4  ;;  %3644 = vmatmul.mubr.bf16.gmra.mrb[88].mxu1 %v1744_v28  ;;  %v4753_v4 = vrot.slane %v11962_v47, 4  ;;  %v3858_v59 = vrot.slane %v3738_v50, 1  ;;  %v3817_v28 = vrot.slane %v3792_v14, 1 }
 0x21c   : > { %7851 = vmatpush3.bf16.msra.mxu1 %v8542_v24  ;;  %3651 = vmatprep.mubr.bf16.mxu1 %v1774_v31  ;;  %v4903_v48 = vrot.slane %v4803_v43, 7  ;;  %v3880_v8 = vrot.slane %v3816_v45, 2  ;;  %v11963_v31 = vld [vmem:[#allocation50_spill] sm:$0xff]  ;;  %v10657_v16 = vsel %vm1670_vm3, %v3982_v40, %v11965_v20  ;;  %v3740_v5 = vshrl.u32 %v11956_v13, 16  ;;  %v11966_v24 = vld [vmem:[#allocation3_spill] sm:$0xff]  ;;  %v8546_v40 = vld [vmem:[%s11725_s3 + $0x3f0] sm:$0xff]  }
 0x21d   : > { %v4927_v46 = vsel %vm765_vm0, %v4831_v30, %v4852_v26  ;;  %7852 = vmatprep.subr.bf16.mxu1 %v8543_v36  ;;  %v4746_v9 = vrot.slane %v11963_v31, 3  ;;  %v4754_v33 = vor.u32 %v4753_v4, %v11964_v41  ;;  %v4811_v42 = vor.u32 %v11967_v34, %v11966_v24  ;;  %v11972_v20 = vld [vmem:[#allocation26_spill] sm:$0xff] }
 0x21e   : > { %v4971_v39 = vsel %vm1281_vm2, %v4927_v46, %v4887_v58  ;;  %v4033_v43 = vsel %vm1670_vm3, %v3984_v54, %v3897_v21  ;;  %v3841_v36 = vshrl.u32 %v11958_v3, 16  ;;  %v3902_v26 = vrot.slane %v3850_v53, 3  ;;  %v8547_v21 = vld [vmem:[%s11725_s3 + $0x438] sm:$0xff]   ;;  %v11969_v46 = vld [vmem:[#allocation40_spill] sm:$0xff]  ;;  %v11973_v24 = vld [vmem:[#allocation2_spill] sm:$0xff] }
 0x21f   : > { %v10661_v19 = vsel %vm1670_vm3, %v4971_v39, %v4903_v48  ;;  %v4755_v49 = vsel %vm1272_vm4, %v4746_v9, %v4754_v33  ;;  %v4862_v27 = vrot.slane %v4754_v33, 5  ;;  %v3937_v45 = vsel %vm765_vm0, %v3738_v50, %v3858_v59  ;;  %v11970_v39 = vld [vmem:[#allocation52_spill] sm:$0xff]  ;;  %v11971_v9 = vld [vmem:[#allocation25_spill] sm:$0xff] }
 0x220   : > { %7853 = vmatpush3.bf16.msra.mxu1 %v8544_v63  ;;  %v10674_v30 = vor.u32 %v3744_v51, %v3740_v5  ;;  %v4835_v58 = vrot.slane %v4755_v49, 4  ;;  %v3996_v54 = vsel %vm1281_vm2, %v3937_v45, %v3880_v8  ;;  %v10682_v47 = vor.u32 %v3841_v36, %v3817_v28 }
 0x221   : > { %7854 = vmatprep.subr.bf16.mxu1 %v8545_v29  ;;  %v4891_v4 = vrot.slane %v4754_v33, 6  ;;  %v11968_v53 = vshll.u32 %v9508_v15, 16  ;;  %v4770_v63 = vrot.slane %v4768_v57, 3  ;;  %v4907_v59 = vrot.slane %v4811_v42, 7 }
 0x222   : > { %v10688_v51 = vsel %vm1310_vm5, %v10674_v30, %v3817_v28  ;;  %v4939_v48 = vsel %vm765_vm0, %v4835_v58, %v4862_v27  ;;  %v11833_v29 = vshll.u32 %v11969_v46, 16  ;;  %v4756_v31 = vrot.slane %v11970_v39, 3  ;;  %v8548_v28 = vld [vmem:[%s11725_s3 + $0x3f8] sm:$0xff]  }
 0x223   : > { %v4763_v50 = vrot.slane %v11968_v53, 4  ;;  %3652 = vmatmul.mubr.bf16.gmra.mrb[92].mxu1 %v10615_v25  ;;  %v4979_v8 = vsel %vm1281_vm2, %v4939_v48, %v4891_v4  ;;  %v4051_v57 = vsel %vm1670_vm3, %v3996_v54, %v3902_v26  ;;  %v3863_v33 = vrot.slane %v10674_v30, 1  ;;  %v11974_v27 = vld [vmem:[#allocation41_spill] sm:$0xff] }
 0x224   : > { %7855 = vmatpush3.bf16.msra.mxu1 %v8546_v40  ;;  %4517 = vmatprep.mubr.bf16.mxu1 %v4033_v43  ;;  %v10704_v25 = vsel %vm1670_vm3, %v4979_v8, %v4907_v59  ;;  %v4819_v34 = vor.u32 %v11973_v24, %v11972_v20  ;;  %v7778_v42 = vpop.f32.mrb[88].mxu0  ;;  %v8549_v43 = vld [vmem:[%s11725_s3 + $0x500] sm:$0xff]   ;;  %v3747_v49 = vshrl.u32 %v11969_v46, 16  ;;  %v3797_v40 = vshll.u32 %v11974_v27, 16  ;;  %v11976_v59 = vld [vmem:[#allocation39_spill] sm:$0xff] }
 0x225   : > { %v4764_v41 = vor.u32 %v4763_v50, %v11971_v9  ;;  %7856 = vmatprep.subr.bf16.mxu1 %v8547_v21  ;;  %v7779_v58 = vpop.f32.mrb[89].mxu0  ;;  %v4766_v4 = vrot.slane %v10278_v22, 3  ;;  %v11975_v53 = vshll.u32 %v10025_v37, 16  ;;  %v4827_v21 = vor.u32 %v10337_v17, %v11976_v59  ;;  %v8550_v22 = vld [vmem:[%s11725_s3 + $0x4c0] sm:$0xff]   ;;  %v11977_v17 = vld [vmem:[#allocation51_spill] sm:$0xff] }
 0x226   : > { %v10719_v48 = vadd.f32 %v7779_v58, %v7778_v42  ;;  %v7781_v8 = vpop.f32.mrb[90].mxu0  ;;  %v3751_v39 = vrot.slane %v11833_v29, 1  ;;  %v4911_v24 = vrot.slane %v4819_v34, 7  ;;  %v7340_v42 = vrot.slane %v11977_v17, 10 }
 0x227   : > { %v4765_v26 = vsel %vm1272_vm4, %v4756_v31, %v4764_v41  ;;  %v4872_v45 = vrot.slane %v4764_v41, 5  ;;  %v4773_v50 = vrot.slane %v11975_v53, 4  ;;  %v4895_v9 = vrot.slane %v4764_v41, 6  ;;  %v7782_v20 = vpop.f32.mrb[91].mxu0  ;;  %v8551_v41 = vld [vmem:[%s11725_s3 + $0x508] sm:$0xff]  }
 0x228   : > { %v4839_v54 = vrot.slane %v4765_v26, 4  ;;  %v4734_v31 = vrot.slane %v10025_v37, 3  ;;  %7857 = vmatpush3.bf16.msra.mxu1 %v8548_v28  ;;  %v10729_v58 = vadd.f32 %v7782_v20, %v7781_v8  ;;  %v4915_v28 = vrot.slane %v4827_v21, 7 }
 0x229   : > { %v4774_v53 = vor.u32 %v4773_v50, %v4770_v63  ;;  %7922 = vmatprep.subr.bf16.mxu1 %v8549_v43  ;;  %v11978_v59 = vrot.slane %v9687_v62, 3  ;;  %v8552_v62 = vld [vmem:[%s11725_s3 + $0x4c8] sm:$0xff]   ;;  %v3879_v21 = vrot.slane %v11952_v56, 2 }
 0x22a   : > { %v4951_v26 = vsel %vm765_vm0, %v4839_v54, %v4872_v45  ;;  %v4880_v8 = vrot.slane %v4734_v31, 5  ;;  %v4898_v20 = vrot.slane %v4734_v31, 6 }
 0x22b   : > { %v4987_v37 = vsel %vm1281_vm2, %v4951_v26, %v4895_v9  ;;  %v4735_v29 = vsel %vm1935_vm7, %v11978_v59, %v4734_v31  ;;  %v4775_v63 = vsel %vm1272_vm4, %v4766_v4, %v4774_v53  ;;  %v4882_v45 = vrot.slane %v4774_v53, 5  ;;  %4518 = vmatmul.mubr.bf16.vlgmr.msra.gmra.mrb[96].mxu1 %v10657_v16  ;;  %v8553_v4 = vld [vmem:[%s11725_s3 + $0x510] sm:$0xff]  }
 0x22c   : > { %v10739_v34 = vsel %vm1670_vm3, %v4987_v37, %v4911_v24  ;;  %v4899_v54 = vrot.slane %v4774_v53, 6  ;;  %v4843_v43 = vrot.slane %v4775_v63, 4  ;;  %v4842_v50 = vrot.slane %v4735_v29, 4  ;;  %7923 = vmatpush3.bf16.msra.mxu1 %v8550_v22  ;;  %4525 = vmatprep.mubr.bf16.mxu1 %v4051_v57  ;;  %v7578_v22 = vpop.f32.mrb[8].mxu1  ;;  %v11979_v24 = vld [vmem:[#allocation44_spill] sm:$0xff] }
 0x22d   : > { %v3886_v9 = vrot.slane %v10688_v51, 2  ;;  %7924 = vmatprep.subr.bf16.mxu1 %v8551_v41  ;;  %v3752_v16 = vor.u32 %v3751_v39, %v3747_v49  ;;  %v3819_v29 = vrot.slane %v3797_v40, 1  ;;  %v3934_v51 = vsel %vm765_vm0, %v11952_v56, %v11979_v24  ;;  %v7579_v41 = vpop.f32.mrb[9].mxu1  ;;  %v8557_v24 = vld [vmem:[%s11725_s3 + $0x520] sm:$0xff]  }
 0x22e   : > { %v4963_v57 = vsel %vm765_vm0, %v4843_v43, %v4882_v45  ;;  %v4960_v31 = vsel %vm765_vm0, %v4842_v50, %v4880_v8  ;;  %v3907_v26 = vrot.slane %v10682_v47, 3  ;;  %v3953_v39 = vsel %vm765_vm0, %v10674_v30, %v3863_v33  ;;  %v7581_v47 = vpop.f32.mrb[10].mxu1  ;;  %v8555_v33 = vld [vmem:[%s11725_s3 + $0x518] sm:$0xff]  }
 0x22f   : > { %v4995_v53 = vsel %vm1281_vm2, %v4963_v57, %v4899_v54  ;;  %v4993_v17 = vsel %vm1281_vm2, %v4960_v31, %v4898_v20  ;;  %v3845_v37 = vshrl.u32 %v11974_v27, 16  ;;  %v10772_v45 = vadd.f32 %v7579_v41, %v7578_v22  ;;  %v8554_v54 = vld [vmem:[%s11725_s3 + $0x4d0] sm:$0xff]   ;;  %v7582_v50 = vpop.f32.mrb[11].mxu1  ;;  %v11980_v20 = vld [vmem:[#allocation43_spill] sm:$0xff] }
 0x230   : > { %v10767_v59 = vsel %vm1670_vm3, %v4995_v53, %v4915_v28  ;;  %v10770_v63 = vsel %vm1670_vm3, %v4993_v17, %v7340_v42  ;;  %7925 = vmatpush3.bf16.msra.mxu1 %v8552_v62  ;;  %v4008_v43 = vsel %vm1281_vm2, %v3953_v39, %v3886_v9  ;;  %v3994_v30 = vsel %vm1281_vm2, %v3934_v51, %v3879_v21  ;;  %v11981_v53 = vld [vmem:[#allocation46_spill] sm:$0xff] }
 0x231   : > { %7926 = vmatprep.subr.bf16.mxu1 %v8553_v4  ;;  %v3820_v42 = vsel %vm1310_vm5, %v3752_v16, %v3819_v29  ;;  %v3868_v28 = vrot.slane %v3752_v16, 1  ;;  %v10783_v8 = vadd.f32 %v7582_v50, %v7581_v47  ;;  %v4048_v62 = vsel %vm1670_vm3, %v3994_v30, %v11980_v20  ;;  %v8556_v4 = vld [vmem:[%s11725_s3 + $0x4d8] sm:$0xff]  }
 0x232   : > { %v3805_v57 = vrot.slane %v9106_v6, 4  ;;  %v4069_v9 = vsel %vm1670_vm3, %v4008_v43, %v3907_v26  ;;  %v3852_v21 = vor.u32 %v3845_v37, %v3819_v29  ;;  %v3892_v31 = vrot.slane %v3820_v42, 2  ;;  %v8561_v6 = vld [vmem:[%s11725_s3 + $0x530] sm:$0xff]  }
 0x233   : > { %4526 = vmatmul.mubr.bf16.gmra.mrb[100].mxu1 %v4048_v62  ;;  %v3777_v22 = vrot.slane %v9057_v18, 4  ;;  %v3885_v51 = vrot.slane %v11956_v13, 2  ;;  %v3969_v26 = vsel %vm765_vm0, %v3752_v16, %v3868_v28  ;;  %v3950_v29 = vsel %vm765_vm0, %v11956_v13, %v11981_v53  ;;  %v11982_v18 = vld [vmem:[#allocation45_spill] sm:$0xff]  ;;  %v8560_v62 = vld [vmem:[%s11725_s3 + $0x4e8] sm:$0xff]  }
 0x234   : > { %7927 = vmatpush3.bf16.msra.mxu1 %v8554_v54  ;;  %4533 = vmatprep.mubr.bf16.mxu1 %v4069_v9  ;;  %v3765_v41 = vrot.slane %v3726_v38, 3  ;;  %v3912_v39 = vrot.slane %v3852_v21, 3  ;;  %v3766_v47 = vrot.slane %v3728_v55, 4  ;;  %v8558_v54 = vld [vmem:[%s11725_s3 + $0x4e0] sm:$0xff]   ;;  %v4020_v16 = vsel %vm1281_vm2, %v3969_v26, %v3892_v31  ;;  %v8559_v38 = vld [vmem:[%s11725_s3 + $0x528] sm:$0xff]   ;;  %v11983_v9 = vld [vmem:[#allocation49_spill] sm:$0xff] }
 0x235   : > { %7928 = vmatprep.subr.bf16.mxu1 %v8555_v33  ;;  %v3806_v17 = vsel %vm1281_vm2, %v3777_v22, %v3805_v57  ;;  %v3784_v43 = vrot.slane %v3782_v2, 4  ;;  %v4006_v50 = vsel %vm1281_vm2, %v3950_v29, %v3885_v51  ;;  %v10821_v33 = vrot.slane %v11953_v1, 4 }
 0x236   : > { %v3857_v30 = vrot.slane %v3806_v17, 1  ;;  %v4066_v55 = vsel %vm1670_vm3, %v4006_v50, %v11982_v18  ;;  %v3835_v42 = vrot.slane %v3833_v23, 3  ;;  %v4087_v2 = vsel %vm1670_vm3, %v4020_v16, %v3912_v39 }
 0x237   : > { %v3891_v28 = vrot.slane %v11969_v46, 2  ;;  %v3767_v20 = vor.u32 %v3766_v47, %v3765_v41  ;;  %v3966_v21 = vsel %vm765_vm0, %v11969_v46, %v11983_v9  ;;  %v3768_v29 = vrot.slane %v3733_v12, 3 }
 0x238   : > { %7929 = vmatpush3.bf16.msra.mxu1 %v8556_v4  ;;  %v3778_v4 = vrot.slane %v11952_v56, 4  ;;  %v3932_v23 = vsel %vm765_vm0, %v3777_v22, %v3857_v30  ;;  %v3836_v53 = vor.u32 %v3835_v42, %v3784_v43  ;;  %v3769_v17 = vrot.slane %v3735_v60, 4  ;;  %v8562_v22 = vld [vmem:[%s11725_s3 + $0x4f0] sm:$0xff]   ;;  %v11984_v56 = vld [vmem:[#allocation47_spill] sm:$0xff]  ;;  %v8565_v42 = vld [vmem:[%s11725_s3 + $0x600] sm:$0xff]  }
 0x239   : > { %7930 = vmatprep.subr.bf16.mxu1 %v8557_v24  ;;  %v3785_v31 = vsel %vm1272_vm4, %v3767_v20, %v3784_v43  ;;  %v3878_v24 = vrot.slane %v3805_v57, 2  ;;  %v4018_v26 = vsel %vm1281_vm2, %v3966_v21, %v3891_v28  ;;  %v3901_v47 = vrot.slane %v3805_v57, 3 }
 0x23a   : > { %v3808_v51 = vsel %vm1281_vm2, %v3778_v4, %v10821_v33  ;;  %v3856_v39 = vrot.slane %v3785_v31, 1  ;;  %v3789_v12 = vrot.slane %v3787_v32, 4  ;;  %v4084_v60 = vsel %vm1670_vm3, %v4018_v26, %v11984_v56  ;;  %v8564_v32 = vld [vmem:[%s11725_s3 + $0x4f8] sm:$0xff]  }
 0x23b   : > { %4534 = vmatmul.mubr.bf16.gmra.mrb[104].mxu1 %v4066_v55  ;;  %v3992_v41 = vsel %vm1281_vm2, %v3932_v23, %v3878_v24  ;;  %v3862_v16 = vrot.slane %v3808_v51, 1  ;;  %v10858_v43 = vrot.slane %v11958_v3, 4  ;;  %v3770_v30 = vor.u32 %v3769_v17, %v3768_v29  ;;  %v8567_v51 = vld [vmem:[%s11725_s3 + $0x608] sm:$0xff]  }
 0x23c   : > { %7931 = vmatpush3.bf16.msra.mxu1 %v8558_v54  ;;  %4541 = vmatprep.mubr.bf16.mxu1 %v4087_v2  ;;  %v8563_v54 = vld [vmem:[%s11725_s3 + $0x538] sm:$0xff]   ;;  %v4045_v50 = vsel %vm1670_vm3, %v3992_v41, %v3901_v47  ;;  %v3839_v57 = vrot.slane %v3837_v0, 3  ;;  %v3929_v18 = vsel %vm765_vm0, %v3767_v20, %v3856_v39  ;;  %v3779_v55 = vrot.slane %v11956_v13, 4  ;;  %v8569_v47 = vld [vmem:[%s11725_s3 + $0x610] sm:$0xff]  }
 0x23d   : > { %7932 = vmatprep.subr.bf16.mxu1 %v8559_v38  ;;  %v3877_v38 = vrot.slane %v3836_v53, 2  ;;  %v3948_v2 = vsel %vm765_vm0, %v3778_v4, %v3862_v16  ;;  %v3790_v1 = vsel %vm1272_vm4, %v3770_v30, %v3789_v12  ;;  %v3900_v0 = vrot.slane %v3836_v53, 3  ;;  %v8566_v4 = vld [vmem:[%s11725_s3 + $0x5c0] sm:$0xff]  }
 0x23e   : > { %v3884_v28 = vrot.slane %v10821_v33, 2  ;;  %v3840_v20 = vor.u32 %v3839_v57, %v3789_v12  ;;  %v3771_v21 = vrot.slane %v3740_v5, 3  ;;  %v3861_v31 = vrot.slane %v3790_v1, 1 }
 0x23f   : > { %v3990_v9 = vsel %vm1281_vm2, %v3929_v18, %v3877_v38  ;;  %v3906_v24 = vrot.slane %v10821_v33, 3  ;;  %v3794_v13 = vrot.slane %v3792_v14, 4  ;;  %v3780_v5 = vrot.slane %v11969_v46, 4  ;;  %v8568_v14 = vld [vmem:[%s11725_s3 + $0x5c8] sm:$0xff]  }
 0x240   : > { %7933 = vmatpush3.bf16.msra.mxu1 %v8560_v62  ;;  %v3810_v62 = vsel %vm1281_vm2, %v3779_v55, %v10858_v43  ;;  %v4004_v23 = vsel %vm1281_vm2, %v3948_v2, %v3884_v28  ;;  %v10894_v53 = vrot.slane %v11974_v27, 4  ;;  %v3883_v17 = vrot.slane %v3840_v20, 2 }
 0x241   : > { %7934 = vmatprep.subr.bf16.mxu1 %v8561_v6  ;;  %v3772_v6 = vrot.slane %v3742_v61, 4  ;;  %v3867_v26 = vrot.slane %v3810_v62, 1  ;;  %v4042_v61 = vsel %vm1670_vm3, %v3990_v9, %v3900_v0  ;;  %v4063_v29 = vsel %vm1670_vm3, %v4004_v23, %v3906_v24  ;;  %v8571_v0 = vld [vmem:[%s11725_s3 + $0x618] sm:$0xff]   ;;  %v8573_v24 = vld [vmem:[%s11725_s3 + $0x620] sm:$0xff]  }
 0x242   : > { %v3945_v41 = vsel %vm765_vm0, %v3770_v30, %v3861_v31  ;;  %v3774_v3 = vrot.slane %v3747_v49, 3  ;;  %v3812_v38 = vsel %vm1281_vm2, %v3780_v5, %v10894_v53  ;;  %v3911_v49 = vrot.slane %v10858_v43, 3 }
 0x243   : > { %4542 = vmatmul.mubr.bf16.gmra.mrb[108].mxu1 %v4084_v60  ;;  %v3773_v33 = vor.u32 %v3772_v6, %v3771_v21  ;;  %v3905_v60 = vrot.slane %v3840_v20, 3  ;;  %v3872_v28 = vrot.slane %v3812_v38, 1  ;;  %v3799_v9 = vrot.slane %v3797_v40, 4 }
 0x244   : > { %7935 = vmatpush3.bf16.msra.mxu1 %v8562_v22  ;;  %4647 = vmatprep.mubr.bf16.mxu1 %v4045_v50  ;;  %v3843_v22 = vrot.slane %v3841_v36, 3  ;;  %v11985_v36 = vshll.u32 %v11969_v46, 16  ;;  %v3890_v50 = vrot.slane %v10858_v43, 2  ;;  %v8570_v46 = vld [vmem:[%s11725_s3 + $0x5d0] sm:$0xff]   ;;  %v3847_v6 = vrot.slane %v3845_v37, 3 }
 0x245   : > { %7936 = vmatprep.subr.bf16.mxu1 %v8563_v54  ;;  %v3964_v54 = vsel %vm765_vm0, %v3779_v55, %v3867_v26  ;;  %v3795_v16 = vsel %vm1272_vm4, %v3773_v33, %v3794_v13  ;;  %v3896_v31 = vrot.slane %v10894_v53, 2  ;;  %v3980_v27 = vsel %vm765_vm0, %v3780_v5, %v3872_v28  ;;  %v8574_v5 = vld [vmem:[%s11725_s3 + $0x5e0] sm:$0xff]  }
 0x246   : > { %v3775_v12 = vrot.slane %v11985_v36, 4  ;;  %v3844_v18 = vor.u32 %v3843_v22, %v3794_v13  ;;  %v3866_v2 = vrot.slane %v3795_v16, 1  ;;  %v3848_v22 = vor.u32 %v3847_v6, %v3799_v9 }
 0x248   : > { %7937 = vmatpush3.bf16.msra.mxu1 %v8564_v32  ;;  %v4002_v32 = vsel %vm1281_vm2, %v3945_v41, %v3883_v17  ;;  %v3776_v62 = vor.u32 %v3775_v12, %v3774_v3  ;;  %v3889_v21 = vrot.slane %v3844_v18, 2  ;;  %v3961_v23 = vsel %vm765_vm0, %v3773_v33, %v3866_v2 }
 0x249   : > { %8002 = vmatprep.subr.bf16.mxu1 %v8565_v42  ;;  %v4016_v42 = vsel %vm1281_vm2, %v3964_v54, %v3890_v50  ;;  %v4060_v20 = vsel %vm1670_vm3, %v4002_v32, %v3905_v60  ;;  %v3910_v13 = vrot.slane %v3844_v18, 3  ;;  %v3916_v33 = vrot.slane %v10894_v53, 3  ;;  %v8575_v53 = vld [vmem:[%s11725_s3 + $0x628] sm:$0xff]  }
 0x24a   : > { %v4081_v43 = vsel %vm1670_vm3, %v4016_v42, %v3911_v49  ;;  %v3800_v37 = vsel %vm1272_vm4, %v3776_v62, %v3799_v9  ;;  %v4014_v17 = vsel %vm1281_vm2, %v3961_v23, %v3889_v21  ;;  %v4725_v3 = vrot.slane %v9142_v52, 3  ;;  %v8577_v52 = vld [vmem:[%s11725_s3 + $0x630] sm:$0xff]   ;;  %v8579_v23 = vld [vmem:[%s11725_s3 + $0x638] sm:$0xff]  }
 0x24b   : > { %4648 = vmatmul.mubr.bf16.vlgmr.msra.gmra.mrb[112].mxu1 %v4042_v61  ;;  %v3871_v54 = vrot.slane %v3800_v37, 1  ;;  %v4078_v12 = vsel %vm1670_vm3, %v4014_v17, %v3910_v13  ;;  %v3895_v38 = vrot.slane %v3848_v22, 2  ;;  %v3915_v42 = vrot.slane %v3848_v22, 3  ;;  %v11988_v13 = vld [vmem:[#allocation18_spill] sm:$0xff]  ;;  %v11989_v17 = vld [vmem:[#allocation24_spill] sm:$0xff]  ;;  %v8580_v22 = vld [vmem:[%s11725_s3 + $0x5f8] sm:$0xff]  }
 0x24c   : > { %8003 = vmatpush3.bf16.msra.mxu1 %v8566_v4  ;;  %4655 = vmatprep.mubr.bf16.mxu1 %v4063_v29  ;;  %v8572_v4 = vld [vmem:[%s11725_s3 + $0x5d8] sm:$0xff]   ;;  %v4850_v6 = vrot.slane %v4725_v3, 5  ;;  %vm5496_vm4 = vcmask 1043459  }
 0x24d   : > { %v7784_v39 = vpop.f32.mrb[92].mxu0  ;;  %8004 = vmatprep.subr.bf16.mxu1 %v8567_v51  ;;  %v3977_v32 = vsel %vm765_vm0, %v3776_v62, %v3871_v54 }
 0x24e   : > { %v7785_v56 = vpop.f32.mrb[93].mxu0  ;;  %v4026_v28 = vsel %vm1281_vm2, %v3977_v32, %v3895_v38 }
 0x24f   : > { %v10915_v30 = vadd.f32 %v7785_v56, %v7784_v39  ;;  %v7787_v57 = vpop.f32.mrb[94].mxu0  ;;  %v11986_v56 = vld [vmem:[#allocation7_spill] sm:$0xff] }
 0x250   : > { %8005 = vmatpush3.bf16.msra.mxu1 %v8568_v14  ;;  %v7788_v55 = vpop.f32.mrb[95].mxu0  ;;  %v4724_v60 = vrot.slane %v11986_v56, 3 }
 0x251   : > { %v10923_v1 = vadd.f32 %v7788_v55, %v7787_v57  ;;  %8006 = vmatprep.subr.bf16.mxu1 %v8569_v47  ;;  %v4028_v47 = vsel %vm1281_vm2, %v3980_v27, %v3896_v31  ;;  %v8576_v57 = vld [vmem:[%s11725_s3 + $0x5e8] sm:$0xff]   ;;  %v4728_v31 = vrot.slane %v11961_v10, 3 }
 0x252   : > { %v4099_v50 = vsel %vm1670_vm3, %v4028_v47, %v3916_v33  ;;  %v4726_v55 = vsel %vm1935_vm7, %v4724_v60, %v4725_v3 }
 0x253   : > { %4656 = vmatmul.mubr.bf16.gmra.mrb[116].mxu1 %v4060_v20  ;;  %v4830_v21 = vrot.slane %v4726_v55, 4  ;;  %v11991_v55 = vld [vmem:[#allocation32_spill] sm:$0xff] }
 0x254   : > { %8007 = vmatpush3.bf16.msra.mxu1 %v8570_v46  ;;  %4663 = vmatprep.mubr.bf16.mxu1 %v4081_v43  ;;  %v8578_v43 = vld [vmem:[%s11725_s3 + $0x5f0] sm:$0xff]  }
 0x255   : > { %v10939_v40 = vpop.f32.mrb[96].mxu0  ;;  %8008 = vmatprep.subr.bf16.mxu1 %v8571_v0  ;;  %v4924_v10 = vsel %vm765_vm0, %v4830_v21, %v4850_v6  ;;  %v11992_v6 = vld [vmem:[#allocation20_spill] sm:$0xff] }
 0x256   : > { %v7584_v51 = vpop.f32.mrb[12].mxu1  ;;  %v10946_v26 = vpop.f32.mrb[97].mxu0 }
 0x257   : > { %v7585_v61 = vpop.f32.mrb[13].mxu1  ;;  %v10948_v29 = vpop.f32.mrb[98].mxu0 }
 0x258   : > { %v10952_v14 = vadd.f32 %v7585_v61, %v7584_v51  ;;  %8009 = vmatpush3.bf16.msra.mxu1 %v8572_v4  ;;  %v7587_v41 = vpop.f32.mrb[14].mxu1  ;;  %v10954_v39 = vpop.f32.mrb[99].mxu0  ;;  %v4096_v51 = vsel %vm1670_vm3, %v4026_v28, %v3915_v42  ;;  %v4727_v61 = vrot.slane %v11988_v13, 3  ;;  %v4890_v28 = vrot.slane %v4728_v31, 6 }
 0x259   : > { %v7588_v16 = vpop.f32.mrb[15].mxu1  ;;  %8010 = vmatprep.subr.bf16.mxu1 %v8573_v24  ;;  %v11987_v24 = vld [vmem:[#allocation12_spill] sm:$0xff] }
 0x25a   : > { %v10964_v36 = vadd.f32 %v7588_v16, %v7587_v41  ;;  %v4886_v41 = vrot.slane %v4725_v3, 6 }
 0x25b   : > { %4664 = vmatmul.mubr.bf16.gmra.mrb[120].mxu1 %v4078_v12 }
 0x25c   : > { %8011 = vmatpush3.bf16.msra.mxu1 %v8574_v5  ;;  %4671 = vmatprep.mubr.bf16.mxu1 %v4099_v50  ;;  %v4729_v5 = vsel %vm1935_vm7, %v4727_v61, %v4728_v31  ;;  %v4969_v16 = vsel %vm1281_vm2, %v4924_v10, %v4886_v41  ;;  %v4860_v50 = vrot.slane %v4728_v31, 5 }
 0x25d   : > { %v10973_v18 = vpop.f32.mrb[100].mxu0  ;;  %8012 = vmatprep.subr.bf16.mxu1 %v8575_v53  ;;  %v11990_v53 = vld [vmem:[#allocation8_spill] sm:$0xff] }
 0x25e   : > { %v7606_v46 = vpop.f32.mrb[16].mxu1  ;;  %v10979_v49 = vpop.f32.mrb[101].mxu0  ;;  %v7337_v12 = vrot.slane %v11990_v53, 10 }
 0x25f   : > { %v7607_v2 = vpop.f32.mrb[17].mxu1  ;;  %v10981_v0 = vpop.f32.mrb[102].mxu0 }
 0x260   : > { %v7608_v9 = vadd.f32 %v7607_v2, %v7606_v46  ;;  %8013 = vmatpush3.bf16.msra.mxu1 %v8576_v57  ;;  %v7609_v62 = vpop.f32.mrb[18].mxu1  ;;  %v10984_v20 = vpop.f32.mrb[103].mxu0  ;;  %v4731_v57 = vrot.slane %v9508_v15, 3  ;;  %v4730_v46 = vrot.slane %v11991_v55, 3 }
 0x261   : > { %v7610_v4 = vpop.f32.mrb[19].mxu1  ;;  %8014 = vmatprep.subr.bf16.mxu1 %v8577_v52  ;;  %v5003_v52 = vsel %vm1670_vm3, %v4969_v16, %v7337_v12  ;;  %v11993_v12 = vld [vmem:[#allocation34_spill] sm:$0xff] }
 0x262   : > { %v10994_v27 = vadd.f32 %v7608_v9, %v11987_v24  ;;  %v7611_v37 = vadd.f32 %v7610_v4, %v7609_v62  ;;  %v4732_v9 = vsel %vm1935_vm7, %v4730_v46, %v4731_v57  ;;  %v7338_v4 = vrot.slane %v11992_v6, 10 }
 0x263   : > { %4672 = vmatmul.mubr.bf16.gmra.mrb[124].mxu1 %v4096_v51  ;;  %v4870_v24 = vrot.slane %v4731_v57, 5 }
 0x264   : > { %v10999_v33 = vadd.f32 %v7611_v37, %v11989_v17  ;;  %8015 = vmatpush3.bf16.msra.mxu1 %v8578_v43  ;;  %5397 = vmatprep.mubr.bf16.mxu1 %v10661_v19  ;;  %v4834_v19 = vrot.slane %v4729_v5, 4  ;;  %v4894_v17 = vrot.slane %v4731_v57, 6 }
 0x265   : > { %8016 = vmatprep.subr.bf16.mxu1 %v8579_v23  ;;  %v4838_v23 = vrot.slane %v4732_v9, 4 }
 0x266   : > { %v7612_v47 = vpop.f32.mrb[20].mxu1  ;;  %v4936_v2 = vsel %vm765_vm0, %v4834_v19, %v4860_v50 }
 0x267   : > { %v7613_v54 = vpop.f32.mrb[21].mxu1  ;;  %v4948_v13 = vsel %vm765_vm0, %v4838_v23, %v4870_v24 }
 0x268   : > { %v7614_v56 = vadd.f32 %v7613_v54, %v7612_v47  ;;  %8017 = vmatpush3.bf16.msra.mxu1 %v8580_v22  ;;  %v7615_v60 = vpop.f32.mrb[22].mxu1  ;;  %v4985_v47 = vsel %vm1281_vm2, %v4948_v13, %v4894_v17 }
 0x269   : > { %v7616_v38 = vpop.f32.mrb[23].mxu1 }
 0x26a   : > { %v11011_v32 = vadd.f32 %v7614_v56, %v10533_v11  ;;  %v7617_v3 = vadd.f32 %v7616_v38, %v7615_v60  ;;  %v4977_v11 = vsel %vm1281_vm2, %v4936_v2, %v4890_v28 }
 0x26b   : > { %5398 = vmatmul.mubr.bf16.vlgmr.msra.gmra.mrb[128].mxu1 %v5003_v52  ;;  %v5015_v51 = vsel %vm1670_vm3, %v4977_v11, %v7338_v4 }
 0x26c   : > { %v11016_v42 = vadd.f32 %v7617_v3, %v10546_v44  ;;  %5405 = vmatprep.mubr.bf16.mxu1 %v10704_v25 }
 0x26e   : > { %v7618_v15 = vpop.f32.mrb[24].mxu1 }
 0x26f   : > { %v7619_v62 = vpop.f32.mrb[25].mxu1 }
 0x270   : > { %v7620_v43 = vadd.f32 %v7619_v62, %v7618_v15  ;;  %v7621_v21 = vpop.f32.mrb[26].mxu1 }
 0x271   : > { %v7622_v37 = vpop.f32.mrb[27].mxu1 }
 0x272   : > { %v11024_v44 = vadd.f32 %v7620_v43, %v10772_v45  ;;  %v7623_v25 = vadd.f32 %v7622_v37, %v7621_v21 }
 0x273   : > { %5406 = vmatmul.mubr.bf16.gmra.mrb[132].mxu1 %v5015_v51 }
 0x274   : > { %v11028_v31 = vadd.f32 %v7623_v25, %v10783_v8  ;;  %5413 = vmatprep.mubr.bf16.mxu1 %v10739_v34  ;;  %v7339_v8 = vrot.slane %v11993_v12, 10 }
 0x275   : > { %v7898_v61 = vpop.f32.mrb[104].mxu0 }
 0x276   : > { %v7624_v22 = vpop.f32.mrb[28].mxu1  ;;  %v7899_v10 = vpop.f32.mrb[105].mxu0  ;;  %v5027_v50 = vsel %vm1670_vm3, %v4985_v47, %v7339_v8 }
 0x277   : > { %v11032_v41 = vadd.f32 %v7899_v10, %v7898_v61  ;;  %v7625_v5 = vpop.f32.mrb[29].mxu1  ;;  %v7901_v45 = vpop.f32.mrb[106].mxu0 }
 0x278   : > { %v7626_v54 = vadd.f32 %v7625_v5, %v7624_v22  ;;  %v7627_v16 = vpop.f32.mrb[30].mxu1  ;;  %v7902_v53 = vpop.f32.mrb[107].mxu0 }
 0x279   : > { %v11036_v56 = vadd.f32 %v7902_v53, %v7901_v45  ;;  %v7628_v34 = vpop.f32.mrb[31].mxu1 }
 0x27a   : > { %v2897_v60 = vadd.f32 %v7626_v54, %v10952_v14  ;;  %v7629_v19 = vadd.f32 %v7628_v34, %v7627_v16 }
 0x27b   : > { %5414 = vmatmul.mubr.bf16.gmra.mrb[136].mxu1 %v5027_v50 }
 0x27c   : > { %v2900_v38 = vadd.f32 %v7629_v19, %v10964_v36  ;;  %5421 = vmatprep.mubr.bf16.mxu1 %v10767_v59 }
 0x27d   : > { %v7904_v57 = vpop.f32.mrb[108].mxu0 }
 0x27e   : > { %v7646_v3 = vpop.f32.mrb[32].mxu1  ;;  %v7905_v52 = vpop.f32.mrb[109].mxu0 }
 0x27f   : > { %v11042_v55 = vadd.f32 %v7905_v52, %v7904_v57  ;;  %v7647_v46 = vpop.f32.mrb[33].mxu1  ;;  %v7907_v2 = vpop.f32.mrb[110].mxu0 }
 0x280   : > { %v7648_v28 = vadd.f32 %v7647_v46, %v7646_v3  ;;  %v7649_v9 = vpop.f32.mrb[34].mxu1  ;;  %v7908_v15 = vpop.f32.mrb[111].mxu0 }
 0x281   : > { %v11044_v62 = vadd.f32 %v7908_v15, %v7907_v2  ;;  %v7650_v14 = vpop.f32.mrb[35].mxu1 }
 0x282   : > { %v2938_v11 = vadd.f32 %v7648_v28, %v10994_v27  ;;  %v7651_v43 = vadd.f32 %v7650_v14, %v7649_v9 }
 0x283   : > { %5422 = vmatmul.mubr.bf16.gmra.mrb[140].mxu1 %v10770_v63 }
 0x284   : > { %v2941_v59 = vadd.f32 %v7651_v43, %v10999_v33 }
 0x285   : > { %v7910_v36 = vpop.f32.mrb[112].mxu0 }
 0x286   : > { %v7652_v21 = vpop.f32.mrb[36].mxu1  ;;  %v7911_v6 = vpop.f32.mrb[113].mxu0 }
 0x287   : > { %v11049_v4 = vadd.f32 %v7911_v6, %v7910_v36  ;;  %v7653_v23 = vpop.f32.mrb[37].mxu1  ;;  %v7913_v24 = vpop.f32.mrb[114].mxu0 }
 0x288   : > { %v7654_v37 = vadd.f32 %v7653_v23, %v7652_v21  ;;  %v7655_v25 = vpop.f32.mrb[38].mxu1  ;;  %v7914_v51 = vpop.f32.mrb[115].mxu0 }
 0x289   : > { %v11051_v13 = vadd.f32 %v7914_v51, %v7913_v24  ;;  %v7656_v61 = vpop.f32.mrb[39].mxu1 }
 0x28a   : > { %v2946_v27 = vadd.f32 %v7654_v37, %v11011_v32  ;;  %v7657_v17 = vadd.f32 %v7656_v61, %v7655_v25 }
 0x28c   : > { %v2949_v63 = vadd.f32 %v7657_v17, %v11016_v42 }
 0x28d   : > { %v7916_v22 = vpop.f32.mrb[116].mxu0 }
 0x28e   : > { %v7658_v33 = vpop.f32.mrb[40].mxu1  ;;  %v7917_v10 = vpop.f32.mrb[117].mxu0 }
 0x28f   : > { %v11055_v5 = vadd.f32 %v7917_v10, %v7916_v22  ;;  %v7659_v45 = vpop.f32.mrb[41].mxu1  ;;  %v7919_v47 = vpop.f32.mrb[118].mxu0 }
 0x290   : > { %v7660_v54 = vadd.f32 %v7659_v45, %v7658_v33  ;;  %v7661_v16 = vpop.f32.mrb[42].mxu1  ;;  %v7920_v53 = vpop.f32.mrb[119].mxu0 }
 0x291   : > { %v11057_v12 = vadd.f32 %v7920_v53, %v7919_v47  ;;  %v7662_v8 = vpop.f32.mrb[43].mxu1 }
 0x292   : > { %v2954_v34 = vadd.f32 %v7660_v54, %v11024_v44  ;;  %v7663_v19 = vadd.f32 %v7662_v8, %v7661_v16 }
 0x294   : > { %v2957_v32 = vadd.f32 %v7663_v19, %v11028_v31 }
 0x296   : > { %v7978_v50 = vpop.f32.mrb[120].mxu0  ;;  %v7664_v42 = vpop.f32.mrb[44].mxu1 }
 0x297   : > { %v7979_v57 = vpop.f32.mrb[121].mxu0  ;;  %v7665_v3 = vpop.f32.mrb[45].mxu1 }
 0x298   : > { %v11061_v52 = vadd.f32 %v7979_v57, %v7978_v50  ;;  %v7666_v46 = vadd.f32 %v7665_v3, %v7664_v42  ;;  %v7981_v2 = vpop.f32.mrb[122].mxu0  ;;  %v7667_v28 = vpop.f32.mrb[46].mxu1 }
 0x299   : > { %v7982_v9 = vpop.f32.mrb[123].mxu0  ;;  %v7668_v15 = vpop.f32.mrb[47].mxu1 }
 0x29a   : > { %v2962_v14 = vadd.f32 %v7666_v46, %v2897_v60  ;;  %v11063_v43 = vadd.f32 %v7982_v9, %v7981_v2  ;;  %v7669_v36 = vadd.f32 %v7668_v15, %v7667_v28 }
 0x29c   : > { %v2965_v21 = vadd.f32 %v7669_v36, %v2900_v38 }
 0x29e   : > { %v7984_v44 = vpop.f32.mrb[124].mxu0  ;;  %v7686_v6 = vpop.f32.mrb[48].mxu1 }
 0x29f   : > { %v7985_v23 = vpop.f32.mrb[125].mxu0  ;;  %v7687_v31 = vpop.f32.mrb[49].mxu1 }
 0x2a0   : > { %v11065_v24 = vadd.f32 %v7985_v23, %v7984_v44  ;;  %v7688_v37 = vadd.f32 %v7687_v31, %v7686_v6  ;;  %v7987_v25 = vpop.f32.mrb[126].mxu0  ;;  %v7689_v51 = vpop.f32.mrb[50].mxu1 }
 0x2a1   : > { %v7988_v61 = vpop.f32.mrb[127].mxu0  ;;  %v7690_v17 = vpop.f32.mrb[51].mxu1 }
 0x2a2   : > { %v3435_v22 = vadd.f32 %v7688_v37, %v2938_v11  ;;  %v11067_v33 = vadd.f32 %v7988_v61, %v7987_v25  ;;  %v7691_v10 = vadd.f32 %v7690_v17, %v7689_v51 }
 0x2a4   : > { %v3438_v60 = vadd.f32 %v7691_v10, %v2941_v59 }
 0x2a6   : > { %v7990_v45 = vpop.f32.mrb[128].mxu0  ;;  %v7692_v47 = vpop.f32.mrb[52].mxu1 }
 0x2a7   : > { %v7991_v54 = vpop.f32.mrb[129].mxu0  ;;  %v7693_v38 = vpop.f32.mrb[53].mxu1 }
 0x2a8   : > { %v11069_v16 = vadd.f32 %v7991_v54, %v7990_v45  ;;  %v7694_v53 = vadd.f32 %v7693_v38, %v7692_v47  ;;  %v7993_v8 = vpop.f32.mrb[130].mxu0  ;;  %v7695_v19 = vpop.f32.mrb[54].mxu1 }
 0x2a9   : > { %v7994_v50 = vpop.f32.mrb[131].mxu0  ;;  %v7696_v42 = vpop.f32.mrb[55].mxu1 }
 0x2aa   : > { %v3443_v57 = vadd.f32 %v7694_v53, %v2946_v27  ;;  %v11071_v3 = vadd.f32 %v7994_v50, %v7993_v8  ;;  %v7697_v46 = vadd.f32 %v7696_v42, %v7695_v19  ;;  %v11994_v19 = vld [vmem:[#allocation14_spill] sm:$0xff] }
 0x2ac   : > { %v3446_v11 = vadd.f32 %v7697_v46, %v2949_v63 }
 0x2ae   : > { %v7698_v2 = vpop.f32.mrb[56].mxu1 }
 0x2af   : > { %v7699_v28 = vpop.f32.mrb[57].mxu1 }
 0x2b0   : > { %v7700_v9 = vadd.f32 %v7699_v28, %v7698_v2  ;;  %v7701_v59 = vpop.f32.mrb[58].mxu1 }
 0x2b1   : > { %v7702_v15 = vpop.f32.mrb[59].mxu1 }
 0x2b2   : > { %v3451_v36 = vadd.f32 %v7700_v9, %v2954_v34  ;;  %v7703_v44 = vadd.f32 %v7702_v15, %v7701_v59 }
 0x2b4   : > { %v3454_v6 = vadd.f32 %v7703_v44, %v2957_v32  ;;  %v11995_v32 = vld [vmem:[#allocation13_spill] sm:$0xff] }
 0x2b6   : > { %v7704_v23 = vpop.f32.mrb[60].mxu1 }
 0x2b7   : > { %v7705_v31 = vpop.f32.mrb[61].mxu1 }
 0x2b8   : > { %v7706_v37 = vadd.f32 %v7705_v31, %v7704_v23  ;;  %v7707_v25 = vpop.f32.mrb[62].mxu1 }
 0x2b9   : > { %v7708_v51 = vpop.f32.mrb[63].mxu1 }
 0x2ba   : > { %v3459_v61 = vadd.f32 %v7706_v37, %v2962_v14  ;;  %v7709_v17 = vadd.f32 %v7708_v51, %v7707_v25 }
 0x2bc   : > { %v3462_v27 = vadd.f32 %v7709_v17, %v2965_v21 }
 0x2be   : > { %v7726_v10 = vpop.f32.mrb[64].mxu1 }
 0x2bf   : > { %v7727_v45 = vpop.f32.mrb[65].mxu1 }
 0x2c0   : > { %v7728_v47 = vadd.f32 %v7727_v45, %v7726_v10  ;;  %v7729_v63 = vpop.f32.mrb[66].mxu1 }
 0x2c1   : > { %v7730_v54 = vpop.f32.mrb[67].mxu1 }
 0x2c2   : > { %v3500_v38 = vadd.f32 %v7728_v47, %v3435_v22  ;;  %v7731_v53 = vadd.f32 %v7730_v54, %v7729_v63 }
 0x2c4   : > { %v3503_v8 = vadd.f32 %v7731_v53, %v3438_v60  ;;  %v3565_v34 = vadd.f32 %v11994_v19, %v3500_v38 }
 0x2c6   : > { %v7732_v50 = vpop.f32.mrb[68].mxu1  ;;  %v11075_v42 = vadd.f32 %v11995_v32, %v3503_v8  ;;  %v8583_v8 = vld [vmem:[%s11727_s5 + $0x80] sm:$0xff]  }
 0x2c7   : > { %v7733_v46 = vpop.f32.mrb[69].mxu1  ;;  %v8584_v32 = vld [vmem:[%s11727_s5] sm:$0xff]  }
 0x2c8   : > { %v7734_v2 = vadd.f32 %v7733_v46, %v7732_v50  ;;  %v7735_v28 = vpop.f32.mrb[70].mxu1 }
 0x2c9   : > { %v7736_v14 = vpop.f32.mrb[71].mxu1 }
 0x2ca   : > { %v3508_v9 = vadd.f32 %v7734_v2, %v3443_v57  ;;  %v7737_v21 = vadd.f32 %v7736_v14, %v7735_v28 }
 0x2cc   : > { %v3511_v59 = vadd.f32 %v7737_v21, %v3446_v11  ;;  %v11078_v15 = vadd.f32 %v10479_v7, %v3508_v9 }
 0x2ce   : > { %v7738_v44 = vpop.f32.mrb[72].mxu1  ;;  %v11081_v22 = vadd.f32 %v10494_v35, %v3511_v59  ;;  %v8585_v59 = vld [vmem:[%s11727_s5 + $0xc8] sm:$0xff]  }
 0x2cf   : > { %v7739_v60 = vpop.f32.mrb[73].mxu1 }
 0x2d0   : > { %v7740_v23 = vadd.f32 %v7739_v60, %v7738_v44  ;;  %v7741_v31 = vpop.f32.mrb[74].mxu1  ;;  %v8586_v44 = vld [vmem:[%s11727_s5 + $0x48] sm:$0xff]   ;;  %v8589_v60 = vld [vmem:[%s11727_s5 + $0xd0] sm:$0xff]  }
 0x2d1   : > { %v7742_v37 = vpop.f32.mrb[75].mxu1 }
 0x2d2   : > { %v3516_v25 = vadd.f32 %v7740_v23, %v3451_v36  ;;  %v7743_v51 = vadd.f32 %v7742_v37, %v7741_v31  ;;  %v7996_v17 = vpop.f32.mrb[132].mxu0  ;;  %v8590_v23 = vld [vmem:[%s11727_s5 + $0x50] sm:$0xff]  }
 0x2d3   : > { %v7997_v57 = vpop.f32.mrb[133].mxu0 }
 0x2d4   : > { %v3519_v10 = vadd.f32 %v7743_v51, %v3454_v6  ;;  %v11084_v45 = vadd.f32 %v10719_v48, %v3516_v25  ;;  %v11086_v11 = vadd.f32 %v7997_v57, %v7996_v17  ;;  %v7999_v7 = vpop.f32.mrb[134].mxu0  ;;  %v8581_v6 = vld [vmem:[%s11727_s5 + $0xc0] sm:$0xff]   ;;  %v8591_v25 = vld [vmem:[%s11727_s5 + $0x90] sm:$0xff]  }
 0x2d5   : > { %v8000_v35 = vpop.f32.mrb[135].mxu0  ;;  %v8582_v48 = vld [vmem:[%s11727_s5 + $0x40] sm:$0xff]   ;;  %8064 = vmatprep.subr.bf16.mxu1 %v8581_v6  ;;  %v8592_v51 = vld [vmem:[%s11727_s5 + $0x10] sm:$0xff]  }
 0x2d6   : > { %v7744_v47 = vpop.f32.mrb[76].mxu1  ;;  %v11089_v63 = vadd.f32 %v10729_v58, %v3519_v10  ;;  %v11091_v38 = vadd.f32 %v8000_v35, %v7999_v7  ;;  %8042 = vmatprep.subr.bf16.mxu0 %v8582_v48  ;;  %8065 = vmatpush3.bf16.msra.mxu1 %v8583_v8 }
 0x2d7   : > { %v7745_v54 = vpop.f32.mrb[77].mxu1  ;;  %8043 = vmatpush3.bf16.msra.mxu0 %v8584_v32  ;;  %8066 = vmatprep.subr.bf16.mxu1 %v8585_v59 }
 0x2d8   : > { %v7746_v53 = vadd.f32 %v7745_v54, %v7744_v47  ;;  %v7747_v36 = vpop.f32.mrb[78].mxu1  ;;  %8044 = vmatprep.subr.bf16.mxu0 %v8586_v44  ;;  %v8593_v47 = vld [vmem:[%s11727_s5 + $0xd8] sm:$0xff]   ;;  %v8606_v44 = vld [vmem:[%s11727_s5 + $0x70] sm:$0xff]  }
 0x2d9   : > { %v7748_v58 = vpop.f32.mrb[79].mxu1 }
 0x2da   : > { %v3524_v19 = vadd.f32 %v7746_v53, %v3459_v61  ;;  %v7749_v50 = vadd.f32 %v7748_v58, %v7747_v36  ;;  %v8597_v53 = vld [vmem:[%s11727_s5 + $0xe0] sm:$0xff]  }
 0x2db   : > { %v8598_v36 = vld [vmem:[%s11727_s5 + $0x60] sm:$0xff]  }
 0x2dc   : > { %v3527_v46 = vadd.f32 %v7749_v50, %v3462_v27  ;;  %v11106_v2 = vadd.f32 %v10915_v30, %v3524_v19  ;;  %v8587_v30 = vld [vmem:[%s11727_s5 + $0x88] sm:$0xff]   ;;  %v8599_v58 = vld [vmem:[%s11727_s5 + $0xa0] sm:$0xff]  }
 0x2dd   : > { %8067 = vmatpush3.bf16.msra.mxu1 %v8587_v30  ;;  %v8600_v19 = vld [vmem:[%s11727_s5 + $0x20] sm:$0xff]  }
 0x2de   : > { %v7806_v28 = vpop.f32.mrb[80].mxu1  ;;  %v11109_v14 = vadd.f32 %v10923_v1, %v3527_v46  ;;  %v8588_v1 = vld [vmem:[%s11727_s5 + $0x8] sm:$0xff]   ;;  %8068 = vmatprep.subr.bf16.mxu1 %v8589_v60  ;;  %v8607_v60 = vld [vmem:[%s11727_s5 + $0xb0] sm:$0xff]  }
 0x2df   : > { %v7807_v9 = vpop.f32.mrb[81].mxu1  ;;  %8045 = vmatpush3.bf16.msra.mxu0 %v8588_v1  ;;  %v8602_v46 = vld [vmem:[%s11727_s5 + $0x68] sm:$0xff]  }
 0x2e0   : > { %v7808_v21 = vadd.f32 %v7807_v9, %v7806_v28  ;;  %v7809_v61 = vpop.f32.mrb[82].mxu1  ;;  %8046 = vmatprep.subr.bf16.mxu0 %v8590_v23  ;;  %v8608_v23 = vld [vmem:[%s11727_s5 + $0x30] sm:$0xff]  }
 0x2e1   : > { %v7810_v27 = vpop.f32.mrb[83].mxu1  ;;  %8069 = vmatpush3.bf16.msra.mxu1 %v8591_v25  ;;  %v8610_v25 = vld [vmem:[%s11727_s5 + $0x78] sm:$0xff]  }
 0x2e2   : > { %v3630_v31 = vadd.f32 %v7808_v21, %v3565_v34  ;;  %v7811_v37 = vadd.f32 %v7810_v27, %v7809_v61  ;;  %8070 = vmatprep.subr.bf16.mxu1 %v8593_v47 }
 0x2e3   : > { %8047 = vmatpush3.bf16.msra.mxu0 %v8592_v51 }
 0x2e4   : > { %v11136_v17 = vadd.f32 %v10946_v26, %v3630_v31  ;;  %v3633_v10 = vadd.f32 %v7811_v37, %v11075_v42  ;;  %v8594_v26 = vld [vmem:[%s11727_s5 + $0x58] sm:$0xff]  }
 0x2e5   : > { %v8595_v42 = vld [vmem:[%s11727_s5 + $0x98] sm:$0xff]   ;;  %8048 = vmatprep.subr.bf16.mxu0 %v8594_v26  ;;  %v8614_v26 = vld [vmem:[%s11727_s5 + $0x140] sm:$0xff]  }
 0x2e6   : > { %v11140_v34 = vadd.f32 %v10954_v39, %v3633_v10  ;;  %v7812_v57 = vpop.f32.mrb[84].mxu1  ;;  %v8596_v39 = vld [vmem:[%s11727_s5 + $0x18] sm:$0xff]   ;;  %8071 = vmatpush3.bf16.msra.mxu1 %v8595_v42 }
 0x2e7   : > { %v7813_v7 = vpop.f32.mrb[85].mxu1  ;;  %8049 = vmatpush3.bf16.msra.mxu0 %v8596_v39  ;;  %8072 = vmatprep.subr.bf16.mxu1 %v8597_v53 }
 0x2e8   : > { %v7814_v35 = vadd.f32 %v7813_v7, %v7812_v57  ;;  %v7815_v54 = vpop.f32.mrb[86].mxu1  ;;  %8050 = vmatprep.subr.bf16.mxu0 %v8598_v36 }
 0x2e9   : > { %v7816_v6 = vpop.f32.mrb[87].mxu1 }
 0x2ea   : > { %v3638_v48 = vadd.f32 %v7814_v35, %v11078_v15  ;;  %v7817_v8 = vadd.f32 %v7816_v6, %v7815_v54  ;;  %v8601_v15 = vld [vmem:[%s11727_s5 + $0xe8] sm:$0xff]   ;;  %8073 = vmatpush3.bf16.msra.mxu1 %v8599_v58 }
 0x2eb   : > { %8051 = vmatpush3.bf16.msra.mxu0 %v8600_v19  ;;  %8074 = vmatprep.subr.bf16.mxu1 %v8601_v15 }
 0x2ec   : > { %v11168_v50 = vadd.f32 %v10939_v40, %v3638_v48  ;;  %v3641_v32 = vadd.f32 %v7817_v8, %v11081_v22  ;;  %v8603_v40 = vld [vmem:[%s11727_s5 + $0xa8] sm:$0xff]   ;;  %8052 = vmatprep.subr.bf16.mxu0 %v8602_v46 }
 0x2ed   : > { %v8604_v22 = vld [vmem:[%s11727_s5 + $0x28] sm:$0xff]  }
 0x2ee   : > { %v11178_v28 = vadd.f32 %v10948_v29, %v3641_v32  ;;  %v7818_v9 = vpop.f32.mrb[88].mxu1  ;;  %v8605_v29 = vld [vmem:[%s11727_s5 + $0xf0] sm:$0xff]   ;;  %8075 = vmatpush3.bf16.msra.mxu1 %v8603_v40 }
 0x2ef   : > { %v7819_v21 = vpop.f32.mrb[89].mxu1  ;;  %8053 = vmatpush3.bf16.msra.mxu0 %v8604_v22  ;;  %8076 = vmatprep.subr.bf16.mxu1 %v8605_v29 }
 0x2f0   : > { %v7820_v61 = vadd.f32 %v7819_v21, %v7818_v9  ;;  %v7821_v59 = vpop.f32.mrb[90].mxu1  ;;  %8054 = vmatprep.subr.bf16.mxu0 %v8606_v44 }
 0x2f1   : > { %v7822_v30 = vpop.f32.mrb[91].mxu1 }
 0x2f2   : > { %v3646_v27 = vadd.f32 %v7820_v61, %v11084_v45  ;;  %v7823_v1 = vadd.f32 %v7822_v30, %v7821_v59  ;;  %v8609_v45 = vld [vmem:[%s11727_s5 + $0xf8] sm:$0xff]   ;;  %8077 = vmatpush3.bf16.msra.mxu1 %v8607_v60 }
 0x2f3   : > { %8055 = vmatpush3.bf16.msra.mxu0 %v8608_v23  ;;  %8078 = vmatprep.subr.bf16.mxu1 %v8609_v45 }
 0x2f4   : > { %v11200_v31 = vadd.f32 %v10979_v49, %v3646_v27  ;;  %v3649_v37 = vadd.f32 %v7823_v1, %v11089_v63  ;;  %v8611_v49 = vld [vmem:[%s11727_s5 + $0xb8] sm:$0xff]   ;;  %8056 = vmatprep.subr.bf16.mxu0 %v8610_v25 }
 0x2f5   : > { %v8612_v63 = vld [vmem:[%s11727_s5 + $0x38] sm:$0xff]  }
 0x2f6   : > { %v11210_v51 = vadd.f32 %v10984_v20, %v3649_v37  ;;  %v7824_v10 = vpop.f32.mrb[92].mxu1  ;;  %v8613_v20 = vld [vmem:[%s11727_s5 + $0x1c0] sm:$0xff]   ;;  %8079 = vmatpush3.bf16.msra.mxu1 %v8611_v49 }
 0x2f7   : > { %v7825_v57 = vpop.f32.mrb[93].mxu1  ;;  %8057 = vmatpush3.bf16.msra.mxu0 %v8612_v63  ;;  %8108 = vmatprep.subr.bf16.mxu1 %v8613_v20 }
 0x2f8   : > { %v7826_v7 = vadd.f32 %v7825_v57, %v7824_v10  ;;  %v7827_v47 = vpop.f32.mrb[94].mxu1  ;;  %8086 = vmatprep.subr.bf16.mxu0 %v8614_v26 }
 0x2f9   : > { %v7828_v42 = vpop.f32.mrb[95].mxu1 }
 0x2fa   : > { %v3654_v35 = vadd.f32 %v7826_v7, %v11106_v2  ;;  %v7829_v54 = vadd.f32 %v7828_v42, %v7827_v47 }
 0x2fc   : > { %v11226_v39 = vadd.f32 %v10973_v18, %v3654_v35  ;;  %v3657_v53 = vadd.f32 %v7829_v54, %v11109_v14 }
 0x2fe   : > { %v11230_v36 = vadd.f32 %v10981_v0, %v3657_v53  ;;  %v7858_v6 = vpop.f32.mrb[96].mxu1 }
 0x2ff   : > { %v7859_v48 = vpop.f32.mrb[97].mxu1 }
 0x300   : > { %v7860_v8 = vadd.f32 %v7859_v48, %v7858_v6  ;;  %v7861_v58 = vpop.f32.mrb[98].mxu1 }
 0x301   : > { %v7862_v19 = vpop.f32.mrb[99].mxu1 }
 0x302   : > { %v4585_v2 = vadd.f32 %v11032_v41, %v7860_v8  ;;  %v7863_v32 = vadd.f32 %v7862_v19, %v7861_v58 }
 0x304   : > { %v4588_v15 = vadd.f32 %v11036_v56, %v7863_v32 }
 0x306   : > { %v7864_v46 = vpop.f32.mrb[100].mxu1 }
 0x307   : > { %v7865_v18 = vpop.f32.mrb[101].mxu1 }
 0x308   : > { %v7866_v9 = vadd.f32 %v7865_v18, %v7864_v46  ;;  %v7867_v21 = vpop.f32.mrb[102].mxu1 }
 0x309   : > { %v7868_v14 = vpop.f32.mrb[103].mxu1 }
 0x30a   : > { %v4593_v40 = vadd.f32 %v11042_v55, %v7866_v9  ;;  %v7869_v22 = vadd.f32 %v7868_v14, %v7867_v21 }
 0x30c   : > { %v4596_v0 = vadd.f32 %v11044_v62, %v7869_v22 }
 0x30e   : > { %v7870_v61 = vpop.f32.mrb[104].mxu1 }
 0x30f   : > { %v7871_v59 = vpop.f32.mrb[105].mxu1 }
 0x310   : > { %v7872_v29 = vadd.f32 %v7871_v59, %v7870_v61  ;;  %v7873_v44 = vpop.f32.mrb[106].mxu1 }
 0x311   : > { %v7874_v30 = vpop.f32.mrb[107].mxu1 }
 0x312   : > { %v4601_v41 = vadd.f32 %v11049_v4, %v7872_v29  ;;  %v7875_v27 = vadd.f32 %v7874_v30, %v7873_v44 }
 0x314   : > { %v4604_v56 = vadd.f32 %v11051_v13, %v7875_v27 }
 0x316   : > { %v7876_v1 = vpop.f32.mrb[108].mxu1 }
 0x317   : > { %v7877_v60 = vpop.f32.mrb[109].mxu1 }
 0x318   : > { %v7878_v23 = vadd.f32 %v7877_v60, %v7876_v1  ;;  %v7879_v37 = vpop.f32.mrb[110].mxu1  ;;  %v11258_v60 = vld [vmem:[%s11726_s4] ss:$0 sm:$0xff] }
 0x319   : > { %v7880_v45 = vpop.f32.mrb[111].mxu1 }
 0x31a   : > { %v4609_v55 = vadd.f32 %v11055_v5, %v7878_v23  ;;  %v7881_v25 = vadd.f32 %v7880_v45, %v7879_v37 }
 0x31c   : > { %v4612_v62 = vadd.f32 %v11057_v12, %v7881_v25 }
 0x31e   : > { %v7938_v10 = vpop.f32.mrb[112].mxu1 }
 0x31f   : > { %v7939_v57 = vpop.f32.mrb[113].mxu1 }
 0x320   : > { %v7940_v49 = vadd.f32 %v7939_v57, %v7938_v10  ;;  %v7941_v63 = vpop.f32.mrb[114].mxu1 }
 0x321   : > { %v7942_v7 = vpop.f32.mrb[115].mxu1 }
 0x322   : > { %v4650_v47 = vadd.f32 %v7940_v49, %v4585_v2  ;;  %v7943_v4 = vadd.f32 %v7942_v7, %v7941_v63 }
 0x324   : > { %v4680_v20 = vadd.f32 %v4650_v47, %v11136_v17  ;;  %v4653_v13 = vadd.f32 %v7943_v4, %v4588_v15 }
 0x326   : > { %v4681_v26 = vadd.f32 %v4653_v13, %v11140_v34  ;;  %v7944_v42 = vpop.f32.mrb[116].mxu1 }
 0x327   : > { %v7945_v35 = vpop.f32.mrb[117].mxu1 }
 0x328   : > { %v7946_v54 = vadd.f32 %v7945_v35, %v7944_v42  ;;  %v7947_v53 = vpop.f32.mrb[118].mxu1 }
 0x329   : > { %v7948_v5 = vpop.f32.mrb[119].mxu1 }
 0x32a   : > { %v4658_v6 = vadd.f32 %v7946_v54, %v4593_v40  ;;  %v7949_v48 = vadd.f32 %v7948_v5, %v7947_v53 }
 0x32c   : > { %v4682_v12 = vadd.f32 %v4658_v6, %v11168_v50  ;;  %v4661_v8 = vadd.f32 %v7949_v48, %v4596_v0 }
 0x32e   : > { %v4683_v58 = vadd.f32 %v4661_v8, %v11178_v28  ;;  %v7950_v19 = vpop.f32.mrb[120].mxu1 }
 0x32f   : > { %v7951_v2 = vpop.f32.mrb[121].mxu1 }
 0x330   : > { %v7952_v32 = vadd.f32 %v7951_v2, %v7950_v19  ;;  %v7953_v46 = vpop.f32.mrb[122].mxu1 }
 0x331   : > { %v7954_v17 = vpop.f32.mrb[123].mxu1 }
 0x332   : > { %v4666_v15 = vadd.f32 %v7952_v32, %v4601_v41  ;;  %v7955_v18 = vadd.f32 %v7954_v17, %v7953_v46 }
 0x334   : > { %v4684_v34 = vadd.f32 %v4666_v15, %v11200_v31  ;;  %v4669_v9 = vadd.f32 %v7955_v18, %v4604_v56 }
 0x336   : > { %v11246_v21 = vadd.f32 %v4669_v9, %v11210_v51  ;;  %v7956_v14 = vpop.f32.mrb[124].mxu1 }
 0x337   : > { %v7957_v40 = vpop.f32.mrb[125].mxu1 }
 0x338   : > { %v7958_v22 = vadd.f32 %v7957_v40, %v7956_v14  ;;  %v7959_v50 = vpop.f32.mrb[126].mxu1 }
 0x339   : > { %v7960_v0 = vpop.f32.mrb[127].mxu1 }
 0x33a   : > { %v4674_v61 = vadd.f32 %v7958_v22, %v4609_v55  ;;  %v7961_v28 = vadd.f32 %v7960_v0, %v7959_v50 }
 0x33c   : > { %v11249_v59 = vadd.f32 %v4674_v61, %v11226_v39  ;;  %v4677_v29 = vadd.f32 %v7961_v28, %v4612_v62 }
 0x33e   : > { %v11252_v44 = vadd.f32 %v4677_v29, %v11230_v36  ;;  %v8018_v30 = vpop.f32.mrb[128].mxu1 }
 0x33f   : > { %v8019_v31 = vpop.f32.mrb[129].mxu1 }
 0x340   : > { %v8020_v41 = vadd.f32 %v8019_v31, %v8018_v30  ;;  %v8021_v27 = vpop.f32.mrb[130].mxu1 }
 0x341   : > { %v8022_v51 = vpop.f32.mrb[131].mxu1 }
 0x342   : > { %v5400_v56 = vadd.f32 %v8020_v41, %v11061_v52  ;;  %v8023_v1 = vadd.f32 %v8022_v51, %v8021_v27 }
 0x344   : > { %v5430_v23 = vadd.f32 %v5400_v56, %v4680_v20  ;;  %v5403_v39 = vadd.f32 %v8023_v1, %v11063_v43 }
 0x346   : > { %v5445_v37 = vadd.f32 %v11258_v60, %v5430_v23  ;;  %v5431_v36 = vadd.f32 %v5403_v39, %v4681_v26  ;;  %v8024_v45 = vpop.f32.mrb[132].mxu1 }
 0x347   : > { %v8025_v55 = vpop.f32.mrb[133].mxu1 }
 0x348   : > { %v5461_v25 = vmul.f32 0.01, %v5445_v37  ;;  %v5446_v62 = vadd.f32 %v11258_v60, %v5431_v36  ;;  %v8026_v10 = vadd.f32 %v8025_v55, %v8024_v45  ;;  %v8027_v57 = vpop.f32.mrb[134].mxu1  ;;  %vm5453_vm11 = vcmp.gt.f32.partialorder %v5445_v37, 0.0 }
 0x349   : > { %v8028_v52 = vpop.f32.mrb[135].mxu1 }
 0x34a   : > { %vm5454_vm12 = vcmp.gt.f32.partialorder %v5446_v62, 0.0  ;;  %v5462_v49 = vmul.f32 0.01, %v5446_v62  ;;  %v5408_v63 = vadd.f32 %v8026_v10, %v11065_v24  ;;  %v8029_v7 = vadd.f32 %v8028_v52, %v8027_v57 }
 0x34b   : > { %v5469_v47 = vsel %vm5453_vm11, %v5445_v37, %v5461_v25 }
 0x34c   : > { %v5470_v4 = vsel %vm5454_vm12, %v5446_v62, %v5462_v49  ;;  %v5432_v43 = vadd.f32 %v5408_v63, %v4682_v12  ;;  %v5411_v13 = vadd.f32 %v8029_v7, %v11067_v33 }
 0x34d   : > { %v5477_v20 = vpack.c.bf16 %v5470_v4, %v5469_v47 }
 0x34e   : > { %v5447_v26 = vadd.f32 %v11258_v60, %v5432_v43  ;;  %v8030_v42 = vpop.f32.mrb[136].mxu1  ;;  %v5433_v35 = vadd.f32 %v5411_v13, %v4683_v58 }
 0x34f   : > { %v8031_v54 = vpop.f32.mrb[137].mxu1  ;;  %v11266_v53 = vunpack.c.l.b16 %v5477_v20  ;;  %v11270_v2 = vunpack.c.h.b16 %v5477_v20 }
 0x350   : > { %v8032_v5 = vadd.f32 %v8031_v54, %v8030_v42  ;;  %v8033_v6 = vpop.f32.mrb[138].mxu1  ;;  %v5463_v48 = vmul.f32 0.01, %v5447_v26  ;;  %v5448_v8 = vadd.f32 %v11258_v60, %v5433_v35  ;;  %vm5455_vm13 = vcmp.gt.f32.partialorder %v5447_v26, 0.0 }
 0x351   : > { %v8034_v24 = vpop.f32.mrb[139].mxu1  ;;  %v5516_v46 = vrot.slane %v11266_v53, 3  ;;  %v5500_v18 = vrot.slane %v11266_v53, 1  ;;  %v5508_v9 = vrot.slane %v11266_v53, 2  ;;  %v5551_v50 = vrot.slane %v11266_v53, 7 }
 0x352   : > { %v5416_v19 = vadd.f32 %v8032_v5, %v11069_v16  ;;  %v8035_v12 = vadd.f32 %v8034_v24, %v8033_v6  ;;  %vm5456_vm14 = vcmp.gt.f32.partialorder %v5448_v8, 0.0  ;;  %v5464_v33 = vmul.f32 0.01, %v5448_v8 }
 0x353   : > { %v5471_v17 = vsel %vm5455_vm13, %v5447_v26, %v5463_v48  ;;  %v5542_v0 = vrot.slane %v11266_v53, 6  ;;  %v5524_v61 = vrot.slane %v11266_v53, 4  ;;  %v5588_v28 = vrot.slane %v11270_v2, 3 }
 0x354   : > { %v5434_v32 = vadd.f32 %v5416_v19, %v4684_v34  ;;  %v5419_v58 = vadd.f32 %v8035_v12, %v11071_v3  ;;  %v5472_v15 = vsel %vm5456_vm14, %v5448_v8, %v5464_v33  ;;  %v5533_v3 = vrot.slane %v11266_v53, 5 }
 0x355   : > { %v5478_v14 = vpack.c.bf16 %v5472_v15, %v5471_v17  ;;  %v5572_v41 = vrot.slane %v11270_v2, 1  ;;  %v5580_v1 = vrot.slane %v11270_v2, 2 }
 0x356   : > { %v5449_v16 = vadd.f32 %v11258_v60, %v5434_v32  ;;  %v5435_v40 = vadd.f32 %v5419_v58, %v11246_v21  ;;  %v8036_v22 = vpop.f32.mrb[140].mxu1 }
 0x357   : > { %v8037_v34 = vpop.f32.mrb[141].mxu1  ;;  %v5486_v29 = vunpack.c.l.b16 %v5478_v14  ;;  %v11284_v21 = vunpack.c.h.b16 %v5478_v14 }
 0x358   : > { %vm5457_vm0 = vcmp.gt.f32.partialorder %v5449_v16, 0.0  ;;  %v5465_v30 = vmul.f32 0.01, %v5449_v16  ;;  %v8039_v31 = vpop.f32.mrb[142].mxu1  ;;  %v5450_v27 = vadd.f32 %v11258_v60, %v5435_v40  ;;  %v8038_v51 = vadd.f32 %v8037_v34, %v8036_v22 }
 0x359   : > { %v8040_v56 = vpop.f32.mrb[143].mxu1  ;;  %v5517_v37 = vrot.slane %v5486_v29, 2  ;;  %v5501_v36 = vsel %vm5490_vm15, %v5486_v29, %v5500_v18  ;;  %v5509_v25 = vrot.slane %v5486_v29, 1  ;;  %v5489_v57 = vrot.slane %v5486_v29, 7 }
 0x35a   : > { %v5473_v23 = vsel %vm5457_vm0, %v5449_v16, %v5465_v30  ;;  %v8041_v39 = vadd.f32 %v8040_v56, %v8039_v31  ;;  %vm5458_vm3 = vcmp.gt.f32.partialorder %v5450_v27, 0.0  ;;  %v5466_v45 = vmul.f32 0.01, %v5450_v27 }
 0x35b   : > { %v5424_v55 = vadd.f32 %v8038_v51, %v11086_v11  ;;  %v5518_v10 = vsel %vm5490_vm15, %v5517_v37, %v5516_v46  ;;  %v5552_v52 = vrot.slane %v5486_v29, 6  ;;  %v5510_v7 = vsel %vm5490_vm15, %v5509_v25, %v5508_v9  ;;  %v8615_v25 = vld [vmem:[%s11727_s5 + $0x180] sm:$0xff]  }
 0x35c   : > { %v5427_v62 = vadd.f32 %v8041_v39, %v11091_v38  ;;  %v5474_v49 = vsel %vm5458_vm3, %v5450_v27, %v5466_v45  ;;  %v5534_v47 = vrot.slane %v5486_v29, 4  ;;  %v5491_v11 = vsel %vm5490_vm15, %v5489_v57, %v11266_v53 }
 0x35d   : > { %v5436_v63 = vadd.f32 %v5424_v55, %v11249_v59  ;;  %v5479_v4 = vpack.c.bf16 %v5474_v49, %v5473_v23  ;;  %v5553_v20 = vsel %vm5490_vm15, %v5552_v52, %v5551_v50  ;;  %v5543_v26 = vrot.slane %v5486_v29, 5 }
 0x35e   : > { %v5437_v43 = vadd.f32 %v5427_v62, %v11252_v44  ;;  %v5535_v13 = vsel %vm5490_vm15, %v5534_v47, %v5533_v3  ;;  %v5525_v42 = vrot.slane %v5486_v29, 3  ;;  %v5589_v5 = vrot.slane %v11284_v21, 2 }
 0x35f   : > { %v5451_v38 = vadd.f32 %v11258_v60, %v5436_v63  ;;  %v5487_v35 = vunpack.c.l.b16 %v5479_v4  ;;  %v11300_v59 = vunpack.c.h.b16 %v5479_v4  ;;  %v5544_v6 = vsel %vm5490_vm15, %v5543_v26, %v5542_v0  ;;  %v8616_v63 = vld [vmem:[%s11727_s5 + $0x100] sm:$0xff]  }
 0x360   : > { %v5452_v54 = vadd.f32 %v11258_v60, %v5437_v43  ;;  %v5526_v53 = vsel %vm5490_vm15, %v5525_v42, %v5524_v61  ;;  %v5590_v22 = vsel %vm5490_vm15, %v5589_v5, %v5588_v28  ;;  %v5573_v61 = vsel %vm5490_vm15, %v11284_v21, %v5572_v41  ;;  %v8617_v43 = vld [vmem:[%s11727_s5 + $0x1c8] sm:$0xff]  }
 0x361   : > { %vm5459_vm5 = vcmp.gt.f32.partialorder %v5451_v38, 0.0  ;;  %v5467_v44 = vmul.f32 0.01, %v5451_v38  ;;  %v5519_v8 = vrot.slane %v5487_v35, 1  ;;  %v5502_v24 = vrot.slane %v5487_v35, 7  ;;  %v8619_v42 = vld [vmem:[%s11727_s5 + $0x188] sm:$0xff]  }
 0x362   : > { %vm5460_vm6 = vcmp.gt.f32.partialorder %v5452_v54, 0.0  ;;  %v5468_v48 = vmul.f32 0.01, %v5452_v54  ;;  %v5511_v12 = vsel %vm5493_vm1, %v5487_v35, %v5510_v7  ;;  %v5492_v33 = vrot.slane %v5487_v35, 6 }
 0x363   : > { %v5475_v19 = vsel %vm5459_vm5, %v5451_v38, %v5467_v44  ;;  %v5554_v32 = vrot.slane %v5487_v35, 5  ;;  %v5520_v60 = vsel %vm5493_vm1, %v5519_v8, %v5518_v10  ;;  %v5503_v46 = vsel %vm5493_vm1, %v5502_v24, %v5501_v36 }
 0x364   : > { %v5476_v58 = vsel %vm5460_vm6, %v5452_v54, %v5468_v48  ;;  %v5536_v17 = vrot.slane %v5487_v35, 3  ;;  %v5494_v18 = vsel %vm5493_vm1, %v5492_v33, %v5491_v11  ;;  %v5545_v14 = vrot.slane %v5487_v35, 4 }
 0x365   : > { %v5480_v15 = vpack.c.bf16 %v5476_v58, %v5475_v19  ;;  %v5555_v9 = vsel %vm5493_vm1, %v5554_v32, %v5553_v20  ;;  %v5527_v40 = vrot.slane %v5487_v35, 2  ;;  %v5591_v50 = vrot.slane %v11300_v59, 1  ;;  %v8622_v19 = vld [vmem:[%s11727_s5 + $0x150] sm:$0xff]  }
 0x366   : > { %v5537_v16 = vsel %vm5493_vm1, %v5536_v17, %v5535_v13  ;;  %v5546_v0 = vsel %vm5493_vm1, %v5545_v14, %v5544_v6  ;;  %v5574_v31 = vrot.slane %v11300_v59, 7  ;;  %v5581_v28 = vrot.slane %v11284_v21, 1  ;;  %v8618_v13 = vld [vmem:[%s11727_s5 + $0x148] sm:$0xff]  }
 0x367   : > { %v5488_v34 = vunpack.c.l.b16 %v5480_v15  ;;  %v11316_v3 = vunpack.c.h.b16 %v5480_v15  ;;  %v5528_v29 = vsel %vm5493_vm1, %v5527_v40, %v5526_v53  ;;  %v5592_v30 = vsel %vm5493_vm1, %v5591_v50, %v5590_v22  ;;  %v8620_v6 = vld [vmem:[%s11727_s5 + $0x108] sm:$0xff]   ;;  %v8621_v53 = vld [vmem:[%s11727_s5 + $0x1d0] sm:$0xff]   ;;  %v8625_v50 = vld [vmem:[%s11727_s5 + $0x1d8] sm:$0xff]  }
 0x368   : > { %v5575_v54 = vsel %vm5493_vm1, %v5574_v31, %v5573_v61  ;;  %v5582_v5 = vsel %vm5490_vm15, %v5581_v28, %v5580_v1  ;;  %v5564_v1 = vrot.slane %v11284_v21, 7  ;;  %v5623_v24 = vrot.slane %v11270_v2, 7  ;;  %v8624_v22 = vld [vmem:[%s11727_s5 + $0x110] sm:$0xff]  }
 0x369   : > { %v5521_v27 = vsel %vm5496_vm4, %v5488_v34, %v5520_v60  ;;  %v5504_v51 = vrot.slane %v5488_v34, 6  ;;  %v5512_v56 = vrot.slane %v5488_v34, 7  ;;  %v5495_v23 = vrot.slane %v5488_v34, 5 }
 0x36a   : > { %v5522_v39 = vpack.c.b16 %v5521_v27, %v5521_v27  ;;  %v5556_v37 = vrot.slane %v5488_v34, 4  ;;  %v5538_v36 = vrot.slane %v5488_v34, 2  ;;  %v5547_v45 = vrot.slane %v5488_v34, 3 }
 0x36b   : > { %v5505_v55 = vsel %vm5496_vm4, %v5504_v51, %v5503_v46  ;;  %v5513_v41 = vsel %vm5496_vm4, %v5512_v56, %v5511_v12  ;;  %v5497_v62 = vsel %vm5496_vm4, %v5495_v23, %v5494_v18  ;;  %v5529_v10 = vrot.slane %v5488_v34, 1  ;;  %v8623_v18 = vld [vmem:[%s11727_s5 + $0x190] sm:$0xff]  }
 0x36c   : > { %6735 = vmatprep.mubr.bf16.mxu1 %v5522_v39  ;;  %v5506_v57 = vpack.c.b16 %v5505_v55, %v5505_v55  ;;  %v5514_v52 = vpack.c.b16 %v5513_v41, %v5513_v41  ;;  %v5498_v49 = vpack.c.b16 %v5497_v62, %v5497_v62  ;;  %v5557_v7 = vsel %vm5496_vm4, %v5556_v37, %v5555_v9  ;;  %v8627_v37 = vld [vmem:[%s11727_s5 + $0x198] sm:$0xff]   ;;  %v8629_v62 = vld [vmem:[%s11727_s5 + $0x1e0] sm:$0xff]  }
 0x36d   : > { %v5558_v47 = vpack.c.b16 %v5557_v7, %v5557_v7  ;;  %v5539_v4 = vsel %vm5496_vm4, %v5538_v36, %v5537_v16  ;;  %v11343_v11 = vsel %vm5496_vm4, %v5547_v45, %v5546_v0  ;;  %v11346_v20 = vsel %vm5496_vm4, %v5529_v10, %v5528_v29 }
 0x36e   : > { %6695 = vmatprep.mubr.bf16.mxu0 %v5506_v57  ;;  %6736 = vmatmul.mubr.bf16.vlgmr.msra.gmra.mrb[144].mxu1 %v5514_v52  ;;  %v5540_v38 = vpack.c.b16 %v5539_v4, %v5539_v4  ;;  %v5576_v26 = vrot.slane %v11316_v3, 6  ;;  %v11357_v35 = vsel %vm5496_vm4, %v11316_v3, %v5592_v30  ;;  %v5584_v44 = vrot.slane %v11316_v3, 7  ;;  %v8626_v30 = vld [vmem:[%s11727_s5 + $0x158] sm:$0xff]   ;;  %v8635_v4 = vld [vmem:[%s11727_s5 + $0x1a8] sm:$0xff]  }
 0x36f   : > { %8109 = vmatpush3.bf16.msra.mxu1 %v8615_v25  ;;  %6696 = vmatmul.mubr.bf16.vlgmr.msra.gmra.mrb[136].mxu0 %v5498_v49  ;;  %v5583_v8 = vsel %vm5493_vm1, %v11300_v59, %v5582_v5  ;;  %v5566_v33 = vrot.slane %v11300_v59, 6  ;;  %v5568_v32 = vrot.slane %v11316_v3, 5  ;;  %v5605_v58 = vrot.slane %v11270_v2, 5  ;;  %v8628_v25 = vld [vmem:[%s11727_s5 + $0x118] sm:$0xff]  }
 0x370   : > { %8087 = vmatpush3.bf16.msra.mxu0 %v8616_v63  ;;  %6815 = vmatprep.mubr.bf16.mxu1 %v5558_v47  ;;  %v11371_v48 = vsel %vm5496_vm4, %v5576_v26, %v5575_v54  ;;  %v11381_v12 = vsel %vm5496_vm4, %v5584_v44, %v5583_v8  ;;  %v5565_v60 = vsel %vm5490_vm15, %v5564_v1, %v11270_v2  ;;  %v5624_v46 = vrot.slane %v11284_v21, 6  ;;  %v8631_v63 = vld [vmem:[%s11727_s5 + $0x1a0] sm:$0xff]   ;;  %v8634_v47 = vld [vmem:[%s11727_s5 + $0x168] sm:$0xff]   ;;  %v8639_v26 = vld [vmem:[%s11727_s5 + $0x1b0] sm:$0xff]  }
 0x371   : > { %6775 = vmatprep.mubr.bf16.mxu0 %v5540_v38  ;;  %8110 = vmatprep.subr.bf16.mxu1 %v8617_v43  ;;  %v5626_v17 = vrot.slane %v11300_v59, 5  ;;  %v5614_v15 = vrot.slane %v11270_v2, 6  ;;  %v5567_v9 = vsel %vm5493_vm1, %v5566_v33, %v5565_v60  ;;  %v5628_v14 = vrot.slane %v11316_v3, 4  ;;  %v8636_v43 = vld [vmem:[%s11727_s5 + $0x128] sm:$0xff]   ;;  %v8637_v38 = vld [vmem:[%s11727_s5 + $0x1f0] sm:$0xff]   ;;  %v8641_v54 = vld [vmem:[%s11727_s5 + $0x1f8] sm:$0xff]  }
 0x372   : > { %8088 = vmatprep.subr.bf16.mxu0 %v8618_v13  ;;  %v5606_v16 = vrot.slane %v11284_v21, 4  ;;  %v5608_v40 = vrot.slane %v11300_v59, 3  ;;  %v11405_v34 = vsel %vm5496_vm4, %v5568_v32, %v5567_v9  ;;  %v5625_v0 = vsel %vm5490_vm15, %v5624_v46, %v5623_v24  ;;  %v8638_v13 = vld [vmem:[%s11727_s5 + $0x170] sm:$0xff]   ;;  %v8642_v5 = vld [vmem:[%s11727_s5 + $0x178] sm:$0xff]   ;;  %v8646_v8 = vld [vmem:[%s11727_s5 + $0x240] sm:$0xff]  }
 0x373   : > { %8111 = vmatpush3.bf16.msra.mxu1 %v8619_v42  ;;  %v5610_v61 = vrot.slane %v11316_v3, 2  ;;  %v5615_v29 = vrot.slane %v11284_v21, 5  ;;  %v5627_v31 = vsel %vm5493_vm1, %v5626_v17, %v5625_v0  ;;  %v5617_v27 = vrot.slane %v11300_v59, 4  ;;  %v8640_v42 = vld [vmem:[%s11727_s5 + $0x130] sm:$0xff]   ;;  %v8643_v44 = vld [vmem:[%s11727_s5 + $0x1b8] sm:$0xff]   ;;  %v8647_v1 = vld [vmem:[%s11727_s5 + $0x280] sm:$0xff]  }
 0x374   : > { %8089 = vmatpush3.bf16.msra.mxu0 %v8620_v6  ;;  %8112 = vmatprep.subr.bf16.mxu1 %v8621_v53  ;;  %v5607_v28 = vsel %vm5490_vm15, %v5606_v16, %v5605_v58  ;;  %v11417_v51 = vsel %vm5496_vm4, %v5628_v14, %v5627_v31  ;;  %v5619_v39 = vrot.slane %v11316_v3, 3  ;;  %v5596_v55 = vrot.slane %v11270_v2, 4  ;;  %v8630_v2 = vld [vmem:[%s11727_s5 + $0x160] sm:$0xff]   ;;  %v8644_v6 = vld [vmem:[%s11727_s5 + $0x138] sm:$0xff]   ;;  %v8649_v32 = vld [vmem:[%s11727_s5 + $0x2c8] sm:$0xff]  }
 0x375   : > { %8090 = vmatprep.subr.bf16.mxu0 %v8622_v19  ;;  %v5609_v56 = vsel %vm5493_vm1, %v5608_v40, %v5607_v28  ;;  %v5616_v23 = vsel %vm5490_vm15, %v5615_v29, %v5614_v15  ;;  %v5597_v41 = vrot.slane %v11284_v21, 3  ;;  %v5599_v57 = vrot.slane %v11300_v59, 2  ;;  %v8632_v59 = vld [vmem:[%s11727_s5 + $0x120] sm:$0xff]   ;;  %v8652_v46 = vld [vmem:[%s11727_s5 + $0x208] sm:$0xff]   ;;  %v8655_v17 = vld [vmem:[%s11727_s5 + $0x290] sm:$0xff]  }
 0x376   : > { %v11426_v36 = vsel %vm5496_vm4, %v5610_v61, %v5609_v56  ;;  %v5618_v45 = vsel %vm5493_vm1, %v5617_v27, %v5616_v23  ;;  %v5601_v52 = vrot.slane %v11316_v3, 1  ;;  %v8633_v3 = vld [vmem:[%s11727_s5 + $0x1e8] sm:$0xff]   ;;  %v8645_v53 = vld [vmem:[%s11727_s5 + $0x2c0] sm:$0xff]   ;;  %v5549_v24 = vpack.c.b16 %v11343_v11, %v11343_v11  ;;  %v8656_v15 = vld [vmem:[%s11727_s5 + $0x210] sm:$0xff]  }
 0x377   : > { %8113 = vmatpush3.bf16.msra.mxu1 %v8623_v18  ;;  %v11438_v10 = vsel %vm5496_vm4, %v5619_v39, %v5618_v45  ;;  %v5598_v21 = vsel %vm5490_vm15, %v5597_v41, %v5596_v55  ;;  %v8648_v19 = vld [vmem:[%s11727_s5 + $0x200] sm:$0xff]   ;;  %v5531_v33 = vpack.c.b16 %v11346_v20, %v11346_v20  ;;  %v5594_v58 = vpack.c.b16 %v11357_v35, %v11357_v35  ;;  %v8650_v11 = vld [vmem:[%s11727_s5 + $0x248] sm:$0xff]   ;;  %v8653_v35 = vld [vmem:[%s11727_s5 + $0x2d0] sm:$0xff]  }
 0x378   : > { %8091 = vmatpush3.bf16.msra.mxu0 %v8624_v22  ;;  %8114 = vmatprep.subr.bf16.mxu1 %v8625_v50  ;;  %v5600_v49 = vsel %vm5493_vm1, %v5599_v57, %v5598_v21  ;;  %v5578_v60 = vpack.c.b16 %v11371_v48, %v11371_v48  ;;  %v8651_v20 = vld [vmem:[%s11727_s5 + $0x288] sm:$0xff]   ;;  %v8654_v48 = vld [vmem:[%s11727_s5 + $0x250] sm:$0xff]   ;;  %v8657_v18 = vld [vmem:[%s11727_s5 + $0x2d8] sm:$0xff]   ;;  %v5586_v57 = vpack.c.b16 %v11381_v12, %v11381_v12 }
 0x379   : > { %8092 = vmatprep.subr.bf16.mxu0 %v8626_v30  ;;  %v11451_v7 = vsel %vm5496_vm4, %v5601_v52, %v5600_v49  ;;  %v8658_v9 = vld [vmem:[%s11727_s5 + $0x258] sm:$0xff]   ;;  %v8661_v40 = vld [vmem:[%s11727_s5 + $0x2e0] sm:$0xff]   ;;  %v8665_v61 = vld [vmem:[%s11727_s5 + $0x2e8] sm:$0xff]   ;;  %v5630_v49 = vpack.c.b16 %v11417_v51, %v11417_v51 }
 0x37a   : > { %v8659_v14 = vld [vmem:[%s11727_s5 + $0x298] sm:$0xff]   ;;  %v8662_v22 = vld [vmem:[%s11727_s5 + $0x260] sm:$0xff]   ;;  %v8666_v29 = vld [vmem:[%s11727_s5 + $0x268] sm:$0xff]  }
 0x37b   : > { %8115 = vmatpush3.bf16.msra.mxu1 %v8627_v37  ;;  %v8660_v16 = vld [vmem:[%s11727_s5 + $0x218] sm:$0xff]   ;;  %v8663_v50 = vld [vmem:[%s11727_s5 + $0x2a0] sm:$0xff]   ;;  %v8667_v30 = vld [vmem:[%s11727_s5 + $0x2a8] sm:$0xff]  }
 0x37c   : > { %8093 = vmatpush3.bf16.msra.mxu0 %v8628_v25  ;;  %8116 = vmatprep.subr.bf16.mxu1 %v8629_v62  ;;  %v8664_v0 = vld [vmem:[%s11727_s5 + $0x220] sm:$0xff]   ;;  %v8668_v31 = vld [vmem:[%s11727_s5 + $0x228] sm:$0xff]   ;;  %v8669_v28 = vld [vmem:[%s11727_s5 + $0x2f0] sm:$0xff]  }
 0x37d   : > { %8094 = vmatprep.subr.bf16.mxu0 %v8630_v2  ;;  %v8670_v27 = vld [vmem:[%s11727_s5 + $0x270] sm:$0xff]   ;;  %v8673_v39 = vld [vmem:[%s11727_s5 + $0x2f8] sm:$0xff]   ;;  %v8677_v41 = vld [vmem:[%s11727_s5 + $0x3c0] sm:$0xff]   ;;  %v5570_v2 = vpack.c.b16 %v11405_v34, %v11405_v34 }
 0x37e   : > { %v8671_v56 = vld [vmem:[%s11727_s5 + $0x2b0] sm:$0xff]   ;;  %v8674_v37 = vld [vmem:[%s11727_s5 + $0x278] sm:$0xff]   ;;  %v8678_v25 = vld [vmem:[%s11727_s5 + $0x340] sm:$0xff]  }
 0x37f   : > { %8117 = vmatpush3.bf16.msra.mxu1 %v8631_v63  ;;  %v8672_v23 = vld [vmem:[%s11727_s5 + $0x230] sm:$0xff]   ;;  %v8675_v45 = vld [vmem:[%s11727_s5 + $0x2b8] sm:$0xff]   ;;  %v8679_v62 = vld [vmem:[%s11727_s5 + $0x380] sm:$0xff]   ;;  %v5612_v63 = vpack.c.b16 %v11426_v36, %v11426_v36 }
 0x380   : > { %8095 = vmatpush3.bf16.msra.mxu0 %v8632_v59  ;;  %8118 = vmatprep.subr.bf16.mxu1 %v8633_v3  ;;  %v8676_v55 = vld [vmem:[%s11727_s5 + $0x238] sm:$0xff]   ;;  %v8680_v52 = vld [vmem:[%s11727_s5 + $0x300] sm:$0xff]   ;;  %v8681_v21 = vld [vmem:[%s11727_s5 + $0x3c8] sm:$0xff]  }
 0x381   : > { %8096 = vmatprep.subr.bf16.mxu0 %v8634_v47  ;;  %v8682_v12 = vld [vmem:[%s11727_s5 + $0x348] sm:$0xff]   ;;  %v8685_v51 = vld [vmem:[%s11727_s5 + $0x3d0] sm:$0xff]  }
 0x382   : > { %v8683_v34 = vld [vmem:[%s11727_s5 + $0x388] sm:$0xff]   ;;  %v8686_v36 = vld [vmem:[%s11727_s5 + $0x350] sm:$0xff]  }
 0x383   : > { %8119 = vmatpush3.bf16.msra.mxu1 %v8635_v4  ;;  %v8684_v59 = vld [vmem:[%s11727_s5 + $0x308] sm:$0xff]   ;;  %v8687_v3 = vld [vmem:[%s11727_s5 + $0x390] sm:$0xff]   ;;  %v8689_v4 = vld [vmem:[%s11727_s5 + $0x3d8] sm:$0xff]  }
 0x384   : > { %8097 = vmatpush3.bf16.msra.mxu0 %v8636_v43  ;;  %8120 = vmatprep.subr.bf16.mxu1 %v8637_v38  ;;  %v8688_v47 = vld [vmem:[%s11727_s5 + $0x310] sm:$0xff]   ;;  %v8690_v43 = vld [vmem:[%s11727_s5 + $0x358] sm:$0xff]  }
 0x385   : > { %8098 = vmatprep.subr.bf16.mxu0 %v8638_v13  ;;  %v8691_v38 = vld [vmem:[%s11727_s5 + $0x398] sm:$0xff]  }
 0x386   : > { %v8692_v13 = vld [vmem:[%s11727_s5 + $0x318] sm:$0xff]  }
 0x387   : > { %8121 = vmatpush3.bf16.msra.mxu1 %v8639_v26  ;;  %v8693_v26 = vld [vmem:[%s11727_s5 + $0x3e0] sm:$0xff]  }
 0x388   : > { %8099 = vmatpush3.bf16.msra.mxu0 %v8640_v42  ;;  %8122 = vmatprep.subr.bf16.mxu1 %v8641_v54  ;;  %v8694_v42 = vld [vmem:[%s11727_s5 + $0x360] sm:$0xff]  }
 0x389   : > { %8100 = vmatprep.subr.bf16.mxu0 %v8642_v5  ;;  %v8695_v54 = vld [vmem:[%s11727_s5 + $0x3a0] sm:$0xff]  }
 0x38a   : > { %v8696_v5 = vld [vmem:[%s11727_s5 + $0x320] sm:$0xff]  }
 0x38b   : > { %8123 = vmatpush3.bf16.msra.mxu1 %v8643_v44  ;;  %v8697_v44 = vld [vmem:[%s11727_s5 + $0x3e8] sm:$0xff]  }
 0x38c   : > { %8101 = vmatpush3.bf16.msra.mxu0 %v8644_v6  ;;  %8152 = vmatprep.subr.bf16.mxu1 %v8645_v53  ;;  %v8698_v6 = vld [vmem:[%s11727_s5 + $0x368] sm:$0xff]  }
 0x38d   : > { %8130 = vmatprep.subr.bf16.mxu0 %v8646_v8  ;;  %v8699_v53 = vld [vmem:[%s11727_s5 + $0x3a8] sm:$0xff]  }
 0x38e   : > { %6816 = vmatmul.mubr.bf16.vlgmr.msra.gmra.mrb[148].mxu1 %v5549_v24  ;;  %v8700_v8 = vld [vmem:[%s11727_s5 + $0x328] sm:$0xff]   ;;  %v8702_v24 = vld [vmem:[%s11727_s5 + $0x370] sm:$0xff]  }
 0x38f   : > { %6776 = vmatmul.mubr.bf16.vlgmr.msra.gmra.mrb[140].mxu0 %v5531_v33  ;;  %8153 = vmatpush3.bf16.msra.mxu1 %v8647_v1  ;;  %v8701_v1 = vld [vmem:[%s11727_s5 + $0x3f0] sm:$0xff]  }
 0x390   : > { %6895 = vmatprep.mubr.bf16.mxu1 %v5594_v58  ;;  %8131 = vmatpush3.bf16.msra.mxu0 %v8648_v19  ;;  %v8703_v19 = vld [vmem:[%s11727_s5 + $0x3b0] sm:$0xff]   ;;  %v8706_v58 = vld [vmem:[%s11727_s5 + $0x378] sm:$0xff]  }
 0x391   : > { %6855 = vmatprep.mubr.bf16.mxu0 %v5578_v60  ;;  %8154 = vmatprep.subr.bf16.mxu1 %v8649_v32  ;;  %v8704_v33 = vld [vmem:[%s11727_s5 + $0x330] sm:$0xff]   ;;  %v8705_v32 = vld [vmem:[%s11727_s5 + $0x3f8] sm:$0xff]  }
 0x392   : > { %8132 = vmatprep.subr.bf16.mxu0 %v8650_v11  ;;  %v8707_v11 = vld [vmem:[%s11727_s5 + $0x3b8] sm:$0xff]  }
 0x393   : > { %8155 = vmatpush3.bf16.msra.mxu1 %v8651_v20  ;;  %v8708_v60 = vld [vmem:[%s11727_s5 + $0x338] sm:$0xff]   ;;  %v5621_v20 = vpack.c.b16 %v11438_v10, %v11438_v10 }
 0x394   : > { %8133 = vmatpush3.bf16.msra.mxu0 %v8652_v46  ;;  %8156 = vmatprep.subr.bf16.mxu1 %v8653_v35  ;;  %v5603_v46 = vpack.c.b16 %v11451_v7, %v11451_v7 }
 0x395   : > { %8134 = vmatprep.subr.bf16.mxu0 %v8654_v48 }
 0x397   : > { %8157 = vmatpush3.bf16.msra.mxu1 %v8655_v17 }
 0x398   : > { %8135 = vmatpush3.bf16.msra.mxu0 %v8656_v15  ;;  %8158 = vmatprep.subr.bf16.mxu1 %v8657_v18  ;;  %v7374_v18 = vld [vmem:[%s11728_s6] ss:$0 sm:$0xff] }
 0x399   : > { %8136 = vmatprep.subr.bf16.mxu0 %v8658_v9 }
 0x39b   : > { %8159 = vmatpush3.bf16.msra.mxu1 %v8659_v14 }
 0x39c   : > { %8137 = vmatpush3.bf16.msra.mxu0 %v8660_v16  ;;  %8160 = vmatprep.subr.bf16.mxu1 %v8661_v40 }
 0x39d   : > { %8138 = vmatprep.subr.bf16.mxu0 %v8662_v22 }
 0x39f   : > { %8161 = vmatpush3.bf16.msra.mxu1 %v8663_v50 }
 0x3a0   : > { %8139 = vmatpush3.bf16.msra.mxu0 %v8664_v0  ;;  %8162 = vmatprep.subr.bf16.mxu1 %v8665_v61 }
 0x3a1   : > { %8140 = vmatprep.subr.bf16.mxu0 %v8666_v29 }
 0x3a3   : > { %8163 = vmatpush3.bf16.msra.mxu1 %v8667_v30 }
 0x3a4   : > { %8141 = vmatpush3.bf16.msra.mxu0 %v8668_v31  ;;  %8164 = vmatprep.subr.bf16.mxu1 %v8669_v28 }
 0x3a5   : > { %8142 = vmatprep.subr.bf16.mxu0 %v8670_v27 }
 0x3a7   : > { %8165 = vmatpush3.bf16.msra.mxu1 %v8671_v56 }
 0x3a8   : > { %8143 = vmatpush3.bf16.msra.mxu0 %v8672_v23  ;;  %8166 = vmatprep.subr.bf16.mxu1 %v8673_v39 }
 0x3a9   : > { %8144 = vmatprep.subr.bf16.mxu0 %v8674_v37 }
 0x3ab   : > { %8167 = vmatpush3.bf16.msra.mxu1 %v8675_v45 }
 0x3ac   : > { %8145 = vmatpush3.bf16.msra.mxu0 %v8676_v55  ;;  %8196 = vmatprep.subr.bf16.mxu1 %v8677_v41 }
 0x3ad   : > { %8174 = vmatprep.subr.bf16.mxu0 %v8678_v25 }
 0x3ae   : > { %6896 = vmatmul.mubr.bf16.vlgmr.msra.gmra.mrb[152].mxu1 %v5586_v57 }
 0x3af   : > { %6856 = vmatmul.mubr.bf16.vlgmr.msra.gmra.mrb[144].mxu0 %v5570_v2  ;;  %8197 = vmatpush3.bf16.msra.mxu1 %v8679_v62 }
 0x3b0   : > { %6975 = vmatprep.mubr.bf16.mxu1 %v5630_v49  ;;  %8175 = vmatpush3.bf16.msra.mxu0 %v8680_v52 }
 0x3b1   : > { %6935 = vmatprep.mubr.bf16.mxu0 %v5612_v63  ;;  %8198 = vmatprep.subr.bf16.mxu1 %v8681_v21 }
 0x3b2   : > { %8176 = vmatprep.subr.bf16.mxu0 %v8682_v12 }
 0x3b3   : > { %8199 = vmatpush3.bf16.msra.mxu1 %v8683_v34 }
 0x3b4   : > { %8177 = vmatpush3.bf16.msra.mxu0 %v8684_v59  ;;  %8200 = vmatprep.subr.bf16.mxu1 %v8685_v51 }
 0x3b5   : > { %8178 = vmatprep.subr.bf16.mxu0 %v8686_v36 }
 0x3b7   : > { %8201 = vmatpush3.bf16.msra.mxu1 %v8687_v3 }
 0x3b8   : > { %8179 = vmatpush3.bf16.msra.mxu0 %v8688_v47  ;;  %8202 = vmatprep.subr.bf16.mxu1 %v8689_v4 }
 0x3b9   : > { %8180 = vmatprep.subr.bf16.mxu0 %v8690_v43 }
 0x3bb   : > { %8203 = vmatpush3.bf16.msra.mxu1 %v8691_v38 }
 0x3bc   : > { %8181 = vmatpush3.bf16.msra.mxu0 %v8692_v13  ;;  %8204 = vmatprep.subr.bf16.mxu1 %v8693_v26 }
 0x3bd   : > { %8182 = vmatprep.subr.bf16.mxu0 %v8694_v42 }
 0x3bf   : > { %8205 = vmatpush3.bf16.msra.mxu1 %v8695_v54 }
 0x3c0   : > { %8183 = vmatpush3.bf16.msra.mxu0 %v8696_v5  ;;  %8206 = vmatprep.subr.bf16.mxu1 %v8697_v44  ;;  %v7503_v44 = vld [vmem:[%s11729_s7] ss:$0 sm:$0xff] }
 0x3c1   : > { %8184 = vmatprep.subr.bf16.mxu0 %v8698_v6 }
 0x3c3   : > { %8207 = vmatpush3.bf16.msra.mxu1 %v8699_v53 }
 0x3c4   : > { %8185 = vmatpush3.bf16.msra.mxu0 %v8700_v8  ;;  %8208 = vmatprep.subr.bf16.mxu1 %v8701_v1  ;;  %v7504_v1 = vld [vmem:[%s11730_s8] ss:$0 sm:$0xff] }
 0x3c5   : > { %8186 = vmatprep.subr.bf16.mxu0 %v8702_v24 }
 0x3c7   : > { %8209 = vmatpush3.bf16.msra.mxu1 %v8703_v19 }
 0x3c8   : > { %8187 = vmatpush3.bf16.msra.mxu0 %v8704_v33  ;;  %8210 = vmatprep.subr.bf16.mxu1 %v8705_v32 }
 0x3c9   : > { %8188 = vmatprep.subr.bf16.mxu0 %v8706_v58 }
 0x3cb   : > { %8211 = vmatpush3.bf16.msra.mxu1 %v8707_v11 }
 0x3cc   : > { %8189 = vmatpush3.bf16.msra.mxu0 %v8708_v60 }
 0x3ce   : > { %6976 = vmatmul.mubr.bf16.vlgmr.msra.gmra.mrb[156].mxu1 %v5621_v20 }
 0x3cf   : > { %6936 = vmatmul.mubr.bf16.vlgmr.msra.gmra.mrb[148].mxu0 %v5603_v46 }
 0x441   : > { %v8080_v35 = vpop.f32.mrb[144].mxu1 }
 0x442   : > { %v8058_v48 = vpop.f32.mrb[136].mxu0  ;;  %v8081_v17 = vpop.f32.mrb[145].mxu1 }
 0x443   : > { %v8082_v15 = vadd.f32 %v8081_v17, %v8080_v35  ;;  %v8059_v9 = vpop.f32.mrb[137].mxu0  ;;  %v8083_v14 = vpop.f32.mrb[146].mxu1 }
 0x444   : > { %v8060_v16 = vadd.f32 %v8059_v9, %v8058_v48  ;;  %v8061_v40 = vpop.f32.mrb[138].mxu0  ;;  %v8084_v22 = vpop.f32.mrb[147].mxu1 }
 0x445   : > { %v8062_v50 = vpop.f32.mrb[139].mxu0 }
 0x446   : > { %v6698_v10 = vadd.f32 %v8060_v16, %v7374_v18 }
 0x448   : > { %v6738_v0 = vadd.f32 %v8082_v15, %v6698_v10 }
 0x461   : > { %v8124_v61 = vpop.f32.mrb[148].mxu1 }
 0x462   : > { %v8102_v7 = vpop.f32.mrb[140].mxu0  ;;  %v8125_v29 = vpop.f32.mrb[149].mxu1 }
 0x463   : > { %v8126_v30 = vadd.f32 %v8125_v29, %v8124_v61  ;;  %v8103_v31 = vpop.f32.mrb[141].mxu0  ;;  %v8127_v28 = vpop.f32.mrb[150].mxu1 }
 0x464   : > { %v8104_v27 = vadd.f32 %v8103_v31, %v8102_v7  ;;  %v8105_v56 = vpop.f32.mrb[142].mxu0  ;;  %v8128_v23 = vpop.f32.mrb[151].mxu1 }
 0x465   : > { %v8106_v39 = vpop.f32.mrb[143].mxu0 }
 0x466   : > { %v6778_v37 = vadd.f32 %v8104_v27, %v6738_v0 }
 0x468   : > { %v6818_v45 = vadd.f32 %v8126_v30, %v6778_v37 }
 0x481   : > { %v8168_v55 = vpop.f32.mrb[152].mxu1 }
 0x482   : > { %v8146_v41 = vpop.f32.mrb[144].mxu0  ;;  %v8169_v25 = vpop.f32.mrb[153].mxu1 }
 0x483   : > { %v8170_v62 = vadd.f32 %v8169_v25, %v8168_v55  ;;  %v8147_v57 = vpop.f32.mrb[145].mxu0  ;;  %v8171_v52 = vpop.f32.mrb[154].mxu1 }
 0x484   : > { %v8148_v2 = vadd.f32 %v8147_v57, %v8146_v41  ;;  %v8149_v21 = vpop.f32.mrb[146].mxu0  ;;  %v8172_v49 = vpop.f32.mrb[155].mxu1 }
 0x485   : > { %v8150_v12 = vpop.f32.mrb[147].mxu0 }
 0x486   : > { %v6858_v63 = vadd.f32 %v8148_v2, %v6818_v45 }
 0x488   : > { %v6898_v34 = vadd.f32 %v8170_v62, %v6858_v63 }
 0x4a1   : > { %v8212_v59 = vpop.f32.mrb[156].mxu1 }
 0x4a2   : > { %v8190_v51 = vpop.f32.mrb[148].mxu0  ;;  %v8213_v36 = vpop.f32.mrb[157].mxu1 }
 0x4a3   : > { %v8214_v3 = vadd.f32 %v8213_v36, %v8212_v59  ;;  %v8191_v47 = vpop.f32.mrb[149].mxu0  ;;  %v8215_v4 = vpop.f32.mrb[158].mxu1 }
 0x4a4   : > { %v8192_v43 = vadd.f32 %v8191_v47, %v8190_v51  ;;  %v8193_v38 = vpop.f32.mrb[150].mxu0  ;;  %v8216_v13 = vpop.f32.mrb[159].mxu1 }
 0x4a5   : > { %v8194_v26 = vpop.f32.mrb[151].mxu0 }
 0x4a6   : > { %v6938_v42 = vadd.f32 %v8192_v43, %v6898_v34 }
 0x4a8   : > { %v6978_v54 = vadd.f32 %v8214_v3, %v6938_v42 }
 0x4aa   : > { %vm6983_vm7 = vcmp.gt.f32.partialorder %v6978_v54, 0.0  ;;  %v6984_v5 = vmul.f32 0.01, %v6978_v54 }
 0x4ac   : > { %v6985_v6 = vsel %vm6983_vm7, %v6978_v54, %v6984_v5 }
 0x4ad   : > { %v6993_v53 = vmul.f32 %v7503_v44, %v6985_v6 }
 0x4af   : > { %v6994_v8 = vsel %vm1281_vm2, %v6993_v53, 0.0 }
 0x4b0   : > { %6995 = vadd.xlane.f32.xlu0 %v6994_v8 }
 0x53d   : > { %v6996_v24 = vpop.xlane.xlu0 %6995 }
 0x53e   : > { %v7004_v19 = vadd.f32 %v7504_v1, %v6996_v24 }
 0x540   : > { %v7005_v33 = vand.u32 2147483647, %v7004_v19  ;;  %vm7009_vm2 = vcmp.ge.f32.partialorder %v7004_v19, 0.0 }
 0x542   : > { %v7006_v32 = vsub.f32 0.0, %v7005_v33 }
 0x544   : > { %v7007_v58 = vmul.f32 1.442695, %v7006_v32 }
 0x546   : > { %8709 = vpow2.f32 %v7007_v58 }
 0x550   : > { %v8710_v11 = vpop.eup %8709 }
 0x551   : > { %v7010_v60 = vadd.f32 1.0, %v8710_v11 }
 0x553   : > { %8711 = vrcp.f32 %v7010_v60 }
 0x55d   : > { %v8712_v20 = vpop.eup %8711 }
 0x55e   : > { %v7013_v46 = vmul.f32 %v8712_v20, %v8710_v11 }
 0x560   : > { %v7014_v35 = vsel %vm7009_vm2, %v8712_v20, %v7013_v46 }
 0x561   : > { %7015 = vst [vmem:[%s335_s14] sm:$0xf] %v7014_v35 }
 0x562 PF: > { %s19_s30 = sadd.s32 1, %s8721_s30  }
 0x563   : > { %p16_p5 = scmp.ge.s32.totalorder %s19_s30, 4  }
 0x565   :  { %18 = sbr.rel (!%p16_p5) target bundleno = 1 (0x1), region = 86 }

</bundles_post_ra>
